<compile_context>
chip_gen: v7x
topology: tpu7x:2x2x1
jax: 0.10.0
libtpu: 0.0.40
codegen_flags: <defaults>
</compile_context>

<pallas_src>
import math
import numpy as np
import jax
import jax.numpy as jnp
from jax.experimental import pallas as pl
from jax.experimental.pallas import tpu as pltpu

# ---- model config (ViTPretrain(chw, patches=True), small) ----
CHW = (4, 16, 16)        # (C, H, W)
N_PATCHES = 4
N_BLOCKS = 2
HID = 32                 # hidden_d
N_HEADS = 4
OUT_D = 10
MLP_RATIO = 4

PATCH = CHW[1] // N_PATCHES          # 4
DIN = CHW[0] * PATCH * PATCH         # 64 = input_d
S0 = N_PATCHES * N_PATCHES           # 16 patches
SEQ = S0 + 1                         # 17 tokens (class token + patches)
SEQ_PAD = 24                         # padded to a sublane multiple
DK = HID // N_HEADS                  # 8
MLP_D = MLP_RATIO * HID              # 128
OUT_PAD = 128                        # lane-dense padded head width
LN_EPS = 1e-5                        # torch nn.LayerNorm default


# ----------------------------- host-side glue -------------------------------
def get_positional_embeddings(sequence_length, d):
    # identical math to the PyTorch reference
    result = np.ones((sequence_length, d), dtype=np.float32)
    for i in range(sequence_length):
        for j in range(d):
            if j % 2 == 0:
                result[i, j] = np.sin(i / 10000 ** (j / d))
            else:
                result[i, j] = np.cos(i / 10000 ** ((j - 1) / d))
    return result


def patchify(images, n_patches):
    # same semantics as the torch loop version: patch flattened in (C, ph, pw) order
    n, c, h, w = images.shape
    ps = h // n_patches
    x = images.reshape(n, c, n_patches, ps, n_patches, ps)
    x = x.transpose(0, 2, 4, 1, 3, 5)
    return x.reshape(n, n_patches * n_patches, c * ps * ps)


# --------------------------- shared math helpers -----------------------------
def _layernorm(x, g, b):
    mu = jnp.mean(x, axis=-1, keepdims=True)
    xc = x - mu
    var = jnp.mean(xc * xc, axis=-1, keepdims=True)
    return xc * jax.lax.rsqrt(var + LN_EPS) * g + b


def _gelu_tanh(x):
    # tanh-approx GELU (EUP tanh) — within test tolerance of torch's exact-erf GELU
    c = math.sqrt(2.0 / math.pi)
    return 0.5 * x * (1.0 + jnp.tanh(c * (x + 0.044715 * x * x * x)))


def _gelu_exact(x):
    return 0.5 * x * (1.0 + jax.lax.erf(x * (1.0 / math.sqrt(2.0))))


# ------------------------------- Pallas kernel -------------------------------
def vit_kernel(patches_ref, w_map_ref, addend_ref, ln_ref,
               w_qkv_ref, b_qkv_ref, w_o_ref, b_o_ref,
               w_m1_ref, b_m1_ref, w_m2_ref, b_m2_ref,
               w_head_ref, b_head_ref, out_ref):
    B = patches_ref.shape[0]
    bf16 = jnp.bfloat16
    f32 = jnp.float32

    # linear mapper on the whole batch tile: (B*SEQ_PAD, DIN) @ (DIN, HID)
    # (row 0 and rows SEQ..SEQ_PAD-1 of each image are zero patch rows from the host)
    p2 = patches_ref[...].reshape(B * SEQ_PAD, DIN)                   # bf16
    t = jnp.dot(p2, w_map_ref[...], preferred_element_type=f32)
    # addend folds: row0 = class_token + pos[0]; rows 1..S0 = pos + mapper bias; pad rows 0
    x = t.reshape(B, SEQ_PAD, HID) + addend_ref[...]                  # (B, SEQ_PAD, HID) f32

    # key mask for padded sequence rows (keys >= SEQ never attended to)
    key_idx = jax.lax.broadcasted_iota(jnp.int32, (1, SEQ_PAD), 1)
    neg_mask = jnp.where(key_idx >= SEQ, -1e9, 0.0).astype(f32)       # (1, SEQ_PAD)

    scale = 1.0 / math.sqrt(DK)
    for blk in range(N_BLOCKS):
        lnp = ln_ref[blk]                                             # (4, HID) f32
        g1, be1 = lnp[0:1, :], lnp[1:2, :]
        g2, be2 = lnp[2:3, :], lnp[3:4, :]

        # ---------------- MHSA ----------------
        h1 = _layernorm(x, g1, be1)                                   # f32
        h1b = h1.astype(bf16).reshape(B * SEQ_PAD, HID)
        qkv = jnp.dot(h1b, w_qkv_ref[blk], preferred_element_type=f32)
        qkv = qkv.reshape(B, SEQ_PAD, 3 * HID) + b_qkv_ref[blk]       # (B, SEQ_PAD, 96)

        heads = []
        for h in range(N_HEADS):
            qh = qkv[:, :, h * DK:(h + 1) * DK]
            kh = qkv[:, :, HID + h * DK:HID + (h + 1) * DK]
            vh = qkv[:, :, 2 * HID + h * DK:2 * HID + (h + 1) * DK]
            s = jnp.einsum('bqd,bkd->bqk', qh, kh,
                           preferred_element_type=f32) * scale
            s = s + neg_mask                                          # mask padded keys
            s = s - jnp.max(s, axis=-1, keepdims=True)
            e = jnp.exp(s)
            inv = pl.reciprocal(jnp.sum(e, axis=-1, keepdims=True), approx=True)
            p = e * inv
            heads.append(jnp.einsum('bqk,bkd->bqd', p, vh,
                                    preferred_element_type=f32))      # (B, SEQ_PAD, DK)
        attn = jnp.concatenate(heads, axis=-1)                        # (B, SEQ_PAD, HID)

        attnb = attn.astype(bf16).reshape(B * SEQ_PAD, HID)
        proj = jnp.dot(attnb, w_o_ref[blk], preferred_element_type=f32)
        x = x + proj.reshape(B, SEQ_PAD, HID) + b_o_ref[blk]

        # ---------------- MLP ----------------
        h2 = _layernorm(x, g2, be2)
        h2b = h2.astype(bf16).reshape(B * SEQ_PAD, HID)
        m = jnp.dot(h2b, w_m1_ref[blk], preferred_element_type=f32)
        m = m.reshape(B, SEQ_PAD, MLP_D) + b_m1_ref[blk]
        m = _gelu_tanh(m)
        mb = m.astype(bf16).reshape(B * SEQ_PAD, MLP_D)
        o = jnp.dot(mb, w_m2_ref[blk], preferred_element_type=f32)
        x = x + o.reshape(B, SEQ_PAD, HID) + b_m2_ref[blk]

    # classification head on all class tokens of the tile (lane-dense output)
    cls_x = x[:, 0, :].astype(bf16)                                   # (B, HID)
    out_ref[...] = jnp.dot(cls_x, w_head_ref[...],
                           preferred_element_type=f32) + b_head_ref[...]


# ------------------------------ params / packing ------------------------------
def init_raw_params(key):
    keys = iter(jax.random.split(key, 128))

    def w(shape, scale=0.05):
        return jax.random.normal(next(keys), shape, jnp.float32) * scale

    raw = {
        'w_map': w((DIN, HID)),                                   # linear_mapper.weight^T
        'b_map': w((HID,)),
        'cls': jax.random.uniform(next(keys), (1, HID), jnp.float32),
        'pos': jnp.asarray(get_positional_embeddings(SEQ, HID)),
        'blocks': [],
        'w_head': w((HID, OUT_D)),
        'b_head': w((OUT_D,)),
    }
    for _ in range(N_BLOCKS):
        raw['blocks'].append({
            'g1': jnp.ones((HID,), jnp.float32), 'be1': jnp.zeros((HID,), jnp.float32),
            'wq': w((HID, HID)), 'bq': w((HID,)),
            'wk': w((HID, HID)), 'bk': w((HID,)),
            'wv': w((HID, HID)), 'bv': w((HID,)),
            'wo': w((HID, HID)), 'bo': w((HID,)),
            'g2': jnp.ones((HID,), jnp.float32), 'be2': jnp.zeros((HID,), jnp.float32),
            'w1': w((HID, MLP_D)), 'b1': w((MLP_D,)),
            'w2': w((MLP_D, HID)), 'b2': w((HID,)),
        })
    return raw


def pack_params(raw):
    bf16 = jnp.bfloat16
    blocks = raw['blocks']

    addend = jnp.zeros((SEQ_PAD, HID), jnp.float32)
    addend = addend.at[0].set(raw['cls'][0] + raw['pos'][0])
    addend = addend.at[1:SEQ].set(raw['pos'][1:] + raw['b_map'][None, :])

    ln = jnp.stack([jnp.stack([b['g1'], b['be1'], b['g2'], b['be2']]) for b in blocks])

    w_qkv = jnp.stack([jnp.concatenate([b['wq'], b['wk'], b['wv']], axis=1)
                       for b in blocks]).astype(bf16)                 # (NB, HID, 3*HID)
    b_qkv = jnp.stack([jnp.concatenate([b['bq'], b['bk'], b['bv']])[None, :]
                       for b in blocks])                              # (NB, 1, 3*HID)
    w_o = jnp.stack([b['wo'] for b in blocks]).astype(bf16)
    b_o = jnp.stack([b['bo'][None, :] for b in blocks])
    w_m1 = jnp.stack([b['w1'] for b in blocks]).astype(bf16)
    b_m1 = jnp.stack([b['b1'][None, :] for b in blocks])
    w_m2 = jnp.stack([b['w2'] for b in blocks]).astype(bf16)
    b_m2 = jnp.stack([b['b2'][None, :] for b in blocks])

    w_head = jnp.zeros((HID, OUT_PAD), jnp.float32).at[:, :OUT_D].set(raw['w_head']).astype(bf16)
    b_head = jnp.zeros((1, OUT_PAD), jnp.float32).at[0, :OUT_D].set(raw['b_head'])

    return (raw['w_map'].astype(bf16), addend, ln,
            w_qkv, b_qkv, w_o, b_o, w_m1, b_m1, w_m2, b_m2, w_head, b_head)


# ------------------------------- forward wrapper ------------------------------
def _const_map(ndim):
    return lambda i: (0,) * ndim


def vit_pretrain_forward(images, raw_params, b_tile=128):
    slabs = pack_params(raw_params)
    patches = patchify(images, N_PATCHES)                             # (n, S0, DIN) f32
    n = patches.shape[0]

    bt = n if n <= b_tile else b_tile                                 # batch tile
    n_tiles = -(-n // bt)
    n_pad = n_tiles * bt

    # Host-side layout prep: zero row 0 (class-token slot) + zero pad rows, bf16.
    pp = jnp.zeros((n_pad, SEQ_PAD, DIN), jnp.bfloat16)
    pp = pp.at[:n, 1:SEQ, :].set(patches.astype(jnp.bfloat16))

    in_specs = [pl.BlockSpec((bt, SEQ_PAD, DIN), lambda i: (i, 0, 0))]
    for s in slabs:
        in_specs.append(pl.BlockSpec(s.shape, _const_map(s.ndim)))

    out = pl.pallas_call(
        vit_kernel,
        out_shape=jax.ShapeDtypeStruct((n_pad, OUT_PAD), jnp.float32),
        grid_spec=pltpu.PrefetchScalarGridSpec(
            num_scalar_prefetch=0,
            grid=(n_tiles,),
            in_specs=in_specs,
            out_specs=pl.BlockSpec((bt, OUT_PAD), lambda i: (i, 0)),
        ),
        compiler_params=pltpu.CompilerParams(
            dimension_semantics=("parallel",)),
        # NOTE: at larger b_tile on v7x, also pass vmem_limit_bytes explicitly.
    )(pp, *slabs)
    return out[:n, :OUT_D]


# --------------------------- pure-JAX f32 reference ----------------------------
def ref_forward(images, raw):
    patches = patchify(images, N_PATCHES)
    n = patches.shape[0]
    t = jnp.einsum('nsd,dh->nsh', patches, raw['w_map']) + raw['b_map']
    cls_b = jnp.broadcast_to(raw['cls'][None, :, :], (n, 1, HID))
    x = jnp.concatenate([cls_b, t], axis=1) + raw['pos'][None]
    scale = 1.0 / math.sqrt(DK)
    for b in raw['blocks']:
        h1 = _layernorm(x, b['g1'], b['be1'])
        q = jnp.einsum('nsh,hk->nsk', h1, b['wq']) + b['bq']
        k = jnp.einsum('nsh,hk->nsk', h1, b['wk']) + b['bk']
        v = jnp.einsum('nsh,hk->nsk', h1, b['wv']) + b['bv']
        heads = []
        for h in range(N_HEADS):
            sl = slice(h * DK, (h + 1) * DK)
            s = jnp.einsum('nqd,nkd->nqk', q[..., sl], k[..., sl]) * scale
            p = jax.nn.softmax(s, axis=-1)
            heads.append(jnp.einsum('nqk,nkd->nqd', p, v[..., sl]))
        attn = jnp.concatenate(heads, axis=-1)
        x = x + jnp.einsum('nsh,hk->nsk', attn, b['wo']) + b['bo']
        h2 = _layernorm(x, b['g2'], b['be2'])
        m = _gelu_exact(jnp.einsum('nsh,hk->nsk', h2, b['w1']) + b['b1'])
        x = x + jnp.einsum('nsk,kh->nsh', m, b['w2']) + b['b2']
    return jnp.einsum('nh,ho->no', x[:, 0], raw['w_head']) + raw['b_head']


if __name__ == "__main__":
    key = jax.random.PRNGKey(0)
    k_img, k_par = jax.random.split(key)
    images = jax.random.normal(k_img, (2,) + CHW, jnp.float32)        # NCHW, like torch
    raw = init_raw_params(k_par)

    out = vit_pretrain_forward(images, raw)
    out = jax.block_until_ready(out)
    assert out.shape == (2, OUT_D)

    ref = ref_forward(images, raw)
    np.testing.assert_allclose(np.asarray(out), np.asarray(ref), rtol=2e-2, atol=2e-2)
    print("KERNEL_OK")
</pallas_src>

<mosaic_0001>
module attributes {stable_mosaic.version = 11 : i64} {
  func.func @vit_kernel(%arg0: i32, %arg1: memref<2x24x64xbf16, #tpu.memory_space<vmem>>, %arg2: memref<64x32xbf16, #tpu.memory_space<vmem>>, %arg3: memref<24x32xf32, #tpu.memory_space<vmem>>, %arg4: memref<2x4x32xf32, #tpu.memory_space<vmem>>, %arg5: memref<2x32x96xbf16, #tpu.memory_space<vmem>>, %arg6: memref<2x1x96xf32, #tpu.memory_space<vmem>>, %arg7: memref<2x32x32xbf16, #tpu.memory_space<vmem>>, %arg8: memref<2x1x32xf32, #tpu.memory_space<vmem>>, %arg9: memref<2x32x128xbf16, #tpu.memory_space<vmem>>, %arg10: memref<2x1x128xf32, #tpu.memory_space<vmem>>, %arg11: memref<2x128x32xbf16, #tpu.memory_space<vmem>>, %arg12: memref<2x1x32xf32, #tpu.memory_space<vmem>>, %arg13: memref<32x128xbf16, #tpu.memory_space<vmem>>, %arg14: memref<1x128xf32, #tpu.memory_space<vmem>>, %arg15: memref<2x128xf32, #tpu.memory_space<vmem>>) attributes {dimension_semantics = [#tpu.dimension_semantics<parallel>], iteration_bounds = array<i64: 1>, scalar_prefetch = 0 : i64, scratch_operands = 0 : i64, tpu.core_type = #tpu.core_type<tc>, window_params = [{transform_indices = @transform_0, window_bounds = array<i64: 2, 24, 64>}, {pipeline_mode = #tpu.pipeline_mode<synchronous>, transform_indices = @transform_1, window_bounds = array<i64: 64, 32>}, {pipeline_mode = #tpu.pipeline_mode<synchronous>, transform_indices = @transform_2, window_bounds = array<i64: 24, 32>}, {pipeline_mode = #tpu.pipeline_mode<synchronous>, transform_indices = @transform_3, window_bounds = array<i64: 2, 4, 32>}, {pipeline_mode = #tpu.pipeline_mode<synchronous>, transform_indices = @transform_4, window_bounds = array<i64: 2, 32, 96>}, {pipeline_mode = #tpu.pipeline_mode<synchronous>, transform_indices = @transform_5, window_bounds = array<i64: 2, 1, 96>}, {pipeline_mode = #tpu.pipeline_mode<synchronous>, transform_indices = @transform_6, window_bounds = array<i64: 2, 32, 32>}, {pipeline_mode = #tpu.pipeline_mode<synchronous>, transform_indices = @transform_7, window_bounds = array<i64: 2, 1, 32>}, {pipeline_mode = #tpu.pipeline_mode<synchronous>, transform_indices = @transform_8, window_bounds = array<i64: 2, 32, 128>}, {pipeline_mode = #tpu.pipeline_mode<synchronous>, transform_indices = @transform_9, window_bounds = array<i64: 2, 1, 128>}, {pipeline_mode = #tpu.pipeline_mode<synchronous>, transform_indices = @transform_10, window_bounds = array<i64: 2, 128, 32>}, {pipeline_mode = #tpu.pipeline_mode<synchronous>, transform_indices = @transform_11, window_bounds = array<i64: 2, 1, 32>}, {pipeline_mode = #tpu.pipeline_mode<synchronous>, transform_indices = @transform_12, window_bounds = array<i64: 32, 128>}, {pipeline_mode = #tpu.pipeline_mode<synchronous>, transform_indices = @transform_13, window_bounds = array<i64: 1, 128>}, {transform_indices = @transform_14, window_bounds = array<i64: 2, 128>}]} {
    %c0 = arith.constant 0 : index
    %c0_0 = arith.constant 0 : index
    %c0_1 = arith.constant 0 : index
    %0 = vector.load %arg1[%c0, %c0_0, %c0_1] : memref<2x24x64xbf16, #tpu.memory_space<vmem>>, vector<2x24x64xbf16>
    %1 = vector.shape_cast %0 : vector<2x24x64xbf16> to vector<48x64xbf16>
    %c0_2 = arith.constant 0 : index
    %c0_3 = arith.constant 0 : index
    %2 = vector.load %arg2[%c0_2, %c0_3] : memref<64x32xbf16, #tpu.memory_space<vmem>>, vector<64x32xbf16>
    %cst = arith.constant dense<0.000000e+00> : vector<48x32xf32>
    %3 = tpu.matmul %1, %2, %cst {dimension_numbers = #tpu.dot_dimension_numbers<[1], [0], [0], [1], [0, 0, 1, 1], [], []>} : vector<48x64xbf16>, vector<64x32xbf16>, vector<48x32xf32> -> vector<48x32xf32>
    %4 = vector.shape_cast %3 : vector<48x32xf32> to vector<2x24x32xf32>
    %c0_4 = arith.constant 0 : index
    %c0_5 = arith.constant 0 : index
    %5 = vector.load %arg3[%c0_4, %c0_5] : memref<24x32xf32, #tpu.memory_space<vmem>>, vector<24x32xf32>
    %6 = vector.shape_cast %5 : vector<24x32xf32> to vector<1x24x32xf32>
    %7 = vector.broadcast %6 : vector<1x24x32xf32> to vector<2x24x32xf32>
    %8 = arith.addf %4, %7 : vector<2x24x32xf32>
    %9 = tpu.iota {dimensions = array<i32: 1>} : vector<1x24xi32>
    %c17_i32 = arith.constant 17 : i32
    %10 = vector.broadcast %c17_i32 : i32 to vector<1x24xi32>
    %11 = arith.cmpi sge, %9, %10 : vector<1x24xi32>
    %cst_6 = arith.constant -1.000000e+09 : f32
    %cst_7 = arith.constant 0.000000e+00 : f32
    %12 = vector.broadcast %cst_6 : f32 to vector<1x24xf32>
    %13 = vector.broadcast %cst_7 : f32 to vector<1x24xf32>
    %14 = arith.select %11, %12, %13 : vector<1x24xi1>, vector<1x24xf32>
    %c0_8 = arith.constant 0 : index
    %c0_9 = arith.constant 0 : index
    %c0_10 = arith.constant 0 : index
    %15 = vector.load %arg4[%c0_8, %c0_9, %c0_10] : memref<2x4x32xf32, #tpu.memory_space<vmem>>, vector<1x4x32xf32>
    %16 = vector.shape_cast %15 : vector<1x4x32xf32> to vector<4x32xf32>
    %17 = vector.extract_strided_slice %16 {offsets = [0, 0], sizes = [1, 32], strides = [1, 1]} : vector<4x32xf32> to vector<1x32xf32>
    %18 = vector.extract_strided_slice %16 {offsets = [1, 0], sizes = [1, 32], strides = [1, 1]} : vector<4x32xf32> to vector<1x32xf32>
    %19 = vector.extract_strided_slice %16 {offsets = [2, 0], sizes = [1, 32], strides = [1, 1]} : vector<4x32xf32> to vector<1x32xf32>
    %20 = vector.extract_strided_slice %16 {offsets = [3, 0], sizes = [1, 32], strides = [1, 1]} : vector<4x32xf32> to vector<1x32xf32>
    %cst_11 = arith.constant dense<0.000000e+00> : vector<2x24xf32>
    %21 = vector.multi_reduction <add>, %8, %cst_11 [2] : vector<2x24x32xf32> to vector<2x24xf32>
    %22 = vector.shape_cast %21 : vector<2x24xf32> to vector<2x24x1xf32>
    %cst_12 = arith.constant 3.200000e+01 : f32
    %23 = vector.broadcast %cst_12 : f32 to vector<2x24x1xf32>
    %24 = arith.divf %22, %23 : vector<2x24x1xf32>
    %25 = vector.broadcast %24 : vector<2x24x1xf32> to vector<2x24x32xf32>
    %26 = arith.subf %8, %25 : vector<2x24x32xf32>
    %27 = arith.mulf %26, %26 : vector<2x24x32xf32>
    %cst_13 = arith.constant dense<0.000000e+00> : vector<2x24xf32>
    %28 = vector.multi_reduction <add>, %27, %cst_13 [2] : vector<2x24x32xf32> to vector<2x24xf32>
    %29 = vector.shape_cast %28 : vector<2x24xf32> to vector<2x24x1xf32>
    %cst_14 = arith.constant 3.200000e+01 : f32
    %30 = vector.broadcast %cst_14 : f32 to vector<2x24x1xf32>
    %31 = arith.divf %29, %30 : vector<2x24x1xf32>
    %cst_15 = arith.constant 9.99999974E-6 : f32
    %32 = vector.broadcast %cst_15 : f32 to vector<2x24x1xf32>
    %33 = arith.addf %31, %32 : vector<2x24x1xf32>
    %34 = math.rsqrt %33 : vector<2x24x1xf32>
    %35 = vector.broadcast %34 : vector<2x24x1xf32> to vector<2x24x32xf32>
    %36 = arith.mulf %26, %35 : vector<2x24x32xf32>
    %37 = vector.shape_cast %17 : vector<1x32xf32> to vector<1x1x32xf32>
    %38 = vector.broadcast %37 : vector<1x1x32xf32> to vector<2x24x32xf32>
    %39 = arith.mulf %36, %38 : vector<2x24x32xf32>
    %40 = vector.shape_cast %18 : vector<1x32xf32> to vector<1x1x32xf32>
    %41 = vector.broadcast %40 : vector<1x1x32xf32> to vector<2x24x32xf32>
    %42 = arith.addf %39, %41 : vector<2x24x32xf32>
    %43 = arith.truncf %42 : vector<2x24x32xf32> to vector<2x24x32xbf16>
    %44 = vector.shape_cast %43 : vector<2x24x32xbf16> to vector<48x32xbf16>
    %c0_16 = arith.constant 0 : index
    %c0_17 = arith.constant 0 : index
    %c0_18 = arith.constant 0 : index
    %45 = vector.load %arg5[%c0_16, %c0_17, %c0_18] : memref<2x32x96xbf16, #tpu.memory_space<vmem>>, vector<1x32x96xbf16>
    %46 = vector.shape_cast %45 : vector<1x32x96xbf16> to vector<32x96xbf16>
    %cst_19 = arith.constant dense<0.000000e+00> : vector<48x96xf32>
    %47 = tpu.matmul %44, %46, %cst_19 {dimension_numbers = #tpu.dot_dimension_numbers<[1], [0], [0], [1], [0, 0, 1, 1], [], []>} : vector<48x32xbf16>, vector<32x96xbf16>, vector<48x96xf32> -> vector<48x96xf32>
    %48 = vector.shape_cast %47 : vector<48x96xf32> to vector<2x24x96xf32>
    %c0_20 = arith.constant 0 : index
    %c0_21 = arith.constant 0 : index
    %c0_22 = arith.constant 0 : index
    %49 = vector.load %arg6[%c0_20, %c0_21, %c0_22] : memref<2x1x96xf32, #tpu.memory_space<vmem>>, vector<1x1x96xf32>
    %50 = vector.shape_cast %49 : vector<1x1x96xf32> to vector<1x96xf32>
    %51 = vector.shape_cast %50 : vector<1x96xf32> to vector<1x1x96xf32>
    %52 = vector.broadcast %51 : vector<1x1x96xf32> to vector<2x24x96xf32>
    %53 = arith.addf %48, %52 : vector<2x24x96xf32>
    %54 = vector.extract_strided_slice %53 {offsets = [0, 0, 0], sizes = [2, 24, 8], strides = [1, 1, 1]} : vector<2x24x96xf32> to vector<2x24x8xf32>
    %55 = vector.extract_strided_slice %53 {offsets = [0, 0, 32], sizes = [2, 24, 8], strides = [1, 1, 1]} : vector<2x24x96xf32> to vector<2x24x8xf32>
    %56 = vector.extract_strided_slice %53 {offsets = [0, 0, 64], sizes = [2, 24, 8], strides = [1, 1, 1]} : vector<2x24x96xf32> to vector<2x24x8xf32>
    "tpu.trace_start"() <{level = 10 : i32, message = "bqd,bkd->bqk"}> : () -> ()
    %cst_23 = arith.constant dense<0.000000e+00> : vector<2x24x24xf32>
    %57 = tpu.matmul %54, %55, %cst_23 {dimension_numbers = #tpu.dot_dimension_numbers<[2], [2], [1], [1], [0, 0, 0, 1, 1, 1], [0], [0]>} : vector<2x24x8xf32>, vector<2x24x8xf32>, vector<2x24x24xf32> -> vector<2x24x24xf32>
    "tpu.trace_stop"() : () -> ()
    %cst_24 = arith.constant 0.353553385 : f32
    %58 = vector.broadcast %cst_24 : f32 to vector<2x24x24xf32>
    %59 = arith.mulf %57, %58 : vector<2x24x24xf32>
    %60 = vector.shape_cast %14 : vector<1x24xf32> to vector<1x1x24xf32>
    %61 = vector.broadcast %60 : vector<1x1x24xf32> to vector<2x24x24xf32>
    %62 = arith.addf %59, %61 : vector<2x24x24xf32>
    %cst_25 = arith.constant dense<0xFF800000> : vector<2x24xf32>
    %63 = vector.multi_reduction <maximumf>, %62, %cst_25 [2] : vector<2x24x24xf32> to vector<2x24xf32>
    %64 = vector.shape_cast %63 : vector<2x24xf32> to vector<2x24x1xf32>
    %65 = vector.broadcast %64 : vector<2x24x1xf32> to vector<2x24x24xf32>
    %66 = arith.subf %62, %65 : vector<2x24x24xf32>
    %67 = math.exp %66 : vector<2x24x24xf32>
    %cst_26 = arith.constant dense<0.000000e+00> : vector<2x24xf32>
    %68 = vector.multi_reduction <add>, %67, %cst_26 [2] : vector<2x24x24xf32> to vector<2x24xf32>
    %69 = vector.shape_cast %68 : vector<2x24xf32> to vector<2x24x1xf32>
    %70 = tpu.reciprocal %69 {approx = true} : vector<2x24x1xf32> -> vector<2x24x1xf32>
    %71 = vector.broadcast %70 : vector<2x24x1xf32> to vector<2x24x24xf32>
    %72 = arith.mulf %67, %71 : vector<2x24x24xf32>
    "tpu.trace_start"() <{level = 10 : i32, message = "bqk,bkd->bqd"}> : () -> ()
    %cst_27 = arith.constant dense<0.000000e+00> : vector<2x24x8xf32>
    %73 = tpu.matmul %72, %56, %cst_27 {dimension_numbers = #tpu.dot_dimension_numbers<[2], [1], [1], [2], [0, 0, 0, 1, 1, 2], [0], [0]>} : vector<2x24x24xf32>, vector<2x24x8xf32>, vector<2x24x8xf32> -> vector<2x24x8xf32>
    "tpu.trace_stop"() : () -> ()
    %74 = vector.extract_strided_slice %53 {offsets = [0, 0, 8], sizes = [2, 24, 8], strides = [1, 1, 1]} : vector<2x24x96xf32> to vector<2x24x8xf32>
    %75 = vector.extract_strided_slice %53 {offsets = [0, 0, 40], sizes = [2, 24, 8], strides = [1, 1, 1]} : vector<2x24x96xf32> to vector<2x24x8xf32>
    %76 = vector.extract_strided_slice %53 {offsets = [0, 0, 72], sizes = [2, 24, 8], strides = [1, 1, 1]} : vector<2x24x96xf32> to vector<2x24x8xf32>
    "tpu.trace_start"() <{level = 10 : i32, message = "bqd,bkd->bqk"}> : () -> ()
    %cst_28 = arith.constant dense<0.000000e+00> : vector<2x24x24xf32>
    %77 = tpu.matmul %74, %75, %cst_28 {dimension_numbers = #tpu.dot_dimension_numbers<[2], [2], [1], [1], [0, 0, 0, 1, 1, 1], [0], [0]>} : vector<2x24x8xf32>, vector<2x24x8xf32>, vector<2x24x24xf32> -> vector<2x24x24xf32>
    "tpu.trace_stop"() : () -> ()
    %cst_29 = arith.constant 0.353553385 : f32
    %78 = vector.broadcast %cst_29 : f32 to vector<2x24x24xf32>
    %79 = arith.mulf %77, %78 : vector<2x24x24xf32>
    %80 = vector.shape_cast %14 : vector<1x24xf32> to vector<1x1x24xf32>
    %81 = vector.broadcast %80 : vector<1x1x24xf32> to vector<2x24x24xf32>
    %82 = arith.addf %79, %81 : vector<2x24x24xf32>
    %cst_30 = arith.constant dense<0xFF800000> : vector<2x24xf32>
    %83 = vector.multi_reduction <maximumf>, %82, %cst_30 [2] : vector<2x24x24xf32> to vector<2x24xf32>
    %84 = vector.shape_cast %83 : vector<2x24xf32> to vector<2x24x1xf32>
    %85 = vector.broadcast %84 : vector<2x24x1xf32> to vector<2x24x24xf32>
    %86 = arith.subf %82, %85 : vector<2x24x24xf32>
    %87 = math.exp %86 : vector<2x24x24xf32>
    %cst_31 = arith.constant dense<0.000000e+00> : vector<2x24xf32>
    %88 = vector.multi_reduction <add>, %87, %cst_31 [2] : vector<2x24x24xf32> to vector<2x24xf32>
    %89 = vector.shape_cast %88 : vector<2x24xf32> to vector<2x24x1xf32>
    %90 = tpu.reciprocal %89 {approx = true} : vector<2x24x1xf32> -> vector<2x24x1xf32>
    %91 = vector.broadcast %90 : vector<2x24x1xf32> to vector<2x24x24xf32>
    %92 = arith.mulf %87, %91 : vector<2x24x24xf32>
    "tpu.trace_start"() <{level = 10 : i32, message = "bqk,bkd->bqd"}> : () -> ()
    %cst_32 = arith.constant dense<0.000000e+00> : vector<2x24x8xf32>
    %93 = tpu.matmul %92, %76, %cst_32 {dimension_numbers = #tpu.dot_dimension_numbers<[2], [1], [1], [2], [0, 0, 0, 1, 1, 2], [0], [0]>} : vector<2x24x24xf32>, vector<2x24x8xf32>, vector<2x24x8xf32> -> vector<2x24x8xf32>
    "tpu.trace_stop"() : () -> ()
    %94 = vector.extract_strided_slice %53 {offsets = [0, 0, 16], sizes = [2, 24, 8], strides = [1, 1, 1]} : vector<2x24x96xf32> to vector<2x24x8xf32>
    %95 = vector.extract_strided_slice %53 {offsets = [0, 0, 48], sizes = [2, 24, 8], strides = [1, 1, 1]} : vector<2x24x96xf32> to vector<2x24x8xf32>
    %96 = vector.extract_strided_slice %53 {offsets = [0, 0, 80], sizes = [2, 24, 8], strides = [1, 1, 1]} : vector<2x24x96xf32> to vector<2x24x8xf32>
    "tpu.trace_start"() <{level = 10 : i32, message = "bqd,bkd->bqk"}> : () -> ()
    %cst_33 = arith.constant dense<0.000000e+00> : vector<2x24x24xf32>
    %97 = tpu.matmul %94, %95, %cst_33 {dimension_numbers = #tpu.dot_dimension_numbers<[2], [2], [1], [1], [0, 0, 0, 1, 1, 1], [0], [0]>} : vector<2x24x8xf32>, vector<2x24x8xf32>, vector<2x24x24xf32> -> vector<2x24x24xf32>
    "tpu.trace_stop"() : () -> ()
    %cst_34 = arith.constant 0.353553385 : f32
    %98 = vector.broadcast %cst_34 : f32 to vector<2x24x24xf32>
    %99 = arith.mulf %97, %98 : vector<2x24x24xf32>
    %100 = vector.shape_cast %14 : vector<1x24xf32> to vector<1x1x24xf32>
    %101 = vector.broadcast %100 : vector<1x1x24xf32> to vector<2x24x24xf32>
    %102 = arith.addf %99, %101 : vector<2x24x24xf32>
    %cst_35 = arith.constant dense<0xFF800000> : vector<2x24xf32>
    %103 = vector.multi_reduction <maximumf>, %102, %cst_35 [2] : vector<2x24x24xf32> to vector<2x24xf32>
    %104 = vector.shape_cast %103 : vector<2x24xf32> to vector<2x24x1xf32>
    %105 = vector.broadcast %104 : vector<2x24x1xf32> to vector<2x24x24xf32>
    %106 = arith.subf %102, %105 : vector<2x24x24xf32>
    %107 = math.exp %106 : vector<2x24x24xf32>
    %cst_36 = arith.constant dense<0.000000e+00> : vector<2x24xf32>
    %108 = vector.multi_reduction <add>, %107, %cst_36 [2] : vector<2x24x24xf32> to vector<2x24xf32>
    %109 = vector.shape_cast %108 : vector<2x24xf32> to vector<2x24x1xf32>
    %110 = tpu.reciprocal %109 {approx = true} : vector<2x24x1xf32> -> vector<2x24x1xf32>
    %111 = vector.broadcast %110 : vector<2x24x1xf32> to vector<2x24x24xf32>
    %112 = arith.mulf %107, %111 : vector<2x24x24xf32>
    "tpu.trace_start"() <{level = 10 : i32, message = "bqk,bkd->bqd"}> : () -> ()
    %cst_37 = arith.constant dense<0.000000e+00> : vector<2x24x8xf32>
    %113 = tpu.matmul %112, %96, %cst_37 {dimension_numbers = #tpu.dot_dimension_numbers<[2], [1], [1], [2], [0, 0, 0, 1, 1, 2], [0], [0]>} : vector<2x24x24xf32>, vector<2x24x8xf32>, vector<2x24x8xf32> -> vector<2x24x8xf32>
    "tpu.trace_stop"() : () -> ()
    %114 = vector.extract_strided_slice %53 {offsets = [0, 0, 24], sizes = [2, 24, 8], strides = [1, 1, 1]} : vector<2x24x96xf32> to vector<2x24x8xf32>
    %115 = vector.extract_strided_slice %53 {offsets = [0, 0, 56], sizes = [2, 24, 8], strides = [1, 1, 1]} : vector<2x24x96xf32> to vector<2x24x8xf32>
    %116 = vector.extract_strided_slice %53 {offsets = [0, 0, 88], sizes = [2, 24, 8], strides = [1, 1, 1]} : vector<2x24x96xf32> to vector<2x24x8xf32>
    "tpu.trace_start"() <{level = 10 : i32, message = "bqd,bkd->bqk"}> : () -> ()
    %cst_38 = arith.constant dense<0.000000e+00> : vector<2x24x24xf32>
    %117 = tpu.matmul %114, %115, %cst_38 {dimension_numbers = #tpu.dot_dimension_numbers<[2], [2], [1], [1], [0, 0, 0, 1, 1, 1], [0], [0]>} : vector<2x24x8xf32>, vector<2x24x8xf32>, vector<2x24x24xf32> -> vector<2x24x24xf32>
    "tpu.trace_stop"() : () -> ()
    %cst_39 = arith.constant 0.353553385 : f32
    %118 = vector.broadcast %cst_39 : f32 to vector<2x24x24xf32>
    %119 = arith.mulf %117, %118 : vector<2x24x24xf32>
    %120 = vector.shape_cast %14 : vector<1x24xf32> to vector<1x1x24xf32>
    %121 = vector.broadcast %120 : vector<1x1x24xf32> to vector<2x24x24xf32>
    %122 = arith.addf %119, %121 : vector<2x24x24xf32>
    %cst_40 = arith.constant dense<0xFF800000> : vector<2x24xf32>
    %123 = vector.multi_reduction <maximumf>, %122, %cst_40 [2] : vector<2x24x24xf32> to vector<2x24xf32>
    %124 = vector.shape_cast %123 : vector<2x24xf32> to vector<2x24x1xf32>
    %125 = vector.broadcast %124 : vector<2x24x1xf32> to vector<2x24x24xf32>
    %126 = arith.subf %122, %125 : vector<2x24x24xf32>
    %127 = math.exp %126 : vector<2x24x24xf32>
    %cst_41 = arith.constant dense<0.000000e+00> : vector<2x24xf32>
    %128 = vector.multi_reduction <add>, %127, %cst_41 [2] : vector<2x24x24xf32> to vector<2x24xf32>
    %129 = vector.shape_cast %128 : vector<2x24xf32> to vector<2x24x1xf32>
    %130 = tpu.reciprocal %129 {approx = true} : vector<2x24x1xf32> -> vector<2x24x1xf32>
    %131 = vector.broadcast %130 : vector<2x24x1xf32> to vector<2x24x24xf32>
    %132 = arith.mulf %127, %131 : vector<2x24x24xf32>
    "tpu.trace_start"() <{level = 10 : i32, message = "bqk,bkd->bqd"}> : () -> ()
    %cst_42 = arith.constant dense<0.000000e+00> : vector<2x24x8xf32>
    %133 = tpu.matmul %132, %116, %cst_42 {dimension_numbers = #tpu.dot_dimension_numbers<[2], [1], [1], [2], [0, 0, 0, 1, 1, 2], [0], [0]>} : vector<2x24x24xf32>, vector<2x24x8xf32>, vector<2x24x8xf32> -> vector<2x24x8xf32>
    "tpu.trace_stop"() : () -> ()
    %134 = tpu.concatenate %73, %93, %113, %133 in 2 : vector<2x24x8xf32>, vector<2x24x8xf32>, vector<2x24x8xf32>, vector<2x24x8xf32> -> vector<2x24x32xf32>
    %135 = arith.truncf %134 : vector<2x24x32xf32> to vector<2x24x32xbf16>
    %136 = vector.shape_cast %135 : vector<2x24x32xbf16> to vector<48x32xbf16>
    %c0_43 = arith.constant 0 : index
    %c0_44 = arith.constant 0 : index
    %c0_45 = arith.constant 0 : index
    %137 = vector.load %arg7[%c0_43, %c0_44, %c0_45] : memref<2x32x32xbf16, #tpu.memory_space<vmem>>, vector<1x32x32xbf16>
    %138 = vector.shape_cast %137 : vector<1x32x32xbf16> to vector<32x32xbf16>
    %cst_46 = arith.constant dense<0.000000e+00> : vector<48x32xf32>
    %139 = tpu.matmul %136, %138, %cst_46 {dimension_numbers = #tpu.dot_dimension_numbers<[1], [0], [0], [1], [0, 0, 1, 1], [], []>} : vector<48x32xbf16>, vector<32x32xbf16>, vector<48x32xf32> -> vector<48x32xf32>
    %140 = vector.shape_cast %139 : vector<48x32xf32> to vector<2x24x32xf32>
    %141 = arith.addf %8, %140 : vector<2x24x32xf32>
    %c0_47 = arith.constant 0 : index
    %c0_48 = arith.constant 0 : index
    %c0_49 = arith.constant 0 : index
    %142 = vector.load %arg8[%c0_47, %c0_48, %c0_49] : memref<2x1x32xf32, #tpu.memory_space<vmem>>, vector<1x1x32xf32>
    %143 = vector.shape_cast %142 : vector<1x1x32xf32> to vector<1x32xf32>
    %144 = vector.shape_cast %143 : vector<1x32xf32> to vector<1x1x32xf32>
    %145 = vector.broadcast %144 : vector<1x1x32xf32> to vector<2x24x32xf32>
    %146 = arith.addf %141, %145 : vector<2x24x32xf32>
    %cst_50 = arith.constant dense<0.000000e+00> : vector<2x24xf32>
    %147 = vector.multi_reduction <add>, %146, %cst_50 [2] : vector<2x24x32xf32> to vector<2x24xf32>
    %148 = vector.shape_cast %147 : vector<2x24xf32> to vector<2x24x1xf32>
    %cst_51 = arith.constant 3.200000e+01 : f32
    %149 = vector.broadcast %cst_51 : f32 to vector<2x24x1xf32>
    %150 = arith.divf %148, %149 : vector<2x24x1xf32>
    %151 = vector.broadcast %150 : vector<2x24x1xf32> to vector<2x24x32xf32>
    %152 = arith.subf %146, %151 : vector<2x24x32xf32>
    %153 = arith.mulf %152, %152 : vector<2x24x32xf32>
    %cst_52 = arith.constant dense<0.000000e+00> : vector<2x24xf32>
    %154 = vector.multi_reduction <add>, %153, %cst_52 [2] : vector<2x24x32xf32> to vector<2x24xf32>
    %155 = vector.shape_cast %154 : vector<2x24xf32> to vector<2x24x1xf32>
    %cst_53 = arith.constant 3.200000e+01 : f32
    %156 = vector.broadcast %cst_53 : f32 to vector<2x24x1xf32>
    %157 = arith.divf %155, %156 : vector<2x24x1xf32>
    %cst_54 = arith.constant 9.99999974E-6 : f32
    %158 = vector.broadcast %cst_54 : f32 to vector<2x24x1xf32>
    %159 = arith.addf %157, %158 : vector<2x24x1xf32>
    %160 = math.rsqrt %159 : vector<2x24x1xf32>
    %161 = vector.broadcast %160 : vector<2x24x1xf32> to vector<2x24x32xf32>
    %162 = arith.mulf %152, %161 : vector<2x24x32xf32>
    %163 = vector.shape_cast %19 : vector<1x32xf32> to vector<1x1x32xf32>
    %164 = vector.broadcast %163 : vector<1x1x32xf32> to vector<2x24x32xf32>
    %165 = arith.mulf %162, %164 : vector<2x24x32xf32>
    %166 = vector.shape_cast %20 : vector<1x32xf32> to vector<1x1x32xf32>
    %167 = vector.broadcast %166 : vector<1x1x32xf32> to vector<2x24x32xf32>
    %168 = arith.addf %165, %167 : vector<2x24x32xf32>
    %169 = arith.truncf %168 : vector<2x24x32xf32> to vector<2x24x32xbf16>
    %170 = vector.shape_cast %169 : vector<2x24x32xbf16> to vector<48x32xbf16>
    %c0_55 = arith.constant 0 : index
    %c0_56 = arith.constant 0 : index
    %c0_57 = arith.constant 0 : index
    %171 = vector.load %arg9[%c0_55, %c0_56, %c0_57] : memref<2x32x128xbf16, #tpu.memory_space<vmem>>, vector<1x32x128xbf16>
    %172 = vector.shape_cast %171 : vector<1x32x128xbf16> to vector<32x128xbf16>
    %cst_58 = arith.constant dense<0.000000e+00> : vector<48x128xf32>
    %173 = tpu.matmul %170, %172, %cst_58 {dimension_numbers = #tpu.dot_dimension_numbers<[1], [0], [0], [1], [0, 0, 1, 1], [], []>} : vector<48x32xbf16>, vector<32x128xbf16>, vector<48x128xf32> -> vector<48x128xf32>
    %174 = vector.shape_cast %173 : vector<48x128xf32> to vector<2x24x128xf32>
    %c0_59 = arith.constant 0 : index
    %c0_60 = arith.constant 0 : index
    %c0_61 = arith.constant 0 : index
    %175 = vector.load %arg10[%c0_59, %c0_60, %c0_61] : memref<2x1x128xf32, #tpu.memory_space<vmem>>, vector<1x1x128xf32>
    %176 = vector.shape_cast %175 : vector<1x1x128xf32> to vector<1x128xf32>
    %177 = vector.shape_cast %176 : vector<1x128xf32> to vector<1x1x128xf32>
    %178 = vector.broadcast %177 : vector<1x1x128xf32> to vector<2x24x128xf32>
    %179 = arith.addf %174, %178 : vector<2x24x128xf32>
    %cst_62 = arith.constant 5.000000e-01 : f32
    %180 = vector.broadcast %cst_62 : f32 to vector<2x24x128xf32>
    %181 = arith.mulf %180, %179 : vector<2x24x128xf32>
    %cst_63 = arith.constant 4.471500e-02 : f32
    %182 = vector.broadcast %cst_63 : f32 to vector<2x24x128xf32>
    %183 = arith.mulf %182, %179 : vector<2x24x128xf32>
    %184 = arith.mulf %183, %179 : vector<2x24x128xf32>
    %185 = arith.mulf %184, %179 : vector<2x24x128xf32>
    %186 = arith.addf %179, %185 : vector<2x24x128xf32>
    %cst_64 = arith.constant 0.797884583 : f32
    %187 = vector.broadcast %cst_64 : f32 to vector<2x24x128xf32>
    %188 = arith.mulf %187, %186 : vector<2x24x128xf32>
    %189 = math.tanh %188 : vector<2x24x128xf32>
    %cst_65 = arith.constant 1.000000e+00 : f32
    %190 = vector.broadcast %cst_65 : f32 to vector<2x24x128xf32>
    %191 = arith.addf %190, %189 : vector<2x24x128xf32>
    %192 = arith.mulf %181, %191 : vector<2x24x128xf32>
    %193 = arith.truncf %192 : vector<2x24x128xf32> to vector<2x24x128xbf16>
    %194 = vector.shape_cast %193 : vector<2x24x128xbf16> to vector<48x128xbf16>
    %c0_66 = arith.constant 0 : index
    %c0_67 = arith.constant 0 : index
    %c0_68 = arith.constant 0 : index
    %195 = vector.load %arg11[%c0_66, %c0_67, %c0_68] : memref<2x128x32xbf16, #tpu.memory_space<vmem>>, vector<1x128x32xbf16>
    %196 = vector.shape_cast %195 : vector<1x128x32xbf16> to vector<128x32xbf16>
    %cst_69 = arith.constant dense<0.000000e+00> : vector<48x32xf32>
    %197 = tpu.matmul %194, %196, %cst_69 {dimension_numbers = #tpu.dot_dimension_numbers<[1], [0], [0], [1], [0, 0, 1, 1], [], []>} : vector<48x128xbf16>, vector<128x32xbf16>, vector<48x32xf32> -> vector<48x32xf32>
    %198 = vector.shape_cast %197 : vector<48x32xf32> to vector<2x24x32xf32>
    %199 = arith.addf %146, %198 : vector<2x24x32xf32>
    %c0_70 = arith.constant 0 : index
    %c0_71 = arith.constant 0 : index
    %c0_72 = arith.constant 0 : index
    %200 = vector.load %arg12[%c0_70, %c0_71, %c0_72] : memref<2x1x32xf32, #tpu.memory_space<vmem>>, vector<1x1x32xf32>
    %201 = vector.shape_cast %200 : vector<1x1x32xf32> to vector<1x32xf32>
    %202 = vector.shape_cast %201 : vector<1x32xf32> to vector<1x1x32xf32>
    %203 = vector.broadcast %202 : vector<1x1x32xf32> to vector<2x24x32xf32>
    %204 = arith.addf %199, %203 : vector<2x24x32xf32>
    %c1 = arith.constant 1 : index
    %c0_73 = arith.constant 0 : index
    %c0_74 = arith.constant 0 : index
    %205 = vector.load %arg4[%c1, %c0_73, %c0_74] : memref<2x4x32xf32, #tpu.memory_space<vmem>>, vector<1x4x32xf32>
    %206 = vector.shape_cast %205 : vector<1x4x32xf32> to vector<4x32xf32>
    %207 = vector.extract_strided_slice %206 {offsets = [0, 0], sizes = [1, 32], strides = [1, 1]} : vector<4x32xf32> to vector<1x32xf32>
    %208 = vector.extract_strided_slice %206 {offsets = [1, 0], sizes = [1, 32], strides = [1, 1]} : vector<4x32xf32> to vector<1x32xf32>
    %209 = vector.extract_strided_slice %206 {offsets = [2, 0], sizes = [1, 32], strides = [1, 1]} : vector<4x32xf32> to vector<1x32xf32>
    %210 = vector.extract_strided_slice %206 {offsets = [3, 0], sizes = [1, 32], strides = [1, 1]} : vector<4x32xf32> to vector<1x32xf32>
    %cst_75 = arith.constant dense<0.000000e+00> : vector<2x24xf32>
    %211 = vector.multi_reduction <add>, %204, %cst_75 [2] : vector<2x24x32xf32> to vector<2x24xf32>
    %212 = vector.shape_cast %211 : vector<2x24xf32> to vector<2x24x1xf32>
    %cst_76 = arith.constant 3.200000e+01 : f32
    %213 = vector.broadcast %cst_76 : f32 to vector<2x24x1xf32>
    %214 = arith.divf %212, %213 : vector<2x24x1xf32>
    %215 = vector.broadcast %214 : vector<2x24x1xf32> to vector<2x24x32xf32>
    %216 = arith.subf %204, %215 : vector<2x24x32xf32>
    %217 = arith.mulf %216, %216 : vector<2x24x32xf32>
    %cst_77 = arith.constant dense<0.000000e+00> : vector<2x24xf32>
    %218 = vector.multi_reduction <add>, %217, %cst_77 [2] : vector<2x24x32xf32> to vector<2x24xf32>
    %219 = vector.shape_cast %218 : vector<2x24xf32> to vector<2x24x1xf32>
    %cst_78 = arith.constant 3.200000e+01 : f32
    %220 = vector.broadcast %cst_78 : f32 to vector<2x24x1xf32>
    %221 = arith.divf %219, %220 : vector<2x24x1xf32>
    %cst_79 = arith.constant 9.99999974E-6 : f32
    %222 = vector.broadcast %cst_79 : f32 to vector<2x24x1xf32>
    %223 = arith.addf %221, %222 : vector<2x24x1xf32>
    %224 = math.rsqrt %223 : vector<2x24x1xf32>
    %225 = vector.broadcast %224 : vector<2x24x1xf32> to vector<2x24x32xf32>
    %226 = arith.mulf %216, %225 : vector<2x24x32xf32>
    %227 = vector.shape_cast %207 : vector<1x32xf32> to vector<1x1x32xf32>
    %228 = vector.broadcast %227 : vector<1x1x32xf32> to vector<2x24x32xf32>
    %229 = arith.mulf %226, %228 : vector<2x24x32xf32>
    %230 = vector.shape_cast %208 : vector<1x32xf32> to vector<1x1x32xf32>
    %231 = vector.broadcast %230 : vector<1x1x32xf32> to vector<2x24x32xf32>
    %232 = arith.addf %229, %231 : vector<2x24x32xf32>
    %233 = arith.truncf %232 : vector<2x24x32xf32> to vector<2x24x32xbf16>
    %234 = vector.shape_cast %233 : vector<2x24x32xbf16> to vector<48x32xbf16>
    %c1_80 = arith.constant 1 : index
    %c0_81 = arith.constant 0 : index
    %c0_82 = arith.constant 0 : index
    %235 = vector.load %arg5[%c1_80, %c0_81, %c0_82] : memref<2x32x96xbf16, #tpu.memory_space<vmem>>, vector<1x32x96xbf16>
    %236 = vector.shape_cast %235 : vector<1x32x96xbf16> to vector<32x96xbf16>
    %cst_83 = arith.constant dense<0.000000e+00> : vector<48x96xf32>
    %237 = tpu.matmul %234, %236, %cst_83 {dimension_numbers = #tpu.dot_dimension_numbers<[1], [0], [0], [1], [0, 0, 1, 1], [], []>} : vector<48x32xbf16>, vector<32x96xbf16>, vector<48x96xf32> -> vector<48x96xf32>
    %238 = vector.shape_cast %237 : vector<48x96xf32> to vector<2x24x96xf32>
    %c1_84 = arith.constant 1 : index
    %c0_85 = arith.constant 0 : index
    %c0_86 = arith.constant 0 : index
    %239 = vector.load %arg6[%c1_84, %c0_85, %c0_86] : memref<2x1x96xf32, #tpu.memory_space<vmem>>, vector<1x1x96xf32>
    %240 = vector.shape_cast %239 : vector<1x1x96xf32> to vector<1x96xf32>
    %241 = vector.shape_cast %240 : vector<1x96xf32> to vector<1x1x96xf32>
    %242 = vector.broadcast %241 : vector<1x1x96xf32> to vector<2x24x96xf32>
    %243 = arith.addf %238, %242 : vector<2x24x96xf32>
    %244 = vector.extract_strided_slice %243 {offsets = [0, 0, 0], sizes = [2, 24, 8], strides = [1, 1, 1]} : vector<2x24x96xf32> to vector<2x24x8xf32>
    %245 = vector.extract_strided_slice %243 {offsets = [0, 0, 32], sizes = [2, 24, 8], strides = [1, 1, 1]} : vector<2x24x96xf32> to vector<2x24x8xf32>
    %246 = vector.extract_strided_slice %243 {offsets = [0, 0, 64], sizes = [2, 24, 8], strides = [1, 1, 1]} : vector<2x24x96xf32> to vector<2x24x8xf32>
    "tpu.trace_start"() <{level = 10 : i32, message = "bqd,bkd->bqk"}> : () -> ()
    %cst_87 = arith.constant dense<0.000000e+00> : vector<2x24x24xf32>
    %247 = tpu.matmul %244, %245, %cst_87 {dimension_numbers = #tpu.dot_dimension_numbers<[2], [2], [1], [1], [0, 0, 0, 1, 1, 1], [0], [0]>} : vector<2x24x8xf32>, vector<2x24x8xf32>, vector<2x24x24xf32> -> vector<2x24x24xf32>
    "tpu.trace_stop"() : () -> ()
    %cst_88 = arith.constant 0.353553385 : f32
    %248 = vector.broadcast %cst_88 : f32 to vector<2x24x24xf32>
    %249 = arith.mulf %247, %248 : vector<2x24x24xf32>
    %250 = vector.shape_cast %14 : vector<1x24xf32> to vector<1x1x24xf32>
    %251 = vector.broadcast %250 : vector<1x1x24xf32> to vector<2x24x24xf32>
    %252 = arith.addf %249, %251 : vector<2x24x24xf32>
    %cst_89 = arith.constant dense<0xFF800000> : vector<2x24xf32>
    %253 = vector.multi_reduction <maximumf>, %252, %cst_89 [2] : vector<2x24x24xf32> to vector<2x24xf32>
    %254 = vector.shape_cast %253 : vector<2x24xf32> to vector<2x24x1xf32>
    %255 = vector.broadcast %254 : vector<2x24x1xf32> to vector<2x24x24xf32>
    %256 = arith.subf %252, %255 : vector<2x24x24xf32>
    %257 = math.exp %256 : vector<2x24x24xf32>
    %cst_90 = arith.constant dense<0.000000e+00> : vector<2x24xf32>
    %258 = vector.multi_reduction <add>, %257, %cst_90 [2] : vector<2x24x24xf32> to vector<2x24xf32>
    %259 = vector.shape_cast %258 : vector<2x24xf32> to vector<2x24x1xf32>
    %260 = tpu.reciprocal %259 {approx = true} : vector<2x24x1xf32> -> vector<2x24x1xf32>
    %261 = vector.broadcast %260 : vector<2x24x1xf32> to vector<2x24x24xf32>
    %262 = arith.mulf %257, %261 : vector<2x24x24xf32>
    "tpu.trace_start"() <{level = 10 : i32, message = "bqk,bkd->bqd"}> : () -> ()
    %cst_91 = arith.constant dense<0.000000e+00> : vector<2x24x8xf32>
    %263 = tpu.matmul %262, %246, %cst_91 {dimension_numbers = #tpu.dot_dimension_numbers<[2], [1], [1], [2], [0, 0, 0, 1, 1, 2], [0], [0]>} : vector<2x24x24xf32>, vector<2x24x8xf32>, vector<2x24x8xf32> -> vector<2x24x8xf32>
    "tpu.trace_stop"() : () -> ()
    %264 = vector.extract_strided_slice %243 {offsets = [0, 0, 8], sizes = [2, 24, 8], strides = [1, 1, 1]} : vector<2x24x96xf32> to vector<2x24x8xf32>
    %265 = vector.extract_strided_slice %243 {offsets = [0, 0, 40], sizes = [2, 24, 8], strides = [1, 1, 1]} : vector<2x24x96xf32> to vector<2x24x8xf32>
    %266 = vector.extract_strided_slice %243 {offsets = [0, 0, 72], sizes = [2, 24, 8], strides = [1, 1, 1]} : vector<2x24x96xf32> to vector<2x24x8xf32>
    "tpu.trace_start"() <{level = 10 : i32, message = "bqd,bkd->bqk"}> : () -> ()
    %cst_92 = arith.constant dense<0.000000e+00> : vector<2x24x24xf32>
    %267 = tpu.matmul %264, %265, %cst_92 {dimension_numbers = #tpu.dot_dimension_numbers<[2], [2], [1], [1], [0, 0, 0, 1, 1, 1], [0], [0]>} : vector<2x24x8xf32>, vector<2x24x8xf32>, vector<2x24x24xf32> -> vector<2x24x24xf32>
    "tpu.trace_stop"() : () -> ()
    %cst_93 = arith.constant 0.353553385 : f32
    %268 = vector.broadcast %cst_93 : f32 to vector<2x24x24xf32>
    %269 = arith.mulf %267, %268 : vector<2x24x24xf32>
    %270 = vector.shape_cast %14 : vector<1x24xf32> to vector<1x1x24xf32>
    %271 = vector.broadcast %270 : vector<1x1x24xf32> to vector<2x24x24xf32>
    %272 = arith.addf %269, %271 : vector<2x24x24xf32>
    %cst_94 = arith.constant dense<0xFF800000> : vector<2x24xf32>
    %273 = vector.multi_reduction <maximumf>, %272, %cst_94 [2] : vector<2x24x24xf32> to vector<2x24xf32>
    %274 = vector.shape_cast %273 : vector<2x24xf32> to vector<2x24x1xf32>
    %275 = vector.broadcast %274 : vector<2x24x1xf32> to vector<2x24x24xf32>
    %276 = arith.subf %272, %275 : vector<2x24x24xf32>
    %277 = math.exp %276 : vector<2x24x24xf32>
    %cst_95 = arith.constant dense<0.000000e+00> : vector<2x24xf32>
    %278 = vector.multi_reduction <add>, %277, %cst_95 [2] : vector<2x24x24xf32> to vector<2x24xf32>
    %279 = vector.shape_cast %278 : vector<2x24xf32> to vector<2x24x1xf32>
    %280 = tpu.reciprocal %279 {approx = true} : vector<2x24x1xf32> -> vector<2x24x1xf32>
    %281 = vector.broadcast %280 : vector<2x24x1xf32> to vector<2x24x24xf32>
    %282 = arith.mulf %277, %281 : vector<2x24x24xf32>
    "tpu.trace_start"() <{level = 10 : i32, message = "bqk,bkd->bqd"}> : () -> ()
    %cst_96 = arith.constant dense<0.000000e+00> : vector<2x24x8xf32>
    %283 = tpu.matmul %282, %266, %cst_96 {dimension_numbers = #tpu.dot_dimension_numbers<[2], [1], [1], [2], [0, 0, 0, 1, 1, 2], [0], [0]>} : vector<2x24x24xf32>, vector<2x24x8xf32>, vector<2x24x8xf32> -> vector<2x24x8xf32>
    "tpu.trace_stop"() : () -> ()
    %284 = vector.extract_strided_slice %243 {offsets = [0, 0, 16], sizes = [2, 24, 8], strides = [1, 1, 1]} : vector<2x24x96xf32> to vector<2x24x8xf32>
    %285 = vector.extract_strided_slice %243 {offsets = [0, 0, 48], sizes = [2, 24, 8], strides = [1, 1, 1]} : vector<2x24x96xf32> to vector<2x24x8xf32>
    %286 = vector.extract_strided_slice %243 {offsets = [0, 0, 80], sizes = [2, 24, 8], strides = [1, 1, 1]} : vector<2x24x96xf32> to vector<2x24x8xf32>
    "tpu.trace_start"() <{level = 10 : i32, message = "bqd,bkd->bqk"}> : () -> ()
    %cst_97 = arith.constant dense<0.000000e+00> : vector<2x24x24xf32>
    %287 = tpu.matmul %284, %285, %cst_97 {dimension_numbers = #tpu.dot_dimension_numbers<[2], [2], [1], [1], [0, 0, 0, 1, 1, 1], [0], [0]>} : vector<2x24x8xf32>, vector<2x24x8xf32>, vector<2x24x24xf32> -> vector<2x24x24xf32>
    "tpu.trace_stop"() : () -> ()
    %cst_98 = arith.constant 0.353553385 : f32
    %288 = vector.broadcast %cst_98 : f32 to vector<2x24x24xf32>
    %289 = arith.mulf %287, %288 : vector<2x24x24xf32>
    %290 = vector.shape_cast %14 : vector<1x24xf32> to vector<1x1x24xf32>
    %291 = vector.broadcast %290 : vector<1x1x24xf32> to vector<2x24x24xf32>
    %292 = arith.addf %289, %291 : vector<2x24x24xf32>
    %cst_99 = arith.constant dense<0xFF800000> : vector<2x24xf32>
    %293 = vector.multi_reduction <maximumf>, %292, %cst_99 [2] : vector<2x24x24xf32> to vector<2x24xf32>
    %294 = vector.shape_cast %293 : vector<2x24xf32> to vector<2x24x1xf32>
    %295 = vector.broadcast %294 : vector<2x24x1xf32> to vector<2x24x24xf32>
    %296 = arith.subf %292, %295 : vector<2x24x24xf32>
    %297 = math.exp %296 : vector<2x24x24xf32>
    %cst_100 = arith.constant dense<0.000000e+00> : vector<2x24xf32>
    %298 = vector.multi_reduction <add>, %297, %cst_100 [2] : vector<2x24x24xf32> to vector<2x24xf32>
    %299 = vector.shape_cast %298 : vector<2x24xf32> to vector<2x24x1xf32>
    %300 = tpu.reciprocal %299 {approx = true} : vector<2x24x1xf32> -> vector<2x24x1xf32>
    %301 = vector.broadcast %300 : vector<2x24x1xf32> to vector<2x24x24xf32>
    %302 = arith.mulf %297, %301 : vector<2x24x24xf32>
    "tpu.trace_start"() <{level = 10 : i32, message = "bqk,bkd->bqd"}> : () -> ()
    %cst_101 = arith.constant dense<0.000000e+00> : vector<2x24x8xf32>
    %303 = tpu.matmul %302, %286, %cst_101 {dimension_numbers = #tpu.dot_dimension_numbers<[2], [1], [1], [2], [0, 0, 0, 1, 1, 2], [0], [0]>} : vector<2x24x24xf32>, vector<2x24x8xf32>, vector<2x24x8xf32> -> vector<2x24x8xf32>
    "tpu.trace_stop"() : () -> ()
    %304 = vector.extract_strided_slice %243 {offsets = [0, 0, 24], sizes = [2, 24, 8], strides = [1, 1, 1]} : vector<2x24x96xf32> to vector<2x24x8xf32>
    %305 = vector.extract_strided_slice %243 {offsets = [0, 0, 56], sizes = [2, 24, 8], strides = [1, 1, 1]} : vector<2x24x96xf32> to vector<2x24x8xf32>
    %306 = vector.extract_strided_slice %243 {offsets = [0, 0, 88], sizes = [2, 24, 8], strides = [1, 1, 1]} : vector<2x24x96xf32> to vector<2x24x8xf32>
    "tpu.trace_start"() <{level = 10 : i32, message = "bqd,bkd->bqk"}> : () -> ()
    %cst_102 = arith.constant dense<0.000000e+00> : vector<2x24x24xf32>
    %307 = tpu.matmul %304, %305, %cst_102 {dimension_numbers = #tpu.dot_dimension_numbers<[2], [2], [1], [1], [0, 0, 0, 1, 1, 1], [0], [0]>} : vector<2x24x8xf32>, vector<2x24x8xf32>, vector<2x24x24xf32> -> vector<2x24x24xf32>
    "tpu.trace_stop"() : () -> ()
    %cst_103 = arith.constant 0.353553385 : f32
    %308 = vector.broadcast %cst_103 : f32 to vector<2x24x24xf32>
    %309 = arith.mulf %307, %308 : vector<2x24x24xf32>
    %310 = vector.shape_cast %14 : vector<1x24xf32> to vector<1x1x24xf32>
    %311 = vector.broadcast %310 : vector<1x1x24xf32> to vector<2x24x24xf32>
    %312 = arith.addf %309, %311 : vector<2x24x24xf32>
    %cst_104 = arith.constant dense<0xFF800000> : vector<2x24xf32>
    %313 = vector.multi_reduction <maximumf>, %312, %cst_104 [2] : vector<2x24x24xf32> to vector<2x24xf32>
    %314 = vector.shape_cast %313 : vector<2x24xf32> to vector<2x24x1xf32>
    %315 = vector.broadcast %314 : vector<2x24x1xf32> to vector<2x24x24xf32>
    %316 = arith.subf %312, %315 : vector<2x24x24xf32>
    %317 = math.exp %316 : vector<2x24x24xf32>
    %cst_105 = arith.constant dense<0.000000e+00> : vector<2x24xf32>
    %318 = vector.multi_reduction <add>, %317, %cst_105 [2] : vector<2x24x24xf32> to vector<2x24xf32>
    %319 = vector.shape_cast %318 : vector<2x24xf32> to vector<2x24x1xf32>
    %320 = tpu.reciprocal %319 {approx = true} : vector<2x24x1xf32> -> vector<2x24x1xf32>
    %321 = vector.broadcast %320 : vector<2x24x1xf32> to vector<2x24x24xf32>
    %322 = arith.mulf %317, %321 : vector<2x24x24xf32>
    "tpu.trace_start"() <{level = 10 : i32, message = "bqk,bkd->bqd"}> : () -> ()
    %cst_106 = arith.constant dense<0.000000e+00> : vector<2x24x8xf32>
    %323 = tpu.matmul %322, %306, %cst_106 {dimension_numbers = #tpu.dot_dimension_numbers<[2], [1], [1], [2], [0, 0, 0, 1, 1, 2], [0], [0]>} : vector<2x24x24xf32>, vector<2x24x8xf32>, vector<2x24x8xf32> -> vector<2x24x8xf32>
    "tpu.trace_stop"() : () -> ()
    %324 = tpu.concatenate %263, %283, %303, %323 in 2 : vector<2x24x8xf32>, vector<2x24x8xf32>, vector<2x24x8xf32>, vector<2x24x8xf32> -> vector<2x24x32xf32>
    %325 = arith.truncf %324 : vector<2x24x32xf32> to vector<2x24x32xbf16>
    %326 = vector.shape_cast %325 : vector<2x24x32xbf16> to vector<48x32xbf16>
    %c1_107 = arith.constant 1 : index
    %c0_108 = arith.constant 0 : index
    %c0_109 = arith.constant 0 : index
    %327 = vector.load %arg7[%c1_107, %c0_108, %c0_109] : memref<2x32x32xbf16, #tpu.memory_space<vmem>>, vector<1x32x32xbf16>
    %328 = vector.shape_cast %327 : vector<1x32x32xbf16> to vector<32x32xbf16>
    %cst_110 = arith.constant dense<0.000000e+00> : vector<48x32xf32>
    %329 = tpu.matmul %326, %328, %cst_110 {dimension_numbers = #tpu.dot_dimension_numbers<[1], [0], [0], [1], [0, 0, 1, 1], [], []>} : vector<48x32xbf16>, vector<32x32xbf16>, vector<48x32xf32> -> vector<48x32xf32>
    %330 = vector.shape_cast %329 : vector<48x32xf32> to vector<2x24x32xf32>
    %331 = arith.addf %204, %330 : vector<2x24x32xf32>
    %c1_111 = arith.constant 1 : index
    %c0_112 = arith.constant 0 : index
    %c0_113 = arith.constant 0 : index
    %332 = vector.load %arg8[%c1_111, %c0_112, %c0_113] : memref<2x1x32xf32, #tpu.memory_space<vmem>>, vector<1x1x32xf32>
    %333 = vector.shape_cast %332 : vector<1x1x32xf32> to vector<1x32xf32>
    %334 = vector.shape_cast %333 : vector<1x32xf32> to vector<1x1x32xf32>
    %335 = vector.broadcast %334 : vector<1x1x32xf32> to vector<2x24x32xf32>
    %336 = arith.addf %331, %335 : vector<2x24x32xf32>
    %cst_114 = arith.constant dense<0.000000e+00> : vector<2x24xf32>
    %337 = vector.multi_reduction <add>, %336, %cst_114 [2] : vector<2x24x32xf32> to vector<2x24xf32>
    %338 = vector.shape_cast %337 : vector<2x24xf32> to vector<2x24x1xf32>
    %cst_115 = arith.constant 3.200000e+01 : f32
    %339 = vector.broadcast %cst_115 : f32 to vector<2x24x1xf32>
    %340 = arith.divf %338, %339 : vector<2x24x1xf32>
    %341 = vector.broadcast %340 : vector<2x24x1xf32> to vector<2x24x32xf32>
    %342 = arith.subf %336, %341 : vector<2x24x32xf32>
    %343 = arith.mulf %342, %342 : vector<2x24x32xf32>
    %cst_116 = arith.constant dense<0.000000e+00> : vector<2x24xf32>
    %344 = vector.multi_reduction <add>, %343, %cst_116 [2] : vector<2x24x32xf32> to vector<2x24xf32>
    %345 = vector.shape_cast %344 : vector<2x24xf32> to vector<2x24x1xf32>
    %cst_117 = arith.constant 3.200000e+01 : f32
    %346 = vector.broadcast %cst_117 : f32 to vector<2x24x1xf32>
    %347 = arith.divf %345, %346 : vector<2x24x1xf32>
    %cst_118 = arith.constant 9.99999974E-6 : f32
    %348 = vector.broadcast %cst_118 : f32 to vector<2x24x1xf32>
    %349 = arith.addf %347, %348 : vector<2x24x1xf32>
    %350 = math.rsqrt %349 : vector<2x24x1xf32>
    %351 = vector.broadcast %350 : vector<2x24x1xf32> to vector<2x24x32xf32>
    %352 = arith.mulf %342, %351 : vector<2x24x32xf32>
    %353 = vector.shape_cast %209 : vector<1x32xf32> to vector<1x1x32xf32>
    %354 = vector.broadcast %353 : vector<1x1x32xf32> to vector<2x24x32xf32>
    %355 = arith.mulf %352, %354 : vector<2x24x32xf32>
    %356 = vector.shape_cast %210 : vector<1x32xf32> to vector<1x1x32xf32>
    %357 = vector.broadcast %356 : vector<1x1x32xf32> to vector<2x24x32xf32>
    %358 = arith.addf %355, %357 : vector<2x24x32xf32>
    %359 = arith.truncf %358 : vector<2x24x32xf32> to vector<2x24x32xbf16>
    %360 = vector.shape_cast %359 : vector<2x24x32xbf16> to vector<48x32xbf16>
    %c1_119 = arith.constant 1 : index
    %c0_120 = arith.constant 0 : index
    %c0_121 = arith.constant 0 : index
    %361 = vector.load %arg9[%c1_119, %c0_120, %c0_121] : memref<2x32x128xbf16, #tpu.memory_space<vmem>>, vector<1x32x128xbf16>
    %362 = vector.shape_cast %361 : vector<1x32x128xbf16> to vector<32x128xbf16>
    %cst_122 = arith.constant dense<0.000000e+00> : vector<48x128xf32>
    %363 = tpu.matmul %360, %362, %cst_122 {dimension_numbers = #tpu.dot_dimension_numbers<[1], [0], [0], [1], [0, 0, 1, 1], [], []>} : vector<48x32xbf16>, vector<32x128xbf16>, vector<48x128xf32> -> vector<48x128xf32>
    %364 = vector.shape_cast %363 : vector<48x128xf32> to vector<2x24x128xf32>
    %c1_123 = arith.constant 1 : index
    %c0_124 = arith.constant 0 : index
    %c0_125 = arith.constant 0 : index
    %365 = vector.load %arg10[%c1_123, %c0_124, %c0_125] : memref<2x1x128xf32, #tpu.memory_space<vmem>>, vector<1x1x128xf32>
    %366 = vector.shape_cast %365 : vector<1x1x128xf32> to vector<1x128xf32>
    %367 = vector.shape_cast %366 : vector<1x128xf32> to vector<1x1x128xf32>
    %368 = vector.broadcast %367 : vector<1x1x128xf32> to vector<2x24x128xf32>
    %369 = arith.addf %364, %368 : vector<2x24x128xf32>
    %cst_126 = arith.constant 5.000000e-01 : f32
    %370 = vector.broadcast %cst_126 : f32 to vector<2x24x128xf32>
    %371 = arith.mulf %370, %369 : vector<2x24x128xf32>
    %cst_127 = arith.constant 4.471500e-02 : f32
    %372 = vector.broadcast %cst_127 : f32 to vector<2x24x128xf32>
    %373 = arith.mulf %372, %369 : vector<2x24x128xf32>
    %374 = arith.mulf %373, %369 : vector<2x24x128xf32>
    %375 = arith.mulf %374, %369 : vector<2x24x128xf32>
    %376 = arith.addf %369, %375 : vector<2x24x128xf32>
    %cst_128 = arith.constant 0.797884583 : f32
    %377 = vector.broadcast %cst_128 : f32 to vector<2x24x128xf32>
    %378 = arith.mulf %377, %376 : vector<2x24x128xf32>
    %379 = math.tanh %378 : vector<2x24x128xf32>
    %cst_129 = arith.constant 1.000000e+00 : f32
    %380 = vector.broadcast %cst_129 : f32 to vector<2x24x128xf32>
    %381 = arith.addf %380, %379 : vector<2x24x128xf32>
    %382 = arith.mulf %371, %381 : vector<2x24x128xf32>
    %383 = arith.truncf %382 : vector<2x24x128xf32> to vector<2x24x128xbf16>
    %384 = vector.shape_cast %383 : vector<2x24x128xbf16> to vector<48x128xbf16>
    %c1_130 = arith.constant 1 : index
    %c0_131 = arith.constant 0 : index
    %c0_132 = arith.constant 0 : index
    %385 = vector.load %arg11[%c1_130, %c0_131, %c0_132] : memref<2x128x32xbf16, #tpu.memory_space<vmem>>, vector<1x128x32xbf16>
    %386 = vector.shape_cast %385 : vector<1x128x32xbf16> to vector<128x32xbf16>
    %cst_133 = arith.constant dense<0.000000e+00> : vector<48x32xf32>
    %387 = tpu.matmul %384, %386, %cst_133 {dimension_numbers = #tpu.dot_dimension_numbers<[1], [0], [0], [1], [0, 0, 1, 1], [], []>} : vector<48x128xbf16>, vector<128x32xbf16>, vector<48x32xf32> -> vector<48x32xf32>
    %388 = vector.shape_cast %387 : vector<48x32xf32> to vector<2x24x32xf32>
    %389 = arith.addf %336, %388 : vector<2x24x32xf32>
    %c1_134 = arith.constant 1 : index
    %c0_135 = arith.constant 0 : index
    %c0_136 = arith.constant 0 : index
    %390 = vector.load %arg12[%c1_134, %c0_135, %c0_136] : memref<2x1x32xf32, #tpu.memory_space<vmem>>, vector<1x1x32xf32>
    %391 = vector.shape_cast %390 : vector<1x1x32xf32> to vector<1x32xf32>
    %392 = vector.shape_cast %391 : vector<1x32xf32> to vector<1x1x32xf32>
    %393 = vector.broadcast %392 : vector<1x1x32xf32> to vector<2x24x32xf32>
    %394 = arith.addf %389, %393 : vector<2x24x32xf32>
    %395 = vector.extract_strided_slice %394 {offsets = [0, 0, 0], sizes = [2, 1, 32], strides = [1, 1, 1]} : vector<2x24x32xf32> to vector<2x1x32xf32>
    %396 = vector.shape_cast %395 : vector<2x1x32xf32> to vector<2x32xf32>
    %397 = arith.truncf %396 : vector<2x32xf32> to vector<2x32xbf16>
    %c0_137 = arith.constant 0 : index
    %c0_138 = arith.constant 0 : index
    %398 = vector.load %arg13[%c0_137, %c0_138] : memref<32x128xbf16, #tpu.memory_space<vmem>>, vector<32x128xbf16>
    %cst_139 = arith.constant dense<0.000000e+00> : vector<2x128xf32>
    %399 = tpu.matmul %397, %398, %cst_139 {dimension_numbers = #tpu.dot_dimension_numbers<[1], [0], [0], [1], [0, 0, 1, 1], [], []>} : vector<2x32xbf16>, vector<32x128xbf16>, vector<2x128xf32> -> vector<2x128xf32>
    %c0_140 = arith.constant 0 : index
    %c0_141 = arith.constant 0 : index
    %400 = vector.load %arg14[%c0_140, %c0_141] : memref<1x128xf32, #tpu.memory_space<vmem>>, vector<1x128xf32>
    %401 = vector.broadcast %400 : vector<1x128xf32> to vector<2x128xf32>
    %402 = arith.addf %399, %401 : vector<2x128xf32>
    %c0_142 = arith.constant 0 : index
    %c0_143 = arith.constant 0 : index
    %403 = vector.load %arg15[%c0_142, %c0_143] : memref<2x128xf32, #tpu.memory_space<vmem>>, vector<2x128xf32>
    tpu.vector_store %arg15[%c0_142, %c0_143], %402 {strides = array<i32>} : memref<2x128xf32, #tpu.memory_space<vmem>>, vector<2x128xf32>,
    return
  }
  func.func @transform_0(%arg0: i32) -> (i32, i32, i32) {
    %c0_i32 = arith.constant 0 : i32
    %c0_i32_0 = arith.constant 0 : i32
    %c0_i32_1 = arith.constant 0 : i32
    return %arg0, %c0_i32, %c0_i32_0 : i32, i32, i32
  }
  func.func @transform_1(%arg0: i32) -> (i32, i32) {
    %c0_i32 = arith.constant 0 : i32
    %c0_i32_0 = arith.constant 0 : i32
    %c0_i32_1 = arith.constant 0 : i32
    return %c0_i32, %c0_i32_0 : i32, i32
  }
  func.func @transform_2(%arg0: i32) -> (i32, i32) {
    %c0_i32 = arith.constant 0 : i32
    %c0_i32_0 = arith.constant 0 : i32
    %c0_i32_1 = arith.constant 0 : i32
    return %c0_i32, %c0_i32_0 : i32, i32
  }
  func.func @transform_3(%arg0: i32) -> (i32, i32, i32) {
    %c0_i32 = arith.constant 0 : i32
    %c0_i32_0 = arith.constant 0 : i32
    %c0_i32_1 = arith.constant 0 : i32
    %c0_i32_2 = arith.constant 0 : i32
    return %c0_i32, %c0_i32_0, %c0_i32_1 : i32, i32, i32
  }
  func.func @transform_4(%arg0: i32) -> (i32, i32, i32) {
    %c0_i32 = arith.constant 0 : i32
    %c0_i32_0 = arith.constant 0 : i32
    %c0_i32_1 = arith.constant 0 : i32
    %c0_i32_2 = arith.constant 0 : i32
    return %c0_i32, %c0_i32_0, %c0_i32_1 : i32, i32, i32
  }
  func.func @transform_5(%arg0: i32) -> (i32, i32, i32) {
    %c0_i32 = arith.constant 0 : i32
    %c0_i32_0 = arith.constant 0 : i32
    %c0_i32_1 = arith.constant 0 : i32
    %c0_i32_2 = arith.constant 0 : i32
    return %c0_i32, %c0_i32_0, %c0_i32_1 : i32, i32, i32
  }
  func.func @transform_6(%arg0: i32) -> (i32, i32, i32) {
    %c0_i32 = arith.constant 0 : i32
    %c0_i32_0 = arith.constant 0 : i32
    %c0_i32_1 = arith.constant 0 : i32
    %c0_i32_2 = arith.constant 0 : i32
    return %c0_i32, %c0_i32_0, %c0_i32_1 : i32, i32, i32
  }
  func.func @transform_7(%arg0: i32) -> (i32, i32, i32) {
    %c0_i32 = arith.constant 0 : i32
    %c0_i32_0 = arith.constant 0 : i32
    %c0_i32_1 = arith.constant 0 : i32
    %c0_i32_2 = arith.constant 0 : i32
    return %c0_i32, %c0_i32_0, %c0_i32_1 : i32, i32, i32
  }
  func.func @transform_8(%arg0: i32) -> (i32, i32, i32) {
    %c0_i32 = arith.constant 0 : i32
    %c0_i32_0 = arith.constant 0 : i32
    %c0_i32_1 = arith.constant 0 : i32
    %c0_i32_2 = arith.constant 0 : i32
    return %c0_i32, %c0_i32_0, %c0_i32_1 : i32, i32, i32
  }
  func.func @transform_9(%arg0: i32) -> (i32, i32, i32) {
    %c0_i32 = arith.constant 0 : i32
    %c0_i32_0 = arith.constant 0 : i32
    %c0_i32_1 = arith.constant 0 : i32
    %c0_i32_2 = arith.constant 0 : i32
    return %c0_i32, %c0_i32_0, %c0_i32_1 : i32, i32, i32
  }
  func.func @transform_10(%arg0: i32) -> (i32, i32, i32) {
    %c0_i32 = arith.constant 0 : i32
    %c0_i32_0 = arith.constant 0 : i32
    %c0_i32_1 = arith.constant 0 : i32
    %c0_i32_2 = arith.constant 0 : i32
    return %c0_i32, %c0_i32_0, %c0_i32_1 : i32, i32, i32
  }
  func.func @transform_11(%arg0: i32) -> (i32, i32, i32) {
    %c0_i32 = arith.constant 0 : i32
    %c0_i32_0 = arith.constant 0 : i32
    %c0_i32_1 = arith.constant 0 : i32
    %c0_i32_2 = arith.constant 0 : i32
    return %c0_i32, %c0_i32_0, %c0_i32_1 : i32, i32, i32
  }
  func.func @transform_12(%arg0: i32) -> (i32, i32) {
    %c0_i32 = arith.constant 0 : i32
    %c0_i32_0 = arith.constant 0 : i32
    %c0_i32_1 = arith.constant 0 : i32
    return %c0_i32, %c0_i32_0 : i32, i32
  }
  func.func @transform_13(%arg0: i32) -> (i32, i32) {
    %c0_i32 = arith.constant 0 : i32
    %c0_i32_0 = arith.constant 0 : i32
    %c0_i32_1 = arith.constant 0 : i32
    return %c0_i32, %c0_i32_0 : i32, i32
  }
  func.func @transform_14(%arg0: i32) -> (i32, i32) {
    %c0_i32 = arith.constant 0 : i32
    %c0_i32_0 = arith.constant 0 : i32
    return %arg0, %c0_i32 : i32, i32
  }
}

</mosaic_0001>

<bundles_post_ra>
// kernel: tpu_custom_call.1
= control target key start
LH: loop header
LB: loop body
LE: loop exit
PB: predicated region body
PF: predicated region fallthrough
CT: control target
= control target key end

     0   :  { %v7687_v1 = vmov 0.0   ;;  %vm7688_vm0 = vmmov 0   ;;  %vm102_vm1 = vcmask 523264   ;;  %s9418_s0 = inlined_call_operand.vmem [shape: bf16[2,24,64], index: 0, kind: input, shape index: {}]   ;;  %s9419_s1 = inlined_call_operand.vmem [shape: bf16[64,32], index: 1, kind: input, shape index: {}]   ;;  %s9420_s2 = inlined_call_operand.vmem [shape: f32[24,32], index: 2, kind: input, shape index: {}]   ;;  %s9421_s3 = inlined_call_operand.vmem [shape: f32[2,4,32], index: 3, kind: input, shape index: {}]   ;;  %s9422_s4 = inlined_call_operand.vmem [shape: bf16[2,32,96], index: 4, kind: input, shape index: {}]   ;;  %s9423_s5 = inlined_call_operand.vmem [shape: f32[2,1,96], index: 5, kind: input, shape index: {}]   ;;  %s9424_s6 = inlined_call_operand.vmem [shape: bf16[2,32,32], index: 6, kind: input, shape index: {}]   ;;  %s9425_s7 = inlined_call_operand.vmem [shape: f32[2,1,32], index: 7, kind: input, shape index: {}]   ;;  %s9426_s8 = inlined_call_operand.vmem [shape: bf16[2,32,128], index: 8, kind: input, shape index: {}]   ;;  %s9427_s9 = inlined_call_operand.vmem [shape: f32[2,1,128], index: 9, kind: input, shape index: {}]   ;;  %s9428_s10 = inlined_call_operand.vmem [shape: bf16[2,128,32], index: 10, kind: input, shape index: {}]   ;;  %s9429_s11 = inlined_call_operand.vmem [shape: f32[2,1,32], index: 11, kind: input, shape index: {}]   ;;  %s9430_s12 = inlined_call_operand.vmem [shape: bf16[32,128], index: 12, kind: input, shape index: {}]   ;;  %s9431_s13 = inlined_call_operand.vmem [shape: f32[1,128], index: 13, kind: input, shape index: {}]   ;;  %s9432_s14 = inlined_call_operand.hbm [shape: f32[2,128], index: 14, kind: output, shape index: {}]  }
   0x1   :  { %v7360_v0 = vld [vmem:[%s9419_s1] sm:$0xff]   ;;  %6320 = vmatprep.subr.bf16.mxu0 %v7687_v1  ;;  %6340 = vmatprep.subr.bf16.mxu1 %v7687_v1  ;;  %v7361_v2 = vld [vmem:[%s9419_s1 + $0x8] sm:$0xff]   ;;  %v7362_v3 = vld [vmem:[%s9419_s1 + $0x10] sm:$0xff]  }
   0x2   :  { %6321 = vmatpush3.bf16.msra.mxu0 %v7360_v0  ;;  %6328 = vmatprep.mubr.msk.bf16.mxu0 %vm7688_vm0, %v7687_v1  ;;  %v7363_v4 = vld [vmem:[%s9419_s1 + $0x18] sm:$0xff]   ;;  %v7364_v5 = vld [vmem:[%s9418_s0] sm:$0xff]   ;;  %v7365_v6 = vld [vmem:[%s9418_s0 + $0x8] sm:$0xff]  }
   0x3   :  { %6322 = vmatprep.subr.bf16.mxu0 %v7687_v1  ;;  %6344 = vmatprep.mubr.msk.bf16.mxu1 %vm7688_vm0, %v7687_v1 }
   0x6   :  { %6323 = vmatpush3.bf16.msra.mxu0 %v7361_v2 }
   0x7   :  { %6324 = vmatprep.subr.bf16.mxu0 %v7687_v1 }
   0xa   :  { %6325 = vmatpush3.bf16.msra.mxu0 %v7362_v3 }
   0xb   :  { %6326 = vmatprep.subr.bf16.mxu0 %v7687_v1 }
   0xe   :  { %6327 = vmatpush3.bf16.msra.mxu0 %v7363_v4 }
  0x11   :  { %6329 = vmatmul.mubr.msk.bf16.vlgmr.msra.gmra.mrb[0].mxu0 %vm102_vm1, %v7364_v5 }
  0x12   :  { %6332 = vmatprep.mubr.msk.bf16.mxu0 %vm7688_vm0, %v7687_v1 }
  0x19   :  { %6333 = vmatmul.mubr.msk.bf16.gmra.mrb[4].mxu0 %vm102_vm1, %v7365_v6 }
  0x1a   :  { %6336 = vmatprep.mubr.msk.bf16.mxu0 %vm7688_vm0, %v7687_v1 }
  0x1b   :  { %19 = vsyncpa [#allocation3], 0  ;;  %v7366_v7 = vld [vmem:[%s9418_s0 + $0x10] sm:$0xff]   ;;  %v169_v8 = vld [vmem:[%s9420_s2] sm:$0xff]  ;;  %vm183_vm2 = vcmask 261120   ;;  %s7690_s22 = smov 96  }
  0x1c   :  { %v170_v10 = vld [vmem:[%s9420_s2 + $0x8] sm:$0xff]  ;;  %v171_v17 = vld [vmem:[%s9420_s2 + $0x10] sm:$0xff]  ;;  %v7367_v2 = vld [vmem:[%s9422_s4] sm:$0xff]   ;;  %vm404_vm3 = vcmask 64512   ;;  %vm610_vm6 = vcmask 195584   ;;  %s7691_s23 = smov 64  }
  0x1d   :  { %6341 = vmatpush3.bf16.msra.mxu1 %v7367_v2  ;;  %v7368_v3 = vld [vmem:[%s9422_s4 + $0x8] sm:$0xff]   ;;  %vm7949_vm4 = vmpackc.low %vm404_vm3, %vm404_vm3  ;;  %s7692_s24 = smov 88   ;;  %s7693_s1 = smov 120   ;;  %vm2397_vm7 = vcmask 130048   ;;  %vm5732_vm8 = vcmask 1041409  }
  0x1e   :  { %6342 = vmatprep.subr.bf16.mxu1 %v7687_v1  ;;  %s7694_s25 = smov 56   ;;  %s7695_s26 = smov 80  }
  0x1f   :  { %s7696_s27 = smov 112   ;;  %s7697_s28 = smov 48  }
  0x20   :  { %s7698_s29 = smov 72   ;;  %s7699_s0 = smov 104  }
  0x21   :  { %6337 = vmatmul.mubr.msk.bf16.gmra.mrb[8].mxu0 %vm102_vm1, %v7366_v7  ;;  %6343 = vmatpush3.bf16.msra.mxu1 %v7368_v3  ;;  %s7700_s30 = smov 40   ;;  %s9437_s2 = smov 8  }
  0x22   :  { %6407 = vmatprep.mubr.msk.f32.mxu0 %vm7688_vm0, %v7687_v1  ;;  %s9435_s15 = smov 16   ;;  %s9433_s20 = smov 24  }
  0xe4   :  { %v146_v9 = vpop.f32.mrb[0].mxu0 }
  0xe5   :  { %v7822_v11 = vadd.f32 %v169_v8, %v146_v9  ;;  %v6330_v12 = vpop.f32.mrb[1].mxu0 }
  0xe6   :  { %v149_v13 = vpop.f32.mrb[2].mxu0 }
  0xe7   :  { %v7824_v14 = vadd.f32 %v170_v10, %v149_v13  ;;  %v6331_v15 = vpop.f32.mrb[3].mxu0  ;;  %v184_v16 = vsel %vm183_vm2, %v7822_v11, 0.0 }
  0xe8   :  { %185 = vadd.xlane.f32.xlu0 %v184_v16 }
  0xe9   :  { %v187_v18 = vsel %vm183_vm2, %v7824_v14, 0.0 }
  0xec   :  { %188 = vadd.xlane.f32.xlu0 %v187_v18  ;;  %v154_v19 = vpop.f32.mrb[4].mxu0 }
  0xed   :  { %v7833_v20 = vadd.f32 %v171_v17, %v154_v19  ;;  %v6334_v21 = vpop.f32.mrb[5].mxu0 }
  0xee   :  { %v157_v22 = vpop.f32.mrb[6].mxu0  ;;  %v182_v21 = vld [vmem:[%s9421_s3] sm:$0xf] }
  0xef   :  { %v190_v23 = vsel %vm183_vm2, %v7833_v20, 0.0  ;;  %v7837_v24 = vadd.f32 %v169_v8, %v157_v22  ;;  %v6335_v25 = vpop.f32.mrb[7].mxu0  ;;  %v178_v8 = vlaneseq }
  0xf0   :  { %191 = vadd.xlane.f32.xlu1 %v190_v23 }
  0xf1   :  { %v193_v26 = vsel %vm183_vm2, %v7837_v24, 0.0  ;;  %v7889_v13 = vshrl.u32 %v178_v8, 7 }
  0xf3   :  { %v265_v18 = vsub.s32 0, %v7889_v13 }
  0xf4   :  { %194 = vadd.xlane.f32.xlu1 %v193_v26  ;;  %v162_v27 = vpop.f32.mrb[8].mxu0 }
  0xf5   :  { %v7841_v28 = vadd.f32 %v170_v10, %v162_v27  ;;  %v6338_v29 = vpop.f32.mrb[9].mxu0  ;;  %v266_v27 = vrot.slane %v182_v21, %v265_v18 }
  0xf6   :  { %v165_v30 = vpop.f32.mrb[10].mxu0  ;;  %v275_v29 = vsub.s32 1, %v7889_v13 }
  0xf7   :  { %v7843_v31 = vadd.f32 %v171_v17, %v165_v30  ;;  %v196_v32 = vsel %vm183_vm2, %v7841_v28, 0.0  ;;  %v6339_v33 = vpop.f32.mrb[11].mxu0 }
  0xf8   :  { %197 = vadd.xlane.f32.xlu0 %v196_v32 }
  0xf9   :  { %v199_v34 = vsel %vm183_vm2, %v7843_v31, 0.0 }
  0xfa   :  { %200 = vadd.xlane.f32.xlu1 %v199_v34 }
 0x175   :  { %v186_v35 = vpop.xlane.xlu0 %185 }
 0x176   :  { %v203_v36 = vmul.f32 0.03125, %v186_v35 }
 0x178   :  { %v209_v37 = vsub.f32 %v7822_v11, %v203_v36 }
 0x179   :  { %v189_v38 = vpop.xlane.xlu0 %188 }
 0x17a   :  { %v204_v39 = vmul.f32 0.03125, %v189_v38  ;;  %v215_v40 = vmul.f32 %v209_v37, %v209_v37 }
 0x17c   :  { %v7851_v41 = vsub.f32 %v7824_v14, %v204_v39  ;;  %v221_v42 = vsel %vm183_vm2, %v215_v40, 0.0  ;;  %v276_v39 = vrot.slane %v182_v21, %v275_v29 }
 0x17d   :  { %v192_v43 = vpop.xlane.xlu1 %191  ;;  %222 = vadd.xlane.f32.xlu0 %v221_v42 }
 0x17e   :  { %v205_v44 = vmul.f32 0.03125, %v192_v43  ;;  %v216_v45 = vmul.f32 %v7851_v41, %v7851_v41 }
 0x180   :  { %v7857_v46 = vsub.f32 %v7833_v20, %v205_v44  ;;  %v224_v47 = vsel %vm183_vm2, %v216_v45, 0.0 }
 0x181   :  { %v195_v48 = vpop.xlane.xlu1 %194  ;;  %225 = vadd.xlane.f32.xlu1 %v224_v47 }
 0x182   :  { %v206_v49 = vmul.f32 0.03125, %v195_v48  ;;  %v217_v50 = vmul.f32 %v7857_v46, %v7857_v46 }
 0x184   :  { %v7863_v51 = vsub.f32 %v7837_v24, %v206_v49  ;;  %v227_v52 = vsel %vm183_vm2, %v217_v50, 0.0 }
 0x185   :  { %228 = vadd.xlane.f32.xlu0 %v227_v52  ;;  %v198_v53 = vpop.xlane.xlu0 %197 }
 0x186   :  { %v207_v54 = vmul.f32 0.03125, %v198_v53  ;;  %v218_v55 = vmul.f32 %v7863_v51, %v7863_v51 }
 0x187   :  { %v201_v56 = vpop.xlane.xlu1 %200 }
 0x188   :  { %v7869_v57 = vsub.f32 %v7841_v28, %v207_v54  ;;  %v208_v58 = vmul.f32 0.03125, %v201_v56  ;;  %v230_v59 = vsel %vm183_vm2, %v218_v55, 0.0 }
 0x189   :  { %231 = vadd.xlane.f32.xlu1 %v230_v59 }
 0x18a   :  { %v7873_v60 = vsub.f32 %v7843_v31, %v208_v58  ;;  %v219_v61 = vmul.f32 %v7869_v57, %v7869_v57 }
 0x18c   :  { %v233_v62 = vsel %vm183_vm2, %v219_v61, 0.0  ;;  %v220_v63 = vmul.f32 %v7873_v60, %v7873_v60 }
 0x18d   :  { %234 = vadd.xlane.f32.xlu0 %v233_v62 }
 0x18e   :  { %v236_v0 = vsel %vm183_vm2, %v220_v63, 0.0 }
 0x18f   :  { %237 = vadd.xlane.f32.xlu1 %v236_v0 }
 0x20a   :  { %v223_v4 = vpop.xlane.xlu0 %222 }
 0x20b   :  { %v239_v5 = vmul.f32 0.03125, %v223_v4 }
 0x20d   :  { %v245_v6 = vadd.f32 1e-05, %v239_v5  ;;  %v5821_v5 = vld [vmem:[%s9423_s5] ss:$0 sm:$0xff] }
 0x20e   :  { %v226_v7 = vpop.xlane.xlu1 %225 }
 0x20f   :  { %7397 = vrsqrt.f32 %v245_v6  ;;  %v240_v9 = vmul.f32 0.03125, %v226_v7 }
 0x211   :  { %v246_v10 = vadd.f32 1e-05, %v240_v9 }
 0x212   :  { %v229_v12 = vpop.xlane.xlu0 %228 }
 0x213   :  { %7399 = vrsqrt.f32 %v246_v10  ;;  %v241_v15 = vmul.f32 0.03125, %v229_v12 }
 0x215   :  { %v247_v16 = vadd.f32 1e-05, %v241_v15 }
 0x216   :  { %v232_v17 = vpop.xlane.xlu1 %231 }
 0x217   :  { %7401 = vrsqrt.f32 %v247_v16  ;;  %v242_v19 = vmul.f32 0.03125, %v232_v17 }
 0x219   :  { %v7398_v22 = vpop.eup %7397  ;;  %v248_v23 = vadd.f32 1e-05, %v242_v19 }
 0x21a   :  { %v235_v25 = vpop.xlane.xlu0 %234  ;;  %v257_v26 = vmul.f32 %v7398_v22, %v209_v37 }
 0x21b   :  { %7403 = vrsqrt.f32 %v248_v23  ;;  %v243_v30 = vmul.f32 0.03125, %v235_v25 }
 0x21c   :  { %v238_v32 = vpop.xlane.xlu1 %237  ;;  %v267_v38 = vmul.f32 %v266_v27, %v257_v26 }
 0x21d   :  { %v7400_v33 = vpop.eup %7399  ;;  %v249_v34 = vadd.f32 1e-05, %v243_v30  ;;  %v244_v35 = vmul.f32 0.03125, %v238_v32 }
 0x21e   :  { %v258_v36 = vmul.f32 %v7400_v33, %v7851_v41  ;;  %v277_v43 = vadd.f32 %v276_v39, %v267_v38 }
 0x21f   :  { %7405 = vrsqrt.f32 %v249_v34  ;;  %v250_v40 = vadd.f32 1e-05, %v244_v35 }
 0x220   :  { %v268_v37 = vmul.f32 %v266_v27, %v258_v36 }
 0x221   :  { %v7402_v42 = vpop.eup %7401  ;;  %7407 = vrsqrt.f32 %v250_v40 }
 0x222   :  { %v278_v44 = vadd.f32 %v276_v39, %v268_v37  ;;  %v259_v45 = vmul.f32 %v7402_v42, %v7857_v46 }
 0x224   :  { %v283_v47 = vpack.c.bf16 %v278_v44, %v277_v43  ;;  %v269_v41 = vmul.f32 %v266_v27, %v259_v45 }
 0x225   :  { %v7404_v48 = vpop.eup %7403 }
 0x226   :  { %6345 = vmatmul.mubr.msk.bf16.vlgmr.msra.gmra.mrb[0].mxu1 %vm183_vm2, %v283_v47  ;;  %v260_v49 = vmul.f32 %v7404_v48, %v7863_v51  ;;  %v279_v54 = vadd.f32 %v276_v39, %v269_v41  ;;  %v179_v48 = vand.u32 127, %v178_v8 }
 0x227   :  { %6348 = vmatprep.mubr.msk.bf16.mxu1 %vm7688_vm0, %v7687_v1 }
 0x228   :  { %v270_v50 = vmul.f32 %v266_v27, %v260_v49  ;;  %vm180_vm5 = vcmp.ge.s32.totalorder %v179_v48, 17 }
 0x229   :  { %v7406_v52 = vpop.eup %7405  ;;  %v7989_v49 = vsel %vm180_vm5, -1e+09, %v7687_v1 }
 0x22a   :  { %v261_v53 = vmul.f32 %v7406_v52, %v7869_v57  ;;  %v280_v55 = vadd.f32 %v276_v39, %v270_v50 }
 0x22b   :  { %v7408_v56 = vpop.eup %7407 }
 0x22c   :  { %v262_v58 = vmul.f32 %v7408_v56, %v7873_v60  ;;  %v6058_v46 = vpack.c.bf16 %v280_v55, %v279_v54  ;;  %v271_v59 = vmul.f32 %v266_v27, %v261_v53  ;;  %v7689_v60 = vmov 0.0|0.0  }
 0x22d   :  { %6980 = vmatprep.subr.bf16.mxu1 %v7689_v60  ;;  %6991 = vmatprep.subr.bf16.mxu0 %v7689_v60 }
 0x22e   :  { %6349 = vmatmul.mubr.msk.bf16.gmra.mrb[4].mxu1 %vm183_vm2, %v6058_v46  ;;  %v272_v61 = vmul.f32 %v266_v27, %v262_v58  ;;  %v281_v62 = vadd.f32 %v276_v39, %v271_v59 }
 0x22f   :  { %6352 = vmatprep.mubr.msk.bf16.mxu1 %vm7688_vm0, %v7687_v1 }
 0x230   :  { %v282_v51 = vadd.f32 %v276_v39, %v272_v61  ;;  %v285_v63 = vpack.c.bf16 %v281_v62, %v280_v55 }
 0x232   :  { %v286_v0 = vpack.c.bf16 %v282_v51, %v282_v51  ;;  %v295_v2 = vunpack.c.h.b16 %v285_v63 }
 0x234   :  { %v296_v3 = vunpack.c.l.b16 %v286_v0 }
 0x236   :  { %v303_v57 = vpack.c.b16 %v296_v3, %v295_v2 }
 0x238   :  { %6353 = vmatmul.mubr.msk.bf16.gmra.mrb[8].mxu1 %vm183_vm2, %v303_v57 }
 0x239   :  { %6362 = vmatprep.mubr.msk.f32.mxu1 %vm7688_vm0, %v7687_v1 }
 0x2f9   :  { %v359_v4 = vpop.f32.mrb[0].mxu1 }
 0x2fa   :  { %v6346_v6 = vpop.f32.mrb[1].mxu1  ;;  %v7919_v9 = vadd.f32 %v5821_v5, %v359_v4 }
 0x2fb   :  { %v362_v7 = vpop.f32.mrb[2].mxu1 }
 0x2fc   :  { %v7921_v10 = vadd.f32 %v5821_v5, %v362_v7  ;;  %v6347_v12 = vpop.f32.mrb[3].mxu1 }
 0x2fe   :  { %v7925_v15 = vpack.i.bf16 %v7921_v10, %v7919_v9 }
 0x300   :  { %7111 = vrot.lane.b32.xlu0 %v7925_v15, %s7690_s22 }
 0x301   :  { %v367_v16 = vpop.f32.mrb[4].mxu1 }
 0x302   :  { %v7929_v17 = vadd.f32 %v5821_v5, %v367_v16  ;;  %v6350_v19 = vpop.f32.mrb[5].mxu1 }
 0x303   :  { %v370_v21 = vpop.f32.mrb[6].mxu1 }
 0x304   :  { %402 = vrot.lane.b32.xlu1 %v7929_v17, %s7690_s22  ;;  %v6351_v22 = vpop.f32.mrb[7].mxu1  ;;  %v7933_v25 = vadd.f32 %v5821_v5, %v370_v21 }
 0x30b   :  { %v375_v23 = vpop.f32.mrb[8].mxu1 }
 0x30c   :  { %v7935_v26 = vadd.f32 %v5821_v5, %v375_v23  ;;  %v6354_v27 = vpop.f32.mrb[9].mxu1 }
 0x30d   :  { %v378_v30 = vpop.f32.mrb[10].mxu1 }
 0x30e   :  { %v6355_v32 = vpop.f32.mrb[11].mxu1  ;;  %v7939_v33 = vpack.i.bf16 %v7935_v26, %v7933_v25  ;;  %v7943_v34 = vadd.f32 %v5821_v5, %v378_v30 }
 0x310   :  { %7116 = vrot.lane.b32.xlu1 %v7939_v33, %s7690_s22 }
 0x314   :  { %504 = vrot.lane.b32.xlu1 %v7943_v34, %s7690_s22 }
 0x372   :  { %v7112_v35 = vpop.permute.xlu0 %7111 }
 0x373   :  { %v7114_v36 = vunpack.i.h.bf16 %v7112_v35  ;;  %v7113_v38 = vunpack.i.l.bf16 %v7112_v35 }
 0x375   :  { %v6981_v40 = vpack.c.bf16 %v7114_v36, %v7113_v38 }
 0x376   :  { %v403_v37 = vpop.permute.xlu1 %402 }
 0x377   :  { %6983 = vmatpush3.bf16.xpose.msk.msra.mxu1 %vm7949_vm4, %v6981_v40 }
 0x378   :  { %6360 = vmatprep.subr.mxu1 %v7687_v1 }
 0x37f   :  { %6361 = vmatpush3.xpose.msk.msra.mxu1 %vm404_vm3, %v403_v37 }
 0x380   :  { %6984 = vmatprep.subr.bf16.mxu1 %v7689_v60 }
 0x382   :  { %6363 = vmatmul.mubr.msk.f32.vlgmr.msra.gmra.mrb[12].mxu1 %vm404_vm3, %v7919_v9  ;;  %v7117_v42 = vpop.permute.xlu1 %7116 }
 0x383   :  { %v7119_v43 = vunpack.i.h.bf16 %v7117_v42  ;;  %v7118_v44 = vunpack.i.l.bf16 %v7117_v42  ;;  %6365 = vmatprep.mubr.msk.f32.mxu1 %vm7688_vm0, %v7687_v1 }
 0x385   :  { %v6985_v45 = vpack.c.bf16 %v7119_v43, %v7118_v44 }
 0x386   :  { %6366 = vmatmul.mubr.msk.f32.gmra.mrb[14].mxu1 %vm404_vm3, %v7921_v10  ;;  %v505_v47 = vpop.permute.xlu1 %504 }
 0x387   :  { %6987 = vmatpush3.bf16.xpose.msk.msra.mxu1 %vm7949_vm4, %v6985_v45  ;;  %6368 = vmatprep.mubr.msk.f32.mxu1 %vm7688_vm0, %v7687_v1 }
 0x388   :  { %6375 = vmatprep.subr.mxu1 %v7687_v1 }
 0x38a   :  { %6369 = vmatmul.mubr.msk.f32.gmra.mrb[16].mxu1 %vm404_vm3, %v7929_v17 }
 0x38b   :  { %6377 = vmatprep.mubr.msk.f32.mxu1 %vm7688_vm0, %v7687_v1 }
 0x38f   :  { %6376 = vmatpush3.xpose.msk.msra.mxu1 %vm404_vm3, %v505_v47 }
 0x390   :  { %6988 = vmatprep.subr.bf16.mxu1 %v7689_v60 }
 0x392   :  { %6378 = vmatmul.mubr.msk.f32.vlgmr.msra.gmra.mrb[18].mxu1 %vm404_vm3, %v7933_v25 }
 0x393   :  { %6380 = vmatprep.mubr.msk.f32.mxu1 %vm7688_vm0, %v7687_v1 }
 0x396   :  { %6381 = vmatmul.mubr.msk.f32.gmra.mrb[20].mxu1 %vm404_vm3, %v7935_v26 }
 0x397   :  { %6383 = vmatprep.mubr.msk.f32.mxu1 %vm7688_vm0, %v7687_v1 }
 0x39a   :  { %6384 = vmatmul.mubr.msk.f32.gmra.mrb[22].mxu1 %vm404_vm3, %v7943_v34 }
 0x39b   :  { %6392 = vmatprep.mubr.msk.f32.mxu1 %vm7688_vm0, %v7687_v1 }
 0x455   :  { %v483_v41 = vpop.f32.mrb[12].mxu1 }
 0x456   :  { %v598_v50 = vmul.f32 0.35355338, %v483_v41  ;;  %v6364_v52 = vpop.f32.mrb[13].mxu1 }
 0x458   :  { %v604_v53 = vadd.f32 %v598_v50, %v7989_v49 }
 0x459   :  { %v488_v54 = vpop.f32.mrb[14].mxu1 }
 0x45a   :  { %v599_v55 = vmul.f32 0.35355338, %v488_v54  ;;  %v6367_v56 = vpop.f32.mrb[15].mxu1  ;;  %v611_v58 = vsel %vm610_vm6, %v604_v53, -inf }
 0x45b   :  { %612 = vmax.xlane.f32.xlu0 %v611_v58 }
 0x45c   :  { %v605_v46 = vadd.f32 %v599_v55, %v7989_v49 }
 0x45d   :  { %v493_v59 = vpop.f32.mrb[16].mxu1 }
 0x45e   :  { %v600_v8 = vmul.f32 0.35355338, %v493_v59  ;;  %v6370_v61 = vpop.f32.mrb[17].mxu1  ;;  %v614_v62 = vsel %vm610_vm6, %v605_v46, -inf }
 0x45f   :  { %615 = vmax.xlane.f32.xlu1 %v614_v62 }
 0x460   :  { %v7996_v51 = vadd.f32 %v600_v8, %v7989_v49 }
 0x462   :  { %v617_v63 = vsel %vm610_vm6, %v7996_v51, -inf }
 0x463   :  { %618 = vmax.xlane.f32.xlu0 %v617_v63 }
 0x465   :  { %v584_v0 = vpop.f32.mrb[18].mxu1 }
 0x466   :  { %v601_v2 = vmul.f32 0.35355338, %v584_v0  ;;  %v6379_v3 = vpop.f32.mrb[19].mxu1 }
 0x468   :  { %v607_v57 = vadd.f32 %v601_v2, %v7989_v49 }
 0x469   :  { %v589_v4 = vpop.f32.mrb[20].mxu1 }
 0x46a   :  { %v602_v5 = vmul.f32 0.35355338, %v589_v4  ;;  %v6382_v6 = vpop.f32.mrb[21].mxu1  ;;  %v620_v7 = vsel %vm610_vm6, %v607_v57, -inf }
 0x46b   :  { %621 = vmax.xlane.f32.xlu0 %v620_v7 }
 0x46c   :  { %v8003_v12 = vadd.f32 %v602_v5, %v7989_v49 }
 0x46d   :  { %v594_v16 = vpop.f32.mrb[22].mxu1 }
 0x46e   :  { %v603_v19 = vmul.f32 0.35355338, %v594_v16  ;;  %v6385_v21 = vpop.f32.mrb[23].mxu1  ;;  %v623_v22 = vsel %vm610_vm6, %v8003_v12, -inf }
 0x46f   :  { %624 = vmax.xlane.f32.xlu0 %v623_v22 }
 0x470   :  { %v8008_v23 = vadd.f32 %v603_v19, %v7989_v49 }
 0x472   :  { %v626_v27 = vsel %vm610_vm6, %v8008_v23, -inf }
 0x473   :  { %627 = vmax.xlane.f32.xlu1 %v626_v27 }
 0x484   :  { %7121 = vrot.lane.b32.xlu1 %v7925_v15, %s7691_s23 }
 0x485   :  { %681 = vrot.lane.b32.xlu0 %v7929_v17, %s7691_s23 }
 0x488   :  { %7126 = vrot.lane.b32.xlu1 %v7939_v33, %s7691_s23 }
 0x489   :  { %883 = vrot.lane.b32.xlu0 %v7929_v17, %s7692_s24 }
 0x48c   :  { %7131 = vrot.lane.b32.xlu1 %v7925_v15, %s7692_s24 }
 0x490   :  { %779 = vrot.lane.b32.xlu1 %v7943_v34, %s7691_s23 }
 0x494   :  { %7136 = vrot.lane.b32.xlu1 %v7939_v33, %s7692_s24 }
 0x498   :  { %873 = vrot.lane.b32.xlu1 %v7919_v9, %s7693_s1 }
 0x4e8   :  { %v613_v30 = vpop.xlane.xlu0 %612 }
 0x4e9   :  { %v629_v32 = vsub.f32 %v604_v53, %v613_v30 }
 0x4eb   :  { %v635_v35 = vmul.f32 1.442695, %v629_v32 }
 0x4ec   :  { %v616_v36 = vpop.xlane.xlu1 %615 }
 0x4ed   :  { %7409 = vpow2.f32 %v635_v35  ;;  %v630_v38 = vsub.f32 %v605_v46, %v616_v36 }
 0x4ef   :  { %v637_v40 = vmul.f32 1.442695, %v630_v38 }
 0x4f0   :  { %v619_v37 = vpop.xlane.xlu0 %618 }
 0x4f1   :  { %7411 = vpow2.f32 %v637_v40  ;;  %v631_v3 = vsub.f32 %v7996_v51, %v619_v37 }
 0x4f7   :  { %v8028_v42 = vpop.eup %7409 }
 0x4f8   :  { %v622_v43 = vpop.xlane.xlu0 %621  ;;  %v647_v44 = vsel %vm610_vm6, %v8028_v42, 0.0 }
 0x4f9   :  { %v632_v45 = vsub.f32 %v607_v57, %v622_v43  ;;  %648 = vadd.xlane.f32.xlu0 %v647_v44  ;;  %v639_v57 = vmul.f32 1.442695, %v631_v3 }
 0x4fb   :  { %v8032_v47 = vpop.eup %7411  ;;  %v641_v48 = vmul.f32 1.442695, %v632_v45 }
 0x4fc   :  { %v650_v41 = vsel %vm610_vm6, %v8032_v47, 0.0  ;;  %v625_v55 = vpop.xlane.xlu0 %624 }
 0x4fd   :  { %7413 = vpow2.f32 %v641_v48  ;;  %651 = vadd.xlane.f32.xlu1 %v650_v41  ;;  %v633_v4 = vsub.f32 %v8003_v12, %v625_v55 }
 0x4fe   :  { %7415 = vpow2.f32 %v639_v57 }
 0x4ff   :  { %v643_v5 = vmul.f32 1.442695, %v633_v4 }
 0x500   :  { %v628_v50 = vpop.xlane.xlu1 %627  ;;  %v682_v63 = vpop.permute.xlu0 %681 }
 0x501   :  { %v634_v6 = vsub.f32 %v8008_v23, %v628_v50  ;;  %7417 = vpow2.f32 %v643_v5 }
 0x503   :  { %v645_v7 = vmul.f32 1.442695, %v634_v6 }
 0x504   :  { %v7122_v52 = vpop.permute.xlu1 %7121  ;;  %v884_v27 = vpop.permute.xlu0 %883 }
 0x505   :  { %v7124_v53 = vunpack.i.h.bf16 %v7122_v52  ;;  %v7123_v54 = vunpack.i.l.bf16 %v7122_v52  ;;  %7419 = vpow2.f32 %v645_v7 }
 0x507   :  { %v8036_v56 = vpop.eup %7413  ;;  %v6989_v58 = vpack.c.bf16 %v7124_v53, %v7123_v54 }
 0x508   :  { %v7127_v46 = vpop.permute.xlu1 %7126  ;;  %v656_v59 = vsel %vm610_vm6, %v8036_v56, 0.0  ;;  %v7416_v51 = vpop.eup %7415 }
 0x509   :  { %v7129_v8 = vunpack.i.h.bf16 %v7127_v46  ;;  %v7128_v61 = vunpack.i.l.bf16 %v7127_v46  ;;  %657 = vadd.xlane.f32.xlu1 %v656_v59  ;;  %6990 = vmatpush3.bf16.msra.mxu1 %v6989_v58  ;;  %v653_v16 = vsel %vm610_vm6, %v7416_v51, 0.0 }
 0x50a   :  { %6390 = vmatprep.subr.mxu1 %v7687_v1 }
 0x50b   :  { %v6992_v62 = vpack.c.bf16 %v7129_v8, %v7128_v61  ;;  %v7418_v19 = vpop.eup %7417 }
 0x50c   :  { %v7132_v0 = vpop.permute.xlu1 %7131  ;;  %v659_v12 = vsel %vm610_vm6, %v7418_v19, 0.0 }
 0x50d   :  { %6391 = vmatpush3.msra.mxu1 %v682_v63  ;;  %6993 = vmatpush3.bf16.msra.mxu0 %v6992_v62  ;;  %v7134_v36 = vunpack.i.h.bf16 %v7132_v0  ;;  %v7133_v38 = vunpack.i.l.bf16 %v7132_v0 }
 0x50e   :  { %6405 = vmatprep.subr.mxu0 %v7687_v1  ;;  %6994 = vmatprep.subr.bf16.mxu1 %v7689_v60 }
 0x50f   :  { %875 = vrot.lane.b32.xlu0 %v7921_v10, %s7693_s1  ;;  %v7420_v21 = vpop.eup %7419  ;;  %v6995_v43 = vpack.c.bf16 %v7134_v36, %v7133_v38 }
 0x510   :  { %v780_v2 = vpop.permute.xlu1 %779  ;;  %v662_v22 = vsel %vm610_vm6, %v7420_v21, 0.0 }
 0x511   :  { %6406 = vmatpush3.msra.mxu0 %v780_v2 }
 0x512   :  { %6998 = vmatprep.subr.bf16.mxu0 %v7689_v60 }
 0x514   :  { %v7137_v23 = vpop.permute.xlu1 %7136 }
 0x515   :  { %v7138_v41 = vunpack.i.l.bf16 %v7137_v23 }
 0x518   :  { %v874_v30 = vpop.permute.xlu1 %873 }
 0x51a   :  { %987 = vrot.lane.b32.xlu1 %v7943_v34, %s7692_s24 }
 0x51e   :  { %977 = vrot.lane.b32.xlu1 %v7933_v25, %s7693_s1 }
 0x522   :  { %981 = vrot.lane.b32.xlu1 %v7943_v34, %s7693_s1 }
 0x52e   :  { %654 = vadd.xlane.f32.xlu0 %v653_v16 }
 0x532   :  { %660 = vadd.xlane.f32.xlu0 %v659_v12 }
 0x536   :  { %663 = vadd.xlane.f32.xlu0 %v662_v22 }
 0x54c   :  { %877 = vrot.lane.b32.xlu0 %v7929_v17, %s7693_s1 }
 0x550   :  { %979 = vrot.lane.b32.xlu0 %v7935_v26, %s7693_s1 }
 0x586   :  { %v649_v32 = vpop.xlane.xlu0 %648 }
 0x587   :  { %7421 = vrcp.f32 %v649_v32 }
 0x58a   :  { %v652_v35 = vpop.xlane.xlu1 %651  ;;  %v876_v54 = vpop.permute.xlu0 %875 }
 0x58b   :  { %7423 = vrcp.f32 %v652_v35 }
 0x591   :  { %v7422_v40 = vpop.eup %7421 }
 0x592   :  { %v671_v37 = vmul.f32 %v7422_v40, %v8028_v42  ;;  %v7139_v42 = vunpack.i.h.bf16 %v7137_v23 }
 0x594   :  { %6393 = vmatmul.mubr.msk.f32.vlgmr.msra.gmra.mrb[24].mxu1 %vm610_vm6, %v671_v37  ;;  %v6999_v53 = vpack.c.bf16 %v7139_v42, %v7138_v41 }
 0x595   :  { %v7424_v44 = vpop.eup %7423  ;;  %6997 = vmatpush3.bf16.xpose.msk.msra.mxu1 %vm7949_vm4, %v6995_v43  ;;  %6395 = vmatprep.mubr.msk.f32.mxu1 %vm7688_vm0, %v7687_v1 }
 0x596   :  { %v658_v45 = vpop.xlane.xlu1 %657  ;;  %v672_v48 = vmul.f32 %v7424_v44, %v8032_v47  ;;  %6420 = vmatprep.subr.mxu1 %v7687_v1 }
 0x597   :  { %7425 = vrcp.f32 %v658_v45 }
 0x598   :  { %6396 = vmatmul.mubr.msk.f32.gmra.mrb[26].mxu1 %vm610_vm6, %v672_v48 }
 0x599   :  { %6398 = vmatprep.mubr.msk.f32.mxu1 %vm7688_vm0, %v7687_v1 }
 0x59a   :  { %v988_v47 = vpop.permute.xlu1 %987 }
 0x59d   :  { %6421 = vmatpush3.xpose.msk.msra.mxu1 %vm404_vm3, %v884_v27 }
 0x59e   :  { %7002 = vmatprep.subr.bf16.mxu1 %v7689_v60  ;;  %v978_v2 = vpop.permute.xlu1 %977 }
 0x5a1   :  { %v7426_v50 = vpop.eup %7425 }
 0x5a2   :  { %v674_v52 = vmul.f32 %v7426_v50, %v8036_v56  ;;  %v982_v57 = vpop.permute.xlu1 %981 }
 0x5a4   :  { %6408 = vmatmul.mubr.msk.f32.vlgmr.msra.gmra.mrb[12].mxu0 %vm610_vm6, %v674_v52 }
 0x5a5   :  { %7001 = vmatpush3.bf16.xpose.msk.msra.mxu0 %vm7949_vm4, %v6999_v53  ;;  %6410 = vmatprep.mubr.msk.f32.mxu0 %vm7688_vm0, %v7687_v1 }
 0x5a6   :  { %6435 = vmatprep.subr.mxu0 %v7687_v1 }
 0x5ad   :  { %6436 = vmatpush3.xpose.msk.msra.mxu0 %vm404_vm3, %v988_v47 }
 0x5ae   :  { %7005 = vmatprep.subr.bf16.mxu0 %v7689_v60 }
 0x5bb   :  { %v655_v55 = vpop.xlane.xlu0 %654 }
 0x5bc   :  { %7427 = vrcp.f32 %v655_v55 }
 0x5bf   :  { %v661_v56 = vpop.xlane.xlu0 %660 }
 0x5c0   :  { %7429 = vrcp.f32 %v661_v56 }
 0x5c3   :  { %v664_v58 = vpop.xlane.xlu0 %663 }
 0x5c4   :  { %7431 = vrcp.f32 %v664_v58 }
 0x5c6   :  { %v7428_v46 = vpop.eup %7427 }
 0x5c7   :  { %v673_v59 = vmul.f32 %v7428_v46, %v7416_v51  ;;  %v878_v0 = vpop.permute.xlu0 %877 }
 0x5c9   :  { %6399 = vmatmul.mubr.msk.f32.gmra.mrb[28].mxu1 %vm610_vm6, %v673_v59 }
 0x5ca   :  { %v7430_v8 = vpop.eup %7429  ;;  %6422 = vmatprep.mubr.msk.f32.mxu1 %vm7688_vm0, %v7687_v1 }
 0x5cb   :  { %v675_v61 = vmul.f32 %v7430_v8, %v7418_v19  ;;  %v980_v3 = vpop.permute.xlu0 %979 }
 0x5cd   :  { %6411 = vmatmul.mubr.msk.f32.gmra.mrb[14].mxu0 %vm610_vm6, %v675_v61  ;;  %6423 = vmatmul.mubr.msk.f32.vlgmr.msra.gmra.mrb[30].mxu1 %vm404_vm3, %v874_v30 }
 0x5ce   :  { %v7432_v62 = vpop.eup %7431  ;;  %6413 = vmatprep.mubr.msk.f32.mxu0 %vm7688_vm0, %v7687_v1  ;;  %6425 = vmatprep.mubr.msk.f32.mxu1 %vm7688_vm0, %v7687_v1 }
 0x5cf   :  { %v676_v63 = vmul.f32 %v7432_v62, %v7420_v21 }
 0x5d1   :  { %6414 = vmatmul.mubr.msk.f32.gmra.mrb[16].mxu0 %vm610_vm6, %v676_v63  ;;  %6426 = vmatmul.mubr.msk.f32.gmra.mrb[32].mxu1 %vm404_vm3, %v876_v54 }
 0x5d2   :  { %6428 = vmatprep.mubr.msk.f32.mxu1 %vm7688_vm0, %v7687_v1  ;;  %6437 = vmatprep.mubr.msk.f32.mxu0 %vm7688_vm0, %v7687_v1 }
 0x5d5   :  { %6429 = vmatmul.mubr.msk.f32.gmra.mrb[34].mxu1 %vm404_vm3, %v878_v0  ;;  %6438 = vmatmul.mubr.msk.f32.vlgmr.msra.gmra.mrb[18].mxu0 %vm404_vm3, %v978_v2 }
 0x5d6   :  { %6440 = vmatprep.mubr.msk.f32.mxu0 %vm7688_vm0, %v7687_v1  ;;  %6452 = vmatprep.mubr.msk.f32.mxu1 %vm7688_vm0, %v7687_v1 }
 0x5d9   :  { %6441 = vmatmul.mubr.msk.f32.gmra.mrb[20].mxu0 %vm404_vm3, %v980_v3 }
 0x5da   :  { %6443 = vmatprep.mubr.msk.f32.mxu0 %vm7688_vm0, %v7687_v1 }
 0x5dd   :  { %6444 = vmatmul.mubr.msk.f32.gmra.mrb[22].mxu0 %vm404_vm3, %v982_v57 }
 0x5de   :  { %6467 = vmatprep.mubr.msk.f32.mxu0 %vm7688_vm0, %v7687_v1 }
 0x667   :  { %v8111_v4 = vpop.f32.mrb[24].mxu1 }
 0x668   :  { %v6394_v5 = vpop.f32.mrb[25].mxu1 }
 0x66b   :  { %v8113_v6 = vpop.f32.mrb[26].mxu1 }
 0x66c   :  { %v6397_v7 = vpop.f32.mrb[27].mxu1 }
 0x677   :  { %v8115_v51 = vpop.f32.mrb[12].mxu0 }
 0x678   :  { %v6409_v16 = vpop.f32.mrb[13].mxu0 }
 0x69c   :  { %v8117_v19 = vpop.f32.mrb[28].mxu1 }
 0x69d   :  { %v6400_v12 = vpop.f32.mrb[29].mxu1 }
 0x6a0   :  { %v8119_v21 = vpop.f32.mrb[14].mxu0  ;;  %v963_v22 = vpop.f32.mrb[30].mxu1 }
 0x6a1   :  { %v1081_v23 = vmul.f32 0.35355338, %v963_v22  ;;  %v6412_v27 = vpop.f32.mrb[15].mxu0  ;;  %v6424_v30 = vpop.f32.mrb[31].mxu1 }
 0x6a3   :  { %v1087_v32 = vadd.f32 %v1081_v23, %v7989_v49 }
 0x6a4   :  { %v8122_v35 = vpop.f32.mrb[16].mxu0  ;;  %v968_v36 = vpop.f32.mrb[32].mxu1 }
 0x6a5   :  { %v1082_v38 = vmul.f32 0.35355338, %v968_v36  ;;  %v6415_v40 = vpop.f32.mrb[17].mxu0  ;;  %v6427_v37 = vpop.f32.mrb[33].mxu1  ;;  %v1093_v43 = vsel %vm610_vm6, %v1087_v32, -inf }
 0x6a6   :  { %1094 = vmax.xlane.f32.xlu0 %v1093_v43 }
 0x6a7   :  { %v1088_v44 = vadd.f32 %v1082_v38, %v7989_v49 }
 0x6a8   :  { %v973_v45 = vpop.f32.mrb[34].mxu1  ;;  %v1067_v48 = vpop.f32.mrb[18].mxu0 }
 0x6a9   :  { %v1083_v42 = vmul.f32 0.35355338, %v973_v45  ;;  %v1084_v41 = vmul.f32 0.35355338, %v1067_v48  ;;  %v6430_v50 = vpop.f32.mrb[35].mxu1  ;;  %v6439_v52 = vpop.f32.mrb[19].mxu0 }
 0x6aa   :  { %v1096_v53 = vsel %vm610_vm6, %v1088_v44, -inf }
 0x6ab   :  { %1097 = vmax.xlane.f32.xlu1 %v1096_v53  ;;  %v8128_v47 = vadd.f32 %v1083_v42, %v7989_v49  ;;  %v1090_v46 = vadd.f32 %v1084_v41, %v7989_v49 }
 0x6ac   :  { %v1072_v54 = vpop.f32.mrb[20].mxu0 }
 0x6ad   :  { %v1085_v55 = vmul.f32 0.35355338, %v1072_v54  ;;  %v6442_v56 = vpop.f32.mrb[21].mxu0  ;;  %v1099_v58 = vsel %vm610_vm6, %v8128_v47, -inf  ;;  %v1102_v62 = vsel %vm610_vm6, %v1090_v46, -inf }
 0x6ae   :  { %1100 = vmax.xlane.f32.xlu0 %v1099_v58 }
 0x6af   :  { %v8135_v63 = vadd.f32 %v1085_v55, %v7989_v49 }
 0x6b0   :  { %v1077_v59 = vpop.f32.mrb[22].mxu0 }
 0x6b1   :  { %v1086_v8 = vmul.f32 0.35355338, %v1077_v59  ;;  %v6445_v61 = vpop.f32.mrb[23].mxu0  ;;  %v1105_v2 = vsel %vm610_vm6, %v8135_v63, -inf }
 0x6b2   :  { %1103 = vmax.xlane.f32.xlu0 %v1102_v62 }
 0x6b3   :  { %v8138_v0 = vadd.f32 %v1086_v8, %v7989_v49 }
 0x6b5   :  { %v1108_v3 = vsel %vm610_vm6, %v8138_v0, -inf }
 0x6b6   :  { %1106 = vmax.xlane.f32.xlu0 %v1105_v2  ;;  %1109 = vmax.xlane.f32.xlu1 %v1108_v3 }
 0x6c7   :  { %7141 = vrot.lane.b32.xlu1 %v7925_v15, %s7694_s25 }
 0x6cb   :  { %7146 = vrot.lane.b32.xlu1 %v7939_v33, %s7694_s25 }
 0x6cc   :  { %1163 = vrot.lane.b32.xlu0 %v7929_v17, %s7694_s25 }
 0x6cf   :  { %7151 = vrot.lane.b32.xlu1 %v7925_v15, %s7695_s26 }
 0x6d0   :  { %1365 = vrot.lane.b32.xlu0 %v7929_v17, %s7695_s26 }
 0x6d3   :  { %1261 = vrot.lane.b32.xlu1 %v7943_v34, %s7694_s25 }
 0x6d7   :  { %7156 = vrot.lane.b32.xlu1 %v7939_v33, %s7695_s26 }
 0x6db   :  { %1355 = vrot.lane.b32.xlu1 %v7919_v9, %s7696_s27 }
 0x733   :  { %v1095_v57 = vpop.xlane.xlu0 %1094 }
 0x734   :  { %v1111_v5 = vsub.f32 %v1087_v32, %v1095_v57 }
 0x736   :  { %v1117_v7 = vmul.f32 1.442695, %v1111_v5 }
 0x738   :  { %7433 = vpow2.f32 %v1117_v7  ;;  %v1098_v16 = vpop.xlane.xlu1 %1097 }
 0x739   :  { %v1112_v12 = vsub.f32 %v1088_v44, %v1098_v16 }
 0x73b   :  { %v1119_v22 = vmul.f32 1.442695, %v1112_v12  ;;  %v1101_v23 = vpop.xlane.xlu0 %1100 }
 0x73c   :  { %v1113_v8 = vsub.f32 %v8128_v47, %v1101_v23 }
 0x73d   :  { %7435 = vpow2.f32 %v1119_v22 }
 0x73e   :  { %v1121_v61 = vmul.f32 1.442695, %v1113_v8 }
 0x73f   :  { %v1104_v27 = vpop.xlane.xlu0 %1103 }
 0x740   :  { %v1114_v30 = vsub.f32 %v1090_v46, %v1104_v27 }
 0x742   :  { %v8160_v36 = vpop.eup %7433  ;;  %v1123_v38 = vmul.f32 1.442695, %v1114_v30 }
 0x743   :  { %v1110_v40 = vpop.xlane.xlu1 %1109  ;;  %v1129_v37 = vsel %vm610_vm6, %v8160_v36, 0.0  ;;  %v1107_v42 = vpop.xlane.xlu0 %1106 }
 0x744   :  { %7437 = vpow2.f32 %v1123_v38  ;;  %1130 = vadd.xlane.f32.xlu0 %v1129_v37  ;;  %v1115_v62 = vsub.f32 %v8135_v63, %v1107_v42  ;;  %v1116_v3 = vsub.f32 %v8138_v0, %v1110_v40 }
 0x745   :  { %7439 = vpow2.f32 %v1121_v61 }
 0x746   :  { %v1125_v2 = vmul.f32 1.442695, %v1115_v62  ;;  %v1127_v57 = vmul.f32 1.442695, %v1116_v3 }
 0x747   :  { %v8164_v43 = vpop.eup %7435  ;;  %v7142_v32 = vpop.permute.xlu1 %7141 }
 0x748   :  { %v7144_v45 = vunpack.i.h.bf16 %v7142_v32  ;;  %v7143_v48 = vunpack.i.l.bf16 %v7142_v32  ;;  %v1132_v44 = vsel %vm610_vm6, %v8164_v43, 0.0  ;;  %v1164_v56 = vpop.permute.xlu0 %1163  ;;  %7441 = vpow2.f32 %v1125_v2 }
 0x749   :  { %1133 = vadd.xlane.f32.xlu1 %v1132_v44  ;;  %7443 = vpow2.f32 %v1127_v57 }
 0x74a   :  { %v7003_v41 = vpack.c.bf16 %v7144_v45, %v7143_v48 }
 0x74b   :  { %v7147_v50 = vpop.permute.xlu1 %7146 }
 0x74c   :  { %v7149_v52 = vunpack.i.h.bf16 %v7147_v50  ;;  %v7148_v53 = vunpack.i.l.bf16 %v7147_v50  ;;  %7004 = vmatpush3.bf16.msra.mxu1 %v7003_v41  ;;  %v1366_v22 = vpop.permute.xlu0 %1365 }
 0x74d   :  { %6450 = vmatprep.subr.mxu1 %v7687_v1 }
 0x74e   :  { %v8169_v54 = vpop.eup %7437  ;;  %v7006_v55 = vpack.c.bf16 %v7149_v52, %v7148_v53 }
 0x74f   :  { %v7152_v58 = vpop.permute.xlu1 %7151  ;;  %v1138_v46 = vsel %vm610_vm6, %v8169_v54, 0.0  ;;  %v7440_v5 = vpop.eup %7439 }
 0x750   :  { %1139 = vadd.xlane.f32.xlu1 %v1138_v46  ;;  %6451 = vmatpush3.msra.mxu1 %v1164_v56  ;;  %v1135_v7 = vsel %vm610_vm6, %v7440_v5, 0.0  ;;  %v7154_v38 = vunpack.i.h.bf16 %v7152_v58  ;;  %v7153_v40 = vunpack.i.l.bf16 %v7152_v58 }
 0x751   :  { %7007 = vmatpush3.bf16.msra.mxu0 %v7006_v55  ;;  %7008 = vmatprep.subr.bf16.mxu1 %v7689_v60 }
 0x752   :  { %6465 = vmatprep.subr.mxu0 %v7687_v1  ;;  %v7442_v47 = vpop.eup %7441  ;;  %v7009_v48 = vpack.c.bf16 %v7154_v38, %v7153_v40 }
 0x753   :  { %v1262_v59 = vpop.permute.xlu1 %1261  ;;  %v1141_v16 = vsel %vm610_vm6, %v7442_v47, 0.0  ;;  %v7444_v12 = vpop.eup %7443 }
 0x754   :  { %v1144_v63 = vsel %vm610_vm6, %v7444_v12, 0.0 }
 0x755   :  { %6466 = vmatpush3.msra.mxu0 %v1262_v59 }
 0x756   :  { %7012 = vmatprep.subr.bf16.mxu0 %v7689_v60 }
 0x757   :  { %v7157_v0 = vpop.permute.xlu1 %7156 }
 0x758   :  { %v7158_v41 = vunpack.i.l.bf16 %v7157_v0 }
 0x75a   :  { %1357 = vrot.lane.b32.xlu0 %v7921_v10, %s7696_s27 }
 0x75b   :  { %v1356_v27 = vpop.permute.xlu1 %1355 }
 0x761   :  { %1469 = vrot.lane.b32.xlu1 %v7943_v34, %s7695_s26 }
 0x765   :  { %1459 = vrot.lane.b32.xlu1 %v7933_v25, %s7696_s27 }
 0x769   :  { %1463 = vrot.lane.b32.xlu1 %v7943_v34, %s7696_s27 }
 0x779   :  { %1136 = vadd.xlane.f32.xlu0 %v1135_v7 }
 0x77d   :  { %1142 = vadd.xlane.f32.xlu0 %v1141_v16 }
 0x781   :  { %1145 = vadd.xlane.f32.xlu0 %v1144_v63 }
 0x797   :  { %1359 = vrot.lane.b32.xlu0 %v7929_v17, %s7696_s27 }
 0x79b   :  { %1461 = vrot.lane.b32.xlu0 %v7935_v26, %s7696_s27 }
 0x7d1   :  { %v1131_v23 = vpop.xlane.xlu0 %1130 }
 0x7d2   :  { %7445 = vrcp.f32 %v1131_v23 }
 0x7d5   :  { %v1358_v55 = vpop.permute.xlu0 %1357 }
 0x7d6   :  { %v1134_v30 = vpop.xlane.xlu1 %1133 }
 0x7d7   :  { %7447 = vrcp.f32 %v1134_v30 }
 0x7dc   :  { %v7446_v37 = vpop.eup %7445 }
 0x7dd   :  { %v1153_v32 = vmul.f32 %v7446_v37, %v8160_v36  ;;  %v1140_v45 = vpop.xlane.xlu1 %1139  ;;  %v7159_v36 = vunpack.i.h.bf16 %v7157_v0 }
 0x7de   :  { %7449 = vrcp.f32 %v1140_v45 }
 0x7df   :  { %6453 = vmatmul.mubr.msk.f32.vlgmr.msra.gmra.mrb[36].mxu1 %vm610_vm6, %v1153_v32  ;;  %v7013_v53 = vpack.c.bf16 %v7159_v36, %v7158_v41 }
 0x7e0   :  { %7011 = vmatpush3.bf16.xpose.msk.msra.mxu1 %vm7949_vm4, %v7009_v48  ;;  %6455 = vmatprep.mubr.msk.f32.mxu1 %vm7688_vm0, %v7687_v1 }
 0x7e1   :  { %v7448_v44 = vpop.eup %7447  ;;  %6480 = vmatprep.subr.mxu1 %v7687_v1 }
 0x7e2   :  { %v1154_v42 = vmul.f32 %v7448_v44, %v8164_v43  ;;  %v1470_v43 = vpop.permute.xlu1 %1469 }
 0x7e4   :  { %6456 = vmatmul.mubr.msk.f32.gmra.mrb[38].mxu1 %vm610_vm6, %v1154_v42 }
 0x7e5   :  { %6458 = vmatprep.mubr.msk.f32.mxu1 %vm7688_vm0, %v7687_v1 }
 0x7e6   :  { %v1460_v57 = vpop.permute.xlu1 %1459 }
 0x7e8   :  { %v7450_v50 = vpop.eup %7449  ;;  %6481 = vmatpush3.xpose.msk.msra.mxu1 %vm404_vm3, %v1366_v22 }
 0x7e9   :  { %v1156_v52 = vmul.f32 %v7450_v50, %v8169_v54  ;;  %7016 = vmatprep.subr.bf16.mxu1 %v7689_v60 }
 0x7ea   :  { %v1464_v7 = vpop.permute.xlu1 %1463 }
 0x7eb   :  { %6468 = vmatmul.mubr.msk.f32.vlgmr.msra.gmra.mrb[24].mxu0 %vm610_vm6, %v1156_v52 }
 0x7ec   :  { %7015 = vmatpush3.bf16.xpose.msk.msra.mxu0 %vm7949_vm4, %v7013_v53  ;;  %6470 = vmatprep.mubr.msk.f32.mxu0 %vm7688_vm0, %v7687_v1 }
 0x7ed   :  { %6495 = vmatprep.subr.mxu0 %v7687_v1 }
 0x7f4   :  { %6496 = vmatpush3.xpose.msk.msra.mxu0 %vm404_vm3, %v1470_v43 }
 0x7f5   :  { %7019 = vmatprep.subr.bf16.mxu0 %v7689_v60 }
 0x806   :  { %v1137_v54 = vpop.xlane.xlu0 %1136 }
 0x807   :  { %7451 = vrcp.f32 %v1137_v54 }
 0x80a   :  { %v1143_v56 = vpop.xlane.xlu0 %1142 }
 0x80b   :  { %7453 = vrcp.f32 %v1143_v56 }
 0x80e   :  { %v1146_v58 = vpop.xlane.xlu0 %1145 }
 0x80f   :  { %7455 = vrcp.f32 %v1146_v58 }
 0x811   :  { %v7452_v46 = vpop.eup %7451 }
 0x812   :  { %v1155_v59 = vmul.f32 %v7452_v46, %v7440_v5  ;;  %v1360_v3 = vpop.permute.xlu0 %1359 }
 0x814   :  { %6459 = vmatmul.mubr.msk.f32.gmra.mrb[40].mxu1 %vm610_vm6, %v1155_v59 }
 0x815   :  { %v7454_v8 = vpop.eup %7453  ;;  %6482 = vmatprep.mubr.msk.f32.mxu1 %vm7688_vm0, %v7687_v1 }
 0x816   :  { %v1157_v61 = vmul.f32 %v7454_v8, %v7442_v47  ;;  %v1462_v5 = vpop.permute.xlu0 %1461 }
 0x818   :  { %6471 = vmatmul.mubr.msk.f32.gmra.mrb[26].mxu0 %vm610_vm6, %v1157_v61  ;;  %6483 = vmatmul.mubr.msk.f32.vlgmr.msra.gmra.mrb[42].mxu1 %vm404_vm3, %v1356_v27 }
 0x819   :  { %v7456_v62 = vpop.eup %7455  ;;  %6473 = vmatprep.mubr.msk.f32.mxu0 %vm7688_vm0, %v7687_v1  ;;  %6485 = vmatprep.mubr.msk.f32.mxu1 %vm7688_vm0, %v7687_v1 }
 0x81a   :  { %v1158_v2 = vmul.f32 %v7456_v62, %v7444_v12 }
 0x81c   :  { %6474 = vmatmul.mubr.msk.f32.gmra.mrb[28].mxu0 %vm610_vm6, %v1158_v2  ;;  %6486 = vmatmul.mubr.msk.f32.gmra.mrb[44].mxu1 %vm404_vm3, %v1358_v55 }
 0x81d   :  { %6488 = vmatprep.mubr.msk.f32.mxu1 %vm7688_vm0, %v7687_v1  ;;  %6497 = vmatprep.mubr.msk.f32.mxu0 %vm7688_vm0, %v7687_v1 }
 0x820   :  { %6489 = vmatmul.mubr.msk.f32.gmra.mrb[46].mxu1 %vm404_vm3, %v1360_v3  ;;  %6498 = vmatmul.mubr.msk.f32.vlgmr.msra.gmra.mrb[30].mxu0 %vm404_vm3, %v1460_v57 }
 0x821   :  { %6500 = vmatprep.mubr.msk.f32.mxu0 %vm7688_vm0, %v7687_v1  ;;  %6512 = vmatprep.mubr.msk.f32.mxu1 %vm7688_vm0, %v7687_v1 }
 0x824   :  { %6501 = vmatmul.mubr.msk.f32.gmra.mrb[32].mxu0 %vm404_vm3, %v1462_v5 }
 0x825   :  { %6503 = vmatprep.mubr.msk.f32.mxu0 %vm7688_vm0, %v7687_v1 }
 0x828   :  { %6504 = vmatmul.mubr.msk.f32.gmra.mrb[34].mxu0 %vm404_vm3, %v1464_v7 }
 0x829   :  { %6527 = vmatprep.mubr.msk.f32.mxu0 %vm7688_vm0, %v7687_v1 }
 0x8b2   :  { %v8243_v47 = vpop.f32.mrb[36].mxu1 }
 0x8b3   :  { %v6454_v16 = vpop.f32.mrb[37].mxu1 }
 0x8b7   :  { %v8245_v12 = vpop.f32.mrb[38].mxu1 }
 0x8b8   :  { %v7190_v63 = vpack.i.bf16 %v8245_v12, %v8243_v47  ;;  %v6457_v0 = vpop.f32.mrb[39].mxu1 }
 0x8be   :  { %v8249_v22 = vpop.f32.mrb[24].mxu0 }
 0x8bf   :  { %v6469_v23 = vpop.f32.mrb[25].mxu0 }
 0x8e7   :  { %v8251_v27 = vpop.f32.mrb[40].mxu1 }
 0x8e8   :  { %v7200_v30 = vpack.i.bf16 %v8249_v22, %v8251_v27  ;;  %v6460_v38 = vpop.f32.mrb[41].mxu1 }
 0x8eb   :  { %v8255_v40 = vpop.f32.mrb[26].mxu0  ;;  %v1445_v37 = vpop.f32.mrb[42].mxu1 }
 0x8ec   :  { %v1563_v32 = vmul.f32 0.35355338, %v1445_v37  ;;  %v6472_v45 = vpop.f32.mrb[27].mxu0  ;;  %v6484_v48 = vpop.f32.mrb[43].mxu1 }
 0x8ee   :  { %v1569_v44 = vadd.f32 %v1563_v32, %v7989_v49 }
 0x8ef   :  { %v8258_v42 = vpop.f32.mrb[28].mxu0  ;;  %v1450_v36 = vpop.f32.mrb[44].mxu1 }
 0x8f0   :  { %v7215_v41 = vpack.i.bf16 %v8258_v42, %v8255_v40  ;;  %v1564_v50 = vmul.f32 0.35355338, %v1450_v36  ;;  %v6475_v52 = vpop.f32.mrb[29].mxu0  ;;  %v6487_v53 = vpop.f32.mrb[45].mxu1  ;;  %v1575_v43 = vsel %vm610_vm6, %v1569_v44, -inf }
 0x8f1   :  { %1576 = vmax.xlane.f32.xlu0 %v1575_v43 }
 0x8f2   :  { %v1570_v55 = vadd.f32 %v1564_v50, %v7989_v49 }
 0x8f3   :  { %v1455_v54 = vpop.f32.mrb[46].mxu1  ;;  %v1549_v56 = vpop.f32.mrb[30].mxu0 }
 0x8f4   :  { %v1565_v58 = vmul.f32 0.35355338, %v1455_v54  ;;  %v1566_v46 = vmul.f32 0.35355338, %v1549_v56  ;;  %v6490_v59 = vpop.f32.mrb[47].mxu1  ;;  %v6499_v8 = vpop.f32.mrb[31].mxu0 }
 0x8f5   :  { %v1578_v61 = vsel %vm610_vm6, %v1570_v55, -inf }
 0x8f6   :  { %1579 = vmax.xlane.f32.xlu1 %v1578_v61  ;;  %v8266_v62 = vadd.f32 %v1565_v58, %v7989_v49  ;;  %v1572_v7 = vadd.f32 %v1566_v46, %v7989_v49 }
 0x8f7   :  { %v1554_v2 = vpop.f32.mrb[32].mxu0 }
 0x8f8   :  { %v1567_v3 = vmul.f32 0.35355338, %v1554_v2  ;;  %v6502_v57 = vpop.f32.mrb[33].mxu0  ;;  %v1581_v5 = vsel %vm610_vm6, %v8266_v62, -inf  ;;  %v1584_v38 = vsel %vm610_vm6, %v1572_v7, -inf }
 0x8f9   :  { %1582 = vmax.xlane.f32.xlu0 %v1581_v5 }
 0x8fa   :  { %v8273_v37 = vadd.f32 %v1567_v3, %v7989_v49 }
 0x8fb   :  { %v1559_v16 = vpop.f32.mrb[34].mxu0 }
 0x8fc   :  { %v1568_v0 = vmul.f32 0.35355338, %v1559_v16  ;;  %v6505_v23 = vpop.f32.mrb[35].mxu0  ;;  %v1587_v45 = vsel %vm610_vm6, %v8273_v37, -inf }
 0x8fd   :  { %1585 = vmax.xlane.f32.xlu0 %v1584_v38 }
 0x8fe   :  { %v8276_v32 = vadd.f32 %v1568_v0, %v7989_v49 }
 0x900   :  { %v1590_v48 = vsel %vm610_vm6, %v8276_v32, -inf }
 0x901   :  { %1588 = vmax.xlane.f32.xlu0 %v1587_v45  ;;  %1591 = vmax.xlane.f32.xlu1 %v1590_v48 }
 0x912   :  { %7161 = vrot.lane.b32.xlu1 %v7925_v15, %s7697_s28 }
 0x916   :  { %7166 = vrot.lane.b32.xlu1 %v7939_v33, %s7697_s28 }
 0x917   :  { %1645 = vrot.lane.b32.xlu0 %v7929_v17, %s7697_s28 }
 0x91a   :  { %7171 = vrot.lane.b32.xlu1 %v7925_v15, %s7698_s29 }
 0x91b   :  { %1847 = vrot.lane.b32.xlu0 %v7929_v17, %s7698_s29 }
 0x91e   :  { %1743 = vrot.lane.b32.xlu1 %v7943_v34, %s7697_s28 }
 0x922   :  { %7176 = vrot.lane.b32.xlu1 %v7939_v33, %s7698_s29 }
 0x926   :  { %1837 = vrot.lane.b32.xlu1 %v7919_v9, %s7699_s0 }
 0x97e   :  { %v1577_v36 = vpop.xlane.xlu0 %1576 }
 0x97f   :  { %v1593_v50 = vsub.f32 %v1569_v44, %v1577_v36 }
 0x981   :  { %v1599_v52 = vmul.f32 1.442695, %v1593_v50 }
 0x983   :  { %7457 = vpow2.f32 %v1599_v52  ;;  %v1580_v53 = vpop.xlane.xlu1 %1579 }
 0x984   :  { %v1594_v43 = vsub.f32 %v1570_v55, %v1580_v53 }
 0x986   :  { %v1601_v54 = vmul.f32 1.442695, %v1594_v43  ;;  %v1583_v56 = vpop.xlane.xlu0 %1582 }
 0x987   :  { %v1595_v53 = vsub.f32 %v8266_v62, %v1583_v56 }
 0x988   :  { %7459 = vpow2.f32 %v1601_v54 }
 0x989   :  { %v1603_v43 = vmul.f32 1.442695, %v1595_v53 }
 0x98a   :  { %v1586_v58 = vpop.xlane.xlu0 %1585 }
 0x98b   :  { %v1596_v46 = vsub.f32 %v1572_v7, %v1586_v58 }
 0x98d   :  { %v8298_v59 = vpop.eup %7457  ;;  %v1605_v8 = vmul.f32 1.442695, %v1596_v46 }
 0x98e   :  { %v1592_v61 = vpop.xlane.xlu1 %1591  ;;  %v1611_v2 = vsel %vm610_vm6, %v8298_v59, 0.0  ;;  %v1589_v5 = vpop.xlane.xlu0 %1588 }
 0x98f   :  { %7461 = vpow2.f32 %v1605_v8  ;;  %1612 = vadd.xlane.f32.xlu0 %v1611_v2  ;;  %v1597_v54 = vsub.f32 %v8273_v37, %v1589_v5  ;;  %v1598_v46 = vsub.f32 %v8276_v32, %v1592_v61 }
 0x990   :  { %7463 = vpow2.f32 %v1603_v43 }
 0x991   :  { %v1607_v58 = vmul.f32 1.442695, %v1597_v54 }
 0x992   :  { %v8302_v9 = vpop.eup %7459  ;;  %v7162_v44 = vpop.permute.xlu1 %7161 }
 0x993   :  { %v7164_v3 = vunpack.i.h.bf16 %v7162_v44  ;;  %v7163_v57 = vunpack.i.l.bf16 %v7162_v44  ;;  %v1614_v55 = vsel %vm610_vm6, %v8302_v9, 0.0  ;;  %v1646_v48 = vpop.permute.xlu0 %1645  ;;  %7465 = vpow2.f32 %v1607_v58 }
 0x994   :  { %1615 = vadd.xlane.f32.xlu1 %v1614_v55 }
 0x995   :  { %v7017_v7 = vpack.c.bf16 %v7164_v3, %v7163_v57 }
 0x996   :  { %v7167_v16 = vpop.permute.xlu1 %7166 }
 0x997   :  { %v7169_v0 = vunpack.i.h.bf16 %v7167_v16  ;;  %v7168_v23 = vunpack.i.l.bf16 %v7167_v16  ;;  %7018 = vmatpush3.bf16.msra.mxu1 %v7017_v7  ;;  %v1848_v61 = vpop.permute.xlu0 %1847 }
 0x998   :  { %6510 = vmatprep.subr.mxu1 %v7687_v1 }
 0x999   :  { %v8307_v38 = vpop.eup %7461  ;;  %v7020_v45 = vpack.c.bf16 %v7169_v0, %v7168_v23 }
 0x99a   :  { %v7172_v36 = vpop.permute.xlu1 %7171  ;;  %v1620_v50 = vsel %vm610_vm6, %v8307_v38, 0.0  ;;  %v7464_v8 = vpop.eup %7463 }
 0x99b   :  { %1621 = vadd.xlane.f32.xlu1 %v1620_v50  ;;  %6511 = vmatpush3.msra.mxu1 %v1646_v48  ;;  %v1617_v2 = vsel %vm610_vm6, %v7464_v8, 0.0  ;;  %v7174_v5 = vunpack.i.h.bf16 %v7172_v36  ;;  %v7173_v7 = vunpack.i.l.bf16 %v7172_v36 }
 0x99c   :  { %7021 = vmatpush3.bf16.msra.mxu0 %v7020_v45  ;;  %7022 = vmatprep.subr.bf16.mxu1 %v7689_v60 }
 0x99d   :  { %6525 = vmatprep.subr.mxu0 %v7687_v1  ;;  %v7466_v62 = vpop.eup %7465  ;;  %v7023_v45 = vpack.c.bf16 %v7174_v5, %v7173_v7 }
 0x99e   :  { %v1744_v52 = vpop.permute.xlu1 %1743  ;;  %v1623_v56 = vsel %vm610_vm6, %v7466_v62, 0.0 }
 0x9a0   :  { %6526 = vmatpush3.msra.mxu0 %v1744_v52 }
 0x9a1   :  { %7026 = vmatprep.subr.bf16.mxu0 %v7689_v60 }
 0x9a2   :  { %v7177_v32 = vpop.permute.xlu1 %7176 }
 0x9a3   :  { %v7178_v48 = vunpack.i.l.bf16 %v7177_v32 }
 0x9a5   :  { %1839 = vrot.lane.b32.xlu0 %v7921_v10, %s7699_s0  ;;  %v1609_v10 = vmul.f32 1.442695, %v1598_v46 }
 0x9a6   :  { %v1838_v57 = vpop.permute.xlu1 %1837 }
 0x9a7   :  { %7467 = vpow2.f32 %v1609_v10 }
 0x9ac   :  { %1951 = vrot.lane.b32.xlu1 %v7943_v34, %s7698_s29 }
 0x9b0   :  { %1841 = vrot.lane.b32.xlu1 %v7929_v17, %s7699_s0 }
 0x9b1   :  { %v7468_v44 = vpop.eup %7467 }
 0x9b2   :  { %v1626_v37 = vsel %vm610_vm6, %v7468_v44, 0.0 }
 0x9b4   :  { %1945 = vrot.lane.b32.xlu1 %v7943_v34, %s7699_s0 }
 0x9c4   :  { %1618 = vadd.xlane.f32.xlu0 %v1617_v2 }
 0x9c8   :  { %1624 = vadd.xlane.f32.xlu0 %v1623_v56 }
 0x9cc   :  { %1627 = vadd.xlane.f32.xlu0 %v1626_v37 }
 0x9e2   :  { %1941 = vrot.lane.b32.xlu0 %v7933_v25, %s7699_s0 }
 0x9e6   :  { %1943 = vrot.lane.b32.xlu0 %v7935_v26, %s7699_s0 }
 0xa1c   :  { %v1613_v3 = vpop.xlane.xlu0 %1612 }
 0xa1d   :  { %7469 = vrcp.f32 %v1613_v3 }
 0xa20   :  { %v1840_v53 = vpop.permute.xlu0 %1839 }
 0xa21   :  { %v1616_v55 = vpop.xlane.xlu1 %1615 }
 0xa22   :  { %7471 = vrcp.f32 %v1616_v55 }
 0xa27   :  { %v7470_v16 = vpop.eup %7469 }
 0xa28   :  { %v1635_v0 = vmul.f32 %v7470_v16, %v8298_v59  ;;  %v1622_v23 = vpop.xlane.xlu1 %1621  ;;  %v7179_v59 = vunpack.i.h.bf16 %v7177_v32 }
 0xa29   :  { %7473 = vrcp.f32 %v1622_v23 }
 0xa2a   :  { %6513 = vmatmul.mubr.msk.f32.vlgmr.msra.gmra.mrb[48].mxu1 %vm610_vm6, %v1635_v0  ;;  %v7027_v52 = vpack.c.bf16 %v7179_v59, %v7178_v48 }
 0xa2b   :  { %7025 = vmatpush3.bf16.xpose.msk.msra.mxu1 %vm7949_vm4, %v7023_v45  ;;  %6515 = vmatprep.mubr.msk.f32.mxu1 %vm7688_vm0, %v7687_v1 }
 0xa2c   :  { %v7472_v25 = vpop.eup %7471  ;;  %6540 = vmatprep.subr.mxu1 %v7687_v1 }
 0xa2d   :  { %v1636_v26 = vmul.f32 %v7472_v25, %v8302_v9  ;;  %v1952_v9 = vpop.permute.xlu1 %1951 }
 0xa2f   :  { %6516 = vmatmul.mubr.msk.f32.gmra.mrb[50].mxu1 %vm610_vm6, %v1636_v26 }
 0xa30   :  { %6518 = vmatprep.mubr.msk.f32.mxu1 %vm7688_vm0, %v7687_v1 }
 0xa33   :  { %v7474_v36 = vpop.eup %7473  ;;  %6541 = vmatpush3.xpose.msk.msra.mxu1 %vm404_vm3, %v1848_v61 }
 0xa34   :  { %v1638_v50 = vmul.f32 %v7474_v36, %v8307_v38  ;;  %7030 = vmatprep.subr.bf16.mxu1 %v7689_v60 }
 0xa36   :  { %6528 = vmatmul.mubr.msk.f32.vlgmr.msra.gmra.mrb[36].mxu0 %vm610_vm6, %v1638_v50 }
 0xa37   :  { %7029 = vmatpush3.bf16.xpose.msk.msra.mxu0 %vm7949_vm4, %v7027_v52  ;;  %6530 = vmatprep.mubr.msk.f32.mxu0 %vm7688_vm0, %v7687_v1 }
 0xa38   :  { %6555 = vmatprep.subr.mxu0 %v7687_v1 }
 0xa3f   :  { %6556 = vmatpush3.xpose.msk.msra.mxu0 %vm404_vm3, %v1952_v9 }
 0xa40   :  { %7033 = vmatprep.subr.bf16.mxu0 %v7689_v60 }
 0xa51   :  { %v1619_v38 = vpop.xlane.xlu0 %1618 }
 0xa52   :  { %7475 = vrcp.f32 %v1619_v38 }
 0xa55   :  { %v1625_v43 = vpop.xlane.xlu0 %1624 }
 0xa56   :  { %7477 = vrcp.f32 %v1625_v43 }
 0xa59   :  { %v1628_v54 = vpop.xlane.xlu0 %1627 }
 0xa5a   :  { %7479 = vrcp.f32 %v1628_v54 }
 0xa5c   :  { %v7476_v58 = vpop.eup %7475 }
 0xa5d   :  { %v1637_v46 = vmul.f32 %v7476_v58, %v7464_v8  ;;  %v1942_v8 = vpop.permute.xlu0 %1941 }
 0xa5f   :  { %6519 = vmatmul.mubr.msk.f32.gmra.mrb[52].mxu1 %vm610_vm6, %v1637_v46 }
 0xa60   :  { %v7478_v10 = vpop.eup %7477  ;;  %6542 = vmatprep.mubr.msk.f32.mxu1 %vm7688_vm0, %v7687_v1 }
 0xa61   :  { %v1639_v2 = vmul.f32 %v7478_v10, %v7466_v62  ;;  %v1842_v62 = vpop.permute.xlu1 %1841 }
 0xa63   :  { %6531 = vmatmul.mubr.msk.f32.gmra.mrb[38].mxu0 %vm610_vm6, %v1639_v2  ;;  %6543 = vmatmul.mubr.msk.f32.vlgmr.msra.gmra.mrb[54].mxu1 %vm404_vm3, %v1838_v57 }
 0xa64   :  { %v7480_v56 = vpop.eup %7479  ;;  %6533 = vmatprep.mubr.msk.f32.mxu0 %vm7688_vm0, %v7687_v1  ;;  %6545 = vmatprep.mubr.msk.f32.mxu1 %vm7688_vm0, %v7687_v1 }
 0xa65   :  { %v1640_v37 = vmul.f32 %v7480_v56, %v7468_v44  ;;  %v1944_v44 = vpop.permute.xlu0 %1943  ;;  %v1946_v32 = vpop.permute.xlu1 %1945 }
 0xa67   :  { %6534 = vmatmul.mubr.msk.f32.gmra.mrb[40].mxu0 %vm610_vm6, %v1640_v37  ;;  %6546 = vmatmul.mubr.msk.f32.gmra.mrb[56].mxu1 %vm404_vm3, %v1840_v53 }
 0xa68   :  { %6548 = vmatprep.mubr.msk.f32.mxu1 %vm7688_vm0, %v7687_v1  ;;  %6557 = vmatprep.mubr.msk.f32.mxu0 %vm7688_vm0, %v7687_v1 }
 0xa6b   :  { %6549 = vmatmul.mubr.msk.f32.gmra.mrb[58].mxu1 %vm404_vm3, %v1842_v62  ;;  %6558 = vmatmul.mubr.msk.f32.vlgmr.msra.gmra.mrb[42].mxu0 %vm404_vm3, %v1942_v8 }
 0xa6c   :  { %6560 = vmatprep.mubr.msk.f32.mxu0 %vm7688_vm0, %v7687_v1  ;;  %6572 = vmatprep.mubr.msk.f32.mxu1 %vm7688_vm0, %v7687_v1 }
 0xa6f   :  { %6561 = vmatmul.mubr.msk.f32.gmra.mrb[44].mxu0 %vm404_vm3, %v1944_v44 }
 0xa70   :  { %6563 = vmatprep.mubr.msk.f32.mxu0 %vm7688_vm0, %v7687_v1 }
 0xa73   :  { %6564 = vmatmul.mubr.msk.f32.gmra.mrb[46].mxu0 %vm404_vm3, %v1946_v32 }
 0xa74   :  { %6587 = vmatprep.mubr.msk.f32.mxu0 %vm7688_vm0, %v7687_v1 }
 0xafd   :  { %v8381_v61 = vpop.f32.mrb[48].mxu1 }
 0xafe   :  { %v6514_v3 = vpop.f32.mrb[49].mxu1 }
 0xb02   :  { %v8383_v57 = vpop.f32.mrb[50].mxu1 }
 0xb03   :  { %v7195_v55 = vpack.i.bf16 %v8383_v57, %v8381_v61  ;;  %v6517_v5 = vpop.f32.mrb[51].mxu1 }
 0xb09   :  { %v8387_v7 = vpop.f32.mrb[36].mxu0 }
 0xb0a   :  { %v6529_v16 = vpop.f32.mrb[37].mxu0 }
 0xb32   :  { %v8389_v0 = vpop.f32.mrb[52].mxu1 }
 0xb33   :  { %v7210_v23 = vpack.i.bf16 %v8387_v7, %v8389_v0  ;;  %v6520_v45 = vpop.f32.mrb[53].mxu1 }
 0xb36   :  { %v8393_v25 = vpop.f32.mrb[38].mxu0  ;;  %v1927_v26 = vpop.f32.mrb[54].mxu1 }
 0xb37   :  { %v2045_v59 = vmul.f32 0.35355338, %v1927_v26  ;;  %v6532_v48 = vpop.f32.mrb[39].mxu0  ;;  %v6544_v36 = vpop.f32.mrb[55].mxu1 }
 0xb39   :  { %v2051_v50 = vadd.f32 %v2045_v59, %v7989_v49 }
 0xb3a   :  { %v8396_v52 = vpop.f32.mrb[40].mxu0  ;;  %v1932_v9 = vpop.f32.mrb[56].mxu1 }
 0xb3b   :  { %v7225_v53 = vpack.i.bf16 %v8396_v52, %v8393_v25  ;;  %v2046_v38 = vmul.f32 0.35355338, %v1932_v9  ;;  %v6535_v43 = vpop.f32.mrb[41].mxu0  ;;  %v6547_v54 = vpop.f32.mrb[57].mxu1  ;;  %v2057_v58 = vsel %vm610_vm6, %v2051_v50, -inf }
 0xb3c   :  { %2058 = vmax.xlane.f32.xlu0 %v2057_v58 }
 0xb3d   :  { %v2052_v46 = vadd.f32 %v2046_v38, %v7989_v49 }
 0xb3e   :  { %v1937_v10 = vpop.f32.mrb[58].mxu1  ;;  %v2031_v2 = vpop.f32.mrb[42].mxu0 }
 0xb3f   :  { %v2047_v56 = vmul.f32 0.35355338, %v1937_v10  ;;  %v2048_v37 = vmul.f32 0.35355338, %v2031_v2  ;;  %v6550_v8 = vpop.f32.mrb[59].mxu1  ;;  %v6559_v62 = vpop.f32.mrb[43].mxu0 }
 0xb40   :  { %v2060_v44 = vsel %vm610_vm6, %v2052_v46, -inf }
 0xb41   :  { %2061 = vmax.xlane.f32.xlu1 %v2060_v44  ;;  %v2053_v32 = vadd.f32 %v2047_v56, %v7989_v49  ;;  %v2054_v26 = vadd.f32 %v2048_v37, %v7989_v49 }
 0xb42   :  { %v2036_v3 = vpop.f32.mrb[44].mxu0 }
 0xb43   :  { %v2049_v5 = vmul.f32 0.35355338, %v2036_v3  ;;  %v6562_v16 = vpop.f32.mrb[45].mxu0  ;;  %v2063_v45 = vsel %vm610_vm6, %v2053_v32, -inf  ;;  %v2066_v38 = vsel %vm610_vm6, %v2054_v26, -inf }
 0xb44   :  { %2064 = vmax.xlane.f32.xlu0 %v2063_v45 }
 0xb45   :  { %v2055_v48 = vadd.f32 %v2049_v5, %v7989_v49 }
 0xb46   :  { %v2041_v59 = vpop.f32.mrb[46].mxu0 }
 0xb47   :  { %v2050_v36 = vmul.f32 0.35355338, %v2041_v59  ;;  %v6565_v9 = vpop.f32.mrb[47].mxu0  ;;  %v2069_v54 = vsel %vm610_vm6, %v2055_v48, -inf }
 0xb48   :  { %2067 = vmax.xlane.f32.xlu0 %v2066_v38 }
 0xb49   :  { %v2056_v43 = vadd.f32 %v2050_v36, %v7989_v49 }
 0xb4b   :  { %v2072_v58 = vsel %vm610_vm6, %v2056_v43, -inf }
 0xb4c   :  { %2070 = vmax.xlane.f32.xlu0 %v2069_v54  ;;  %2073 = vmax.xlane.f32.xlu1 %v2072_v58 }
 0xbc9   :  { %v2059_v10 = vpop.xlane.xlu0 %2058 }
 0xbca   :  { %v2075_v2 = vsub.f32 %v2051_v50, %v2059_v10 }
 0xbcc   :  { %v2081_v56 = vmul.f32 1.442695, %v2075_v2 }
 0xbce   :  { %7481 = vpow2.f32 %v2081_v56  ;;  %v2062_v37 = vpop.xlane.xlu1 %2061 }
 0xbcf   :  { %v2076_v8 = vsub.f32 %v2052_v46, %v2062_v37 }
 0xbd1   :  { %v2083_v62 = vmul.f32 1.442695, %v2076_v8  ;;  %v2065_v44 = vpop.xlane.xlu0 %2064 }
 0xbd2   :  { %v2077_v3 = vsub.f32 %v2053_v32, %v2065_v44 }
 0xbd3   :  { %7483 = vpow2.f32 %v2083_v62 }
 0xbd4   :  { %v2085_v5 = vmul.f32 1.442695, %v2077_v3 }
 0xbd5   :  { %v2068_v16 = vpop.xlane.xlu0 %2067 }
 0xbd6   :  { %7485 = vpow2.f32 %v2085_v5  ;;  %v2078_v45 = vsub.f32 %v2054_v26, %v2068_v16 }
 0xbd8   :  { %v7482_v59 = vpop.eup %7481  ;;  %v2087_v36 = vmul.f32 1.442695, %v2078_v45 }
 0xbd9   :  { %v2071_v9 = vpop.xlane.xlu0 %2070  ;;  %v2093_v38 = vsel %vm610_vm6, %v7482_v59, 0.0  ;;  %v2074_v37 = vpop.xlane.xlu1 %2073 }
 0xbda   :  { %7487 = vpow2.f32 %v2087_v36  ;;  %v2079_v54 = vsub.f32 %v2055_v48, %v2071_v9  ;;  %2094 = vadd.xlane.f32.xlu0 %v2093_v38  ;;  %v2080_v8 = vsub.f32 %v2056_v43, %v2074_v37 }
 0xbdc   :  { %v2089_v50 = vmul.f32 1.442695, %v2079_v54  ;;  %v2091_v62 = vmul.f32 1.442695, %v2080_v8 }
 0xbdd   :  { %v7484_v58 = vpop.eup %7483 }
 0xbde   :  { %7489 = vpow2.f32 %v2089_v50  ;;  %v2096_v46 = vsel %vm610_vm6, %v7484_v58, 0.0 }
 0xbdf   :  { %2097 = vadd.xlane.f32.xlu1 %v2096_v46  ;;  %7491 = vpow2.f32 %v2091_v62 }
 0xbe0   :  { %v7486_v32 = vpop.eup %7485 }
 0xbe1   :  { %v2099_v10 = vsel %vm610_vm6, %v7486_v32, 0.0 }
 0xbe3   :  { %2100 = vadd.xlane.f32.xlu1 %v2099_v10 }
 0xbe4   :  { %v8414_v2 = vpop.eup %7487 }
 0xbe5   :  { %v2102_v26 = vsel %vm610_vm6, %v8414_v2, 0.0 }
 0xbe6   :  { %2103 = vadd.xlane.f32.xlu0 %v2102_v26 }
 0xbe8   :  { %v8418_v56 = vpop.eup %7489 }
 0xbe9   :  { %v2105_v48 = vsel %vm610_vm6, %v8418_v56, 0.0  ;;  %v7492_v44 = vpop.eup %7491 }
 0xbea   :  { %2106 = vadd.xlane.f32.xlu0 %v2105_v48  ;;  %v2108_v3 = vsel %vm610_vm6, %v7492_v44, 0.0 }
 0xbf4   :  { %2127 = vrot.lane.b32.xlu1 %v7929_v17, %s7700_s30 }
 0xbf8   :  { %7186 = vrot.lane.b32.xlu1 %v7939_v33, %s7700_s30 }
 0xc00   :  { %7181 = vrot.lane.b32.xlu0 %v7925_v15, %s7700_s30 }
 0xc04   :  { %7191 = vrot.lane.b32.xlu0 %v7190_v63, %s9437_s2 }
 0xc1c   :  { %2109 = vadd.xlane.f32.xlu1 %v2108_v3 }
 0xc2d   :  { %2225 = vrot.lane.b32.xlu1 %v7943_v34, %s7700_s30 }
 0xc31   :  { %7196 = vrot.lane.b32.xlu1 %v7195_v55, %s9435_s15 }
 0xc35   :  { %7201 = vrot.lane.b32.xlu1 %v7200_v30, %s9437_s2 }
 0xc67   :  { %v2095_v17 = vpop.xlane.xlu0 %2094 }
 0xc68   :  { %7493 = vrcp.f32 %v2095_v17 }
 0xc6c   :  { %v2098_v15 = vpop.xlane.xlu1 %2097 }
 0xc6d   :  { %7495 = vrcp.f32 %v2098_v15 }
 0xc70   :  { %v2101_v33 = vpop.xlane.xlu1 %2100 }
 0xc71   :  { %7497 = vrcp.f32 %v2101_v33 }
 0xc72   :  { %v7494_v22 = vpop.eup %7493 }
 0xc73   :  { %v2104_v47 = vpop.xlane.xlu0 %2103  ;;  %v2117_v27 = vmul.f32 %v7494_v22, %v7482_v59 }
 0xc74   :  { %v2128_v12 = vpop.permute.xlu1 %2127  ;;  %7499 = vrcp.f32 %v2104_v47 }
 0xc77   :  { %v2107_v63 = vpop.xlane.xlu0 %2106  ;;  %v7496_v30 = vpop.eup %7495 }
 0xc78   :  { %v7187_v43 = vpop.permute.xlu1 %7186  ;;  %v2118_v36 = vmul.f32 %v7496_v30, %v7484_v58  ;;  %7501 = vrcp.f32 %v2107_v63 }
 0xc79   :  { %v7189_v34 = vunpack.i.h.bf16 %v7187_v43  ;;  %v7188_v5 = vunpack.i.l.bf16 %v7187_v43 }
 0xc7b   :  { %v7034_v16 = vpack.c.bf16 %v7189_v34, %v7188_v5  ;;  %v7182_v45 = vpop.permute.xlu0 %7181  ;;  %v7498_v9 = vpop.eup %7497 }
 0xc7c   :  { %v7184_v61 = vunpack.i.h.bf16 %v7182_v45  ;;  %v7183_v57 = vunpack.i.l.bf16 %v7182_v45  ;;  %v2119_v38 = vmul.f32 %v7498_v9, %v7486_v32 }
 0xc7d   :  { %7035 = vmatpush3.bf16.msra.mxu0 %v7034_v16 }
 0xc7e   :  { %v7031_v55 = vpack.c.bf16 %v7184_v61, %v7183_v57  ;;  %6585 = vmatprep.subr.mxu0 %v7687_v1  ;;  %v7500_v54 = vpop.eup %7499 }
 0xc7f   :  { %v2120_v50 = vmul.f32 %v7500_v54, %v8414_v2  ;;  %v7369_v2 = vld [vmem:[%s9424_s6] sm:$0xff]  }
 0xc80   :  { %7032 = vmatpush3.bf16.msra.mxu1 %v7031_v55 }
 0xc81   :  { %6570 = vmatprep.subr.mxu1 %v7687_v1 }
 0xc82   :  { %v7502_v46 = vpop.eup %7501 }
 0xc83   :  { %v2121_v32 = vmul.f32 %v7502_v46, %v8418_v56  ;;  %v7370_v56 = vld [vmem:[%s9424_s6 + $0x8] sm:$0xff]  }
 0xc84   :  { %6571 = vmatpush3.msra.mxu1 %v2128_v12 }
 0xc85   :  { %6573 = vmatmul.mubr.msk.f32.vlgmr.msra.gmra.mrb[60].mxu1 %vm610_vm6, %v2117_v27  ;;  %6596 = vmatprep.subr.bf16.mxu1 %v7687_v1 }
 0xc86   :  { %6575 = vmatprep.mubr.msk.f32.mxu1 %vm7688_vm0, %v7687_v1  ;;  %6597 = vmatpush3.bf16.msra.mxu1 %v7369_v2 }
 0xc87   :  { %6598 = vmatprep.subr.bf16.mxu1 %v7687_v1 }
 0xc89   :  { %6576 = vmatmul.mubr.msk.f32.gmra.mrb[62].mxu1 %vm610_vm6, %v2118_v36 }
 0xc8a   :  { %6578 = vmatprep.mubr.msk.f32.mxu1 %vm7688_vm0, %v7687_v1  ;;  %6599 = vmatpush3.bf16.msra.mxu1 %v7370_v56 }
 0xc8b   :  { %6628 = vmatprep.subr.bf16.mxu1 %v7687_v1 }
 0xc8d   :  { %6579 = vmatmul.mubr.msk.f32.gmra.mrb[64].mxu1 %vm610_vm6, %v2119_v38 }
 0xc8e   :  { %6600 = vmatprep.mubr.msk.bf16.mxu1 %vm7688_vm0, %v7687_v1 }
 0xca9   :  { %v2110_v59 = vpop.xlane.xlu1 %2109 }
 0xcaa   :  { %7503 = vrcp.f32 %v2110_v59 }
 0xcad   :  { %v2226_v58 = vpop.permute.xlu1 %2225 }
 0xcae   :  { %6586 = vmatpush3.msra.mxu0 %v2226_v58 }
 0xcaf   :  { %6588 = vmatmul.mubr.msk.f32.vlgmr.msra.gmra.mrb[48].mxu0 %vm610_vm6, %v2120_v50  ;;  %6612 = vmatprep.subr.bf16.mxu0 %v7687_v1 }
 0xcb0   :  { %6590 = vmatprep.mubr.msk.f32.mxu0 %vm7688_vm0, %v7687_v1 }
 0xcb1   :  { %v7197_v40 = vpop.permute.xlu1 %7196 }
 0xcb2   :  { %v7199_v34 = vunpack.i.h.bf16 %v7197_v40  ;;  %v7198_v5 = vunpack.i.l.bf16 %v7197_v40 }
 0xcb3   :  { %6591 = vmatmul.mubr.msk.f32.gmra.mrb[50].mxu0 %vm610_vm6, %v2121_v32 }
 0xcb4   :  { %v7504_v10 = vpop.eup %7503  ;;  %6593 = vmatprep.mubr.msk.f32.mxu0 %vm7688_vm0, %v7687_v1 }
 0xcb5   :  { %v2122_v26 = vmul.f32 %v7504_v10, %v7492_v44 }
 0xcb7   :  { %6594 = vmatmul.mubr.msk.f32.gmra.mrb[52].mxu0 %vm610_vm6, %v2122_v26 }
 0xcb8   :  { %6616 = vmatprep.mubr.msk.bf16.mxu0 %vm7688_vm0, %v7687_v1 }
 0xd58   :  { %v2207_v48 = vpop.f32.mrb[60].mxu1 }
 0xd59   :  { %v6574_v37 = vpop.f32.mrb[61].mxu1 }
 0xd5c   :  { %v2212_v8 = vpop.f32.mrb[62].mxu1 }
 0xd5d   :  { %v7205_v62 = vpack.i.bf16 %v2212_v8, %v2207_v48  ;;  %v6577_v44 = vpop.f32.mrb[63].mxu1 }
 0xd5f   :  { %7206 = vrot.lane.b32.xlu0 %v7205_v62, %s9433_s20 }
 0xd60   :  { %v2217_v3 = vpop.f32.mrb[64].mxu1 }
 0xd61   :  { %v6580_v15 = vpop.f32.mrb[65].mxu1 }
 0xd63   :  { %7211 = vrot.lane.b32.xlu0 %v7210_v23, %s9435_s15  ;;  %v7192_v23 = vpop.permute.xlu0 %7191 }
 0xd64   :  { %v7194_v42 = vunpack.i.h.bf16 %v7192_v23 }
 0xd66   :  { %v2392_v45 = vsel %vm404_vm3, %v8113_v6, %v7194_v42  ;;  %v7202_v6 = vpop.permute.xlu1 %7201 }
 0xd67   :  { %7216 = vrot.lane.b32.xlu0 %v7215_v41, %s9437_s2  ;;  %v7193_v41 = vunpack.i.l.bf16 %v7192_v23  ;;  %v2399_v61 = vsel %vm2397_vm7, %v2392_v45, %v7199_v34  ;;  %v7204_v36 = vunpack.i.h.bf16 %v7202_v6 }
 0xd69   :  { %v2391_v25 = vsel %vm404_vm3, %v8111_v4, %v7193_v41  ;;  %v7203_v4 = vunpack.i.l.bf16 %v7202_v6  ;;  %v2394_v54 = vsel %vm404_vm3, %v8115_v51, %v7204_v36 }
 0xd6a   :  { %v2398_v57 = vsel %vm2397_vm7, %v2391_v25, %v7198_v5 }
 0xd6b   :  { %v2393_v50 = vsel %vm404_vm3, %v8117_v19, %v7203_v4 }
 0xd82   :  { %v2305_v17 = vpop.f32.mrb[48].mxu0 }
 0xd83   :  { %v7220_v33 = vpack.i.bf16 %v2305_v17, %v2217_v3  ;;  %v6589_v47 = vpop.f32.mrb[49].mxu0 }
 0xd85   :  { %7221 = vrot.lane.b32.xlu1 %v7220_v33, %s9433_s20 }
 0xd86   :  { %v2310_v12 = vpop.f32.mrb[50].mxu0 }
 0xd87   :  { %v6592_v63 = vpop.f32.mrb[51].mxu0 }
 0xd89   :  { %7226 = vrot.lane.b32.xlu1 %v7225_v53, %s9435_s15 }
 0xd8a   :  { %v2315_v43 = vpop.f32.mrb[52].mxu0 }
 0xd8b   :  { %v7230_v7 = vpack.i.bf16 %v2315_v43, %v2310_v12  ;;  %v6595_v0 = vpop.f32.mrb[53].mxu0 }
 0xd8d   :  { %7231 = vrot.lane.b32.xlu0 %v7230_v7, %s9433_s20 }
 0xdd1   :  { %v7207_v16 = vpop.permute.xlu0 %7206 }
 0xdd2   :  { %v7209_v52 = vunpack.i.h.bf16 %v7207_v16  ;;  %v7208_v53 = vunpack.i.l.bf16 %v7207_v16 }
 0xdd4   :  { %v2404_v55 = vsel %vm610_vm6, %v2398_v57, %v7208_v53  ;;  %v2405_v22 = vsel %vm610_vm6, %v2399_v61, %v7209_v52 }
 0xdd5   :  { %v2410_v27 = vpack.c.bf16 %v2405_v22, %v2404_v55  ;;  %v7212_v30 = vpop.permute.xlu0 %7211 }
 0xdd6   :  { %v7214_v9 = vunpack.i.h.bf16 %v7212_v30  ;;  %v7213_v38 = vunpack.i.l.bf16 %v7212_v30 }
 0xdd7   :  { %6601 = vmatmul.mubr.msk.bf16.vlgmr.msra.gmra.mrb[68].mxu1 %vm183_vm2, %v2410_v27 }
 0xdd8   :  { %6604 = vmatprep.mubr.msk.bf16.mxu1 %vm7688_vm0, %v7687_v1  ;;  %v2400_v32 = vsel %vm2397_vm7, %v2393_v50, %v7213_v38  ;;  %v2401_v10 = vsel %vm2397_vm7, %v2394_v54, %v7214_v9 }
 0xdd9   :  { %v7217_v26 = vpop.permute.xlu0 %7216 }
 0xdda   :  { %v7219_v8 = vunpack.i.h.bf16 %v7217_v26  ;;  %v7218_v62 = vunpack.i.l.bf16 %v7217_v26 }
 0xddc   :  { %v2396_v3 = vsel %vm404_vm3, %v8122_v35, %v7219_v8  ;;  %v2395_v15 = vsel %vm404_vm3, %v8119_v21, %v7218_v62  ;;  %v5900_v35 = vld [vmem:[%s9425_s7] ss:$0 sm:$0xff] }
 0xdf7   :  { %v7222_v59 = vpop.permute.xlu1 %7221 }
 0xdf8   :  { %v7224_v58 = vunpack.i.h.bf16 %v7222_v59  ;;  %v7223_v46 = vunpack.i.l.bf16 %v7222_v59 }
 0xdfa   :  { %v2407_v2 = vsel %vm610_vm6, %v2401_v10, %v7224_v58  ;;  %v2406_v56 = vsel %vm610_vm6, %v2400_v32, %v7223_v46 }
 0xdfb   :  { %v7227_v48 = vpop.permute.xlu1 %7226  ;;  %v6059_v37 = vpack.c.bf16 %v2407_v2, %v2406_v56 }
 0xdfc   :  { %v7229_v44 = vunpack.i.h.bf16 %v7227_v48  ;;  %v7228_v51 = vunpack.i.l.bf16 %v7227_v48 }
 0xdfd   :  { %6605 = vmatmul.mubr.msk.bf16.gmra.mrb[72].mxu1 %vm183_vm2, %v6059_v37 }
 0xdfe   :  { %6608 = vmatprep.mubr.msk.bf16.mxu1 %vm7688_vm0, %v7687_v1  ;;  %v2403_v47 = vsel %vm2397_vm7, %v2396_v3, %v7229_v44  ;;  %v2402_v12 = vsel %vm2397_vm7, %v2395_v15, %v7228_v51 }
 0xdff   :  { %v7232_v19 = vpop.permute.xlu0 %7231 }
 0xe00   :  { %v7234_v17 = vunpack.i.h.bf16 %v7232_v19  ;;  %v7233_v33 = vunpack.i.l.bf16 %v7232_v19  ;;  %v7371_v19 = vld [vmem:[%s9426_s8] sm:$0xff]  }
 0xe01   :  { %6613 = vmatpush3.bf16.msra.mxu0 %v7371_v19 }
 0xe02   :  { %v2409_v63 = vsel %vm610_vm6, %v2403_v47, %v7234_v17  ;;  %v2408_v43 = vsel %vm610_vm6, %v2402_v12, %v7233_v33  ;;  %6614 = vmatprep.subr.bf16.mxu0 %v7687_v1  ;;  %v7372_v47 = vld [vmem:[%s9426_s8 + $0x8] sm:$0xff]  }
 0xe03   :  { %v2413_v7 = vpack.c.bf16 %v2409_v63, %v2409_v63  ;;  %v2412_v0 = vpack.c.bf16 %v2408_v43, %v2407_v2 }
 0xe05   :  { %v2423_v23 = vunpack.c.l.b16 %v2413_v7  ;;  %v2422_v40 = vunpack.c.h.b16 %v2412_v0  ;;  %6615 = vmatpush3.bf16.msra.mxu0 %v7372_v47 }
 0xe06   :  { %6656 = vmatprep.subr.bf16.mxu0 %v7687_v1 }
 0xe07   :  { %v2430_v42 = vpack.c.b16 %v2423_v23, %v2422_v40 }
 0xe09   :  { %6609 = vmatmul.mubr.msk.bf16.gmra.mrb[76].mxu1 %vm183_vm2, %v2430_v42 }
 0xe0a   :  { %6644 = vmatprep.mubr.msk.bf16.mxu1 %vm7688_vm0, %v7687_v1 }
 0xeaa   :  { %v2486_v21 = vpop.f32.mrb[68].mxu1 }
 0xeab   :  { %v2509_v41 = vadd.f32 %v2486_v21, %v7822_v11  ;;  %v6602_v34 = vpop.f32.mrb[69].mxu1 }
 0xeac   :  { %v2489_v5 = vpop.f32.mrb[70].mxu1 }
 0xead   :  { %v8527_v16 = vadd.f32 %v5900_v35, %v2509_v41  ;;  %v2510_v45 = vadd.f32 %v2489_v5, %v7824_v14  ;;  %v6603_v25 = vpop.f32.mrb[71].mxu1 }
 0xeaf   :  { %v8530_v52 = vadd.f32 %v5900_v35, %v2510_v45  ;;  %v2528_v53 = vsel %vm183_vm2, %v8527_v16, 0.0 }
 0xeb0   :  { %2529 = vadd.xlane.f32.xlu1 %v2528_v53 }
 0xeb1   :  { %v2531_v61 = vsel %vm183_vm2, %v8530_v52, 0.0 }
 0xeb2   :  { %2532 = vadd.xlane.f32.xlu0 %v2531_v61 }
 0xed0   :  { %v2494_v57 = vpop.f32.mrb[72].mxu1 }
 0xed1   :  { %v2511_v11 = vadd.f32 %v2494_v57, %v7833_v20  ;;  %v6606_v55 = vpop.f32.mrb[73].mxu1 }
 0xed2   :  { %v2497_v22 = vpop.f32.mrb[74].mxu1 }
 0xed3   :  { %v8537_v27 = vadd.f32 %v5900_v35, %v2511_v11  ;;  %v2512_v14 = vadd.f32 %v2497_v22, %v7837_v24  ;;  %v6607_v6 = vpop.f32.mrb[75].mxu1  ;;  %v2608_v22 = vsub.s32 2, %v7889_v13 }
 0xed4   :  { %v7661_v6 = vld [vmem:[%s9421_s3] sm:$0xf] }
 0xed5   :  { %v8540_v30 = vadd.f32 %v5900_v35, %v2512_v14  ;;  %v2534_v36 = vsel %vm183_vm2, %v8537_v27, 0.0  ;;  %v2618_v14 = vsub.s32 3, %v7889_v13 }
 0xed6   :  { %2535 = vadd.xlane.f32.xlu0 %v2534_v36  ;;  %v2609_v36 = vrot.slane %v7661_v6, %v2608_v22 }
 0xed7   :  { %v2537_v4 = vsel %vm183_vm2, %v8540_v30, 0.0 }
 0xeda   :  { %2538 = vadd.xlane.f32.xlu0 %v2537_v4 }
 0xedc   :  { %v2502_v9 = vpop.f32.mrb[76].mxu1 }
 0xedd   :  { %v2513_v20 = vadd.f32 %v2502_v9, %v7841_v28  ;;  %v6610_v38 = vpop.f32.mrb[77].mxu1 }
 0xede   :  { %v2505_v59 = vpop.f32.mrb[78].mxu1  ;;  %v2619_v38 = vrot.slane %v7661_v6, %v2618_v14  ;;  %v7376_v6 = vld [vmem:[%s9428_s10 + $0x18] sm:$0xff]  }
 0xedf   :  { %v8547_v54 = vadd.f32 %v5900_v35, %v2513_v20  ;;  %v2514_v24 = vadd.f32 %v2505_v59, %v7843_v31  ;;  %v6611_v50 = vpop.f32.mrb[79].mxu1 }
 0xee1   :  { %v8550_v58 = vadd.f32 %v5900_v35, %v2514_v24  ;;  %v2540_v46 = vsel %vm183_vm2, %v8547_v54, 0.0 }
 0xee2   :  { %2541 = vadd.xlane.f32.xlu1 %v2540_v46 }
 0xee3   :  { %v2543_v32 = vsel %vm183_vm2, %v8550_v58, 0.0 }
 0xee4   :  { %2544 = vadd.xlane.f32.xlu0 %v2543_v32 }
 0xf3d   :  { %v2530_v10 = vpop.xlane.xlu1 %2529 }
 0xf3e   :  { %v2546_v26 = vmul.f32 0.03125, %v2530_v10 }
 0xf3f   :  { %v2533_v28 = vpop.xlane.xlu0 %2532 }
 0xf40   :  { %v2552_v2 = vsub.f32 %v8527_v16, %v2546_v26  ;;  %v2547_v56 = vmul.f32 0.03125, %v2533_v28 }
 0xf42   :  { %v2553_v48 = vsub.f32 %v8530_v52, %v2547_v56  ;;  %v2558_v31 = vmul.f32 %v2552_v2, %v2552_v2 }
 0xf44   :  { %v2564_v37 = vsel %vm183_vm2, %v2558_v31, 0.0  ;;  %v2559_v8 = vmul.f32 %v2553_v48, %v2553_v48 }
 0xf45   :  { %2565 = vadd.xlane.f32.xlu1 %v2564_v37 }
 0xf46   :  { %v2567_v62 = vsel %vm183_vm2, %v2559_v8, 0.0 }
 0xf47   :  { %2568 = vadd.xlane.f32.xlu0 %v2567_v62 }
 0xf63   :  { %v2536_v44 = vpop.xlane.xlu0 %2535 }
 0xf64   :  { %v2548_v51 = vmul.f32 0.03125, %v2536_v44 }
 0xf66   :  { %v8564_v3 = vsub.f32 %v8537_v27, %v2548_v51 }
 0xf67   :  { %v2539_v15 = vpop.xlane.xlu0 %2538 }
 0xf68   :  { %v2549_v17 = vmul.f32 0.03125, %v2539_v15  ;;  %v2560_v33 = vmul.f32 %v8564_v3, %v8564_v3 }
 0xf6a   :  { %v8573_v12 = vsub.f32 %v8540_v30, %v2549_v17  ;;  %v2570_v63 = vsel %vm183_vm2, %v2560_v33, 0.0 }
 0xf6b   :  { %2571 = vadd.xlane.f32.xlu1 %v2570_v63 }
 0xf6c   :  { %v2561_v43 = vmul.f32 %v8573_v12, %v8573_v12 }
 0xf6e   :  { %v2573_v7 = vsel %vm183_vm2, %v2561_v43, 0.0 }
 0xf6f   :  { %v2542_v0 = vpop.xlane.xlu1 %2541  ;;  %2574 = vadd.xlane.f32.xlu0 %v2573_v7 }
 0xf70   :  { %v2550_v23 = vmul.f32 0.03125, %v2542_v0 }
 0xf71   :  { %v2545_v40 = vpop.xlane.xlu0 %2544 }
 0xf72   :  { %v2556_v42 = vsub.f32 %v8547_v54, %v2550_v23  ;;  %v2551_v21 = vmul.f32 0.03125, %v2545_v40 }
 0xf74   :  { %v2557_v35 = vsub.f32 %v8550_v58, %v2551_v21  ;;  %v2562_v41 = vmul.f32 %v2556_v42, %v2556_v42 }
 0xf76   :  { %v2576_v34 = vsel %vm183_vm2, %v2562_v41, 0.0  ;;  %v2563_v5 = vmul.f32 %v2557_v35, %v2557_v35 }
 0xf77   :  { %2577 = vadd.xlane.f32.xlu1 %v2576_v34 }
 0xf78   :  { %v2579_v45 = vsel %vm183_vm2, %v2563_v5, 0.0 }
 0xf79   :  { %2580 = vadd.xlane.f32.xlu0 %v2579_v45 }
 0xfd2   :  { %v2566_v25 = vpop.xlane.xlu1 %2565 }
 0xfd3   :  { %v2582_v53 = vmul.f32 0.03125, %v2566_v25 }
 0xfd4   :  { %v2569_v61 = vpop.xlane.xlu0 %2568 }
 0xfd5   :  { %v2588_v57 = vadd.f32 1e-05, %v2582_v53  ;;  %v2583_v11 = vmul.f32 0.03125, %v2569_v61 }
 0xfd7   :  { %7505 = vrsqrt.f32 %v2588_v57  ;;  %v2589_v55 = vadd.f32 1e-05, %v2583_v11 }
 0xfd9   :  { %7507 = vrsqrt.f32 %v2589_v55  ;;  %v7375_v55 = vld [vmem:[%s9428_s10 + $0x10] sm:$0xff]  }
 0xfe1   :  { %v7506_v4 = vpop.eup %7505 }
 0xfe2   :  { %v2600_v9 = vmul.f32 %v7506_v4, %v2552_v2  ;;  %v7378_v4 = vld [vmem:[%s9428_s10 + $0x28] sm:$0xff]  }
 0xfe3   :  { %v7508_v20 = vpop.eup %7507 }
 0xfe4   :  { %v2610_v59 = vmul.f32 %v2609_v36, %v2600_v9  ;;  %v2601_v24 = vmul.f32 %v7508_v20, %v2553_v48  ;;  %v7379_v9 = vld [vmem:[%s9428_s10 + $0x30] sm:$0xff]   ;;  %v7380_v20 = vld [vmem:[%s9428_s10 + $0x38] sm:$0xff]  }
 0xfe6   :  { %v2611_v50 = vmul.f32 %v2609_v36, %v2601_v24  ;;  %v2620_v46 = vadd.f32 %v2619_v38, %v2610_v59 }
 0xfe8   :  { %v2621_v32 = vadd.f32 %v2619_v38, %v2611_v50 }
 0xfea   :  { %v2626_v10 = vpack.c.bf16 %v2621_v32, %v2620_v46 }
 0xfec   :  { %6617 = vmatmul.mubr.msk.bf16.vlgmr.msra.gmra.mrb[56].mxu0 %vm183_vm2, %v2626_v10 }
 0xfed   :  { %6620 = vmatprep.mubr.msk.bf16.mxu0 %vm7688_vm0, %v7687_v1 }
 0xff8   :  { %v2572_v26 = vpop.xlane.xlu1 %2571 }
 0xff9   :  { %v2584_v28 = vmul.f32 0.03125, %v2572_v26 }
 0xffb   :  { %v2590_v56 = vadd.f32 1e-05, %v2584_v28 }
 0xffc   :  { %v2575_v31 = vpop.xlane.xlu0 %2574 }
 0xffd   :  { %7509 = vrsqrt.f32 %v2590_v56  ;;  %v2585_v2 = vmul.f32 0.03125, %v2575_v31 }
 0xfff   :  { %v2591_v37 = vadd.f32 1e-05, %v2585_v2 }
0x1001   :  { %7511 = vrsqrt.f32 %v2591_v37 }
0x1004   :  { %v2578_v8 = vpop.xlane.xlu1 %2577 }
0x1005   :  { %v2586_v62 = vmul.f32 0.03125, %v2578_v8 }
0x1006   :  { %v2581_v48 = vpop.xlane.xlu0 %2580 }
0x1007   :  { %v7510_v44 = vpop.eup %7509  ;;  %v2592_v51 = vadd.f32 1e-05, %v2586_v62  ;;  %v2587_v19 = vmul.f32 0.03125, %v2581_v48 }
0x1008   :  { %v2602_v15 = vmul.f32 %v7510_v44, %v8564_v3 }
0x1009   :  { %7513 = vrsqrt.f32 %v2592_v51  ;;  %v2593_v17 = vadd.f32 1e-05, %v2587_v19 }
0x100a   :  { %v2612_v63 = vmul.f32 %v2609_v36, %v2602_v15 }
0x100b   :  { %v7512_v33 = vpop.eup %7511  ;;  %7515 = vrsqrt.f32 %v2593_v17 }
0x100c   :  { %v2603_v47 = vmul.f32 %v7512_v33, %v8573_v12  ;;  %v2622_v7 = vadd.f32 %v2619_v38, %v2612_v63 }
0x100e   :  { %v2613_v43 = vmul.f32 %v2609_v36, %v2603_v47 }
0x1010   :  { %v2623_v0 = vadd.f32 %v2619_v38, %v2613_v43 }
0x1012   :  { %v6060_v23 = vpack.c.bf16 %v2623_v0, %v2622_v7 }
0x1013   :  { %v7514_v40 = vpop.eup %7513 }
0x1014   :  { %v2604_v21 = vmul.f32 %v7514_v40, %v2556_v42  ;;  %6621 = vmatmul.mubr.msk.bf16.gmra.mrb[60].mxu0 %vm183_vm2, %v6060_v23  ;;  %v7373_v42 = vld [vmem:[%s9428_s10] sm:$0xff]  }
0x1015   :  { %v7516_v41 = vpop.eup %7515  ;;  %6624 = vmatprep.mubr.msk.bf16.mxu0 %vm7688_vm0, %v7687_v1  ;;  %6629 = vmatpush3.bf16.msra.mxu1 %v7373_v42 }
0x1016   :  { %v2605_v3 = vmul.f32 %v7516_v41, %v2557_v35  ;;  %v2614_v34 = vmul.f32 %v2609_v36, %v2604_v21  ;;  %6630 = vmatprep.subr.bf16.mxu1 %v7687_v1  ;;  %v7374_v35 = vld [vmem:[%s9428_s10 + $0x8] sm:$0xff]  }
0x1018   :  { %v2615_v5 = vmul.f32 %v2609_v36, %v2605_v3  ;;  %v2624_v45 = vadd.f32 %v2619_v38, %v2614_v34  ;;  %v7377_v36 = vld [vmem:[%s9428_s10 + $0x20] sm:$0xff]  }
0x1019   :  { %6631 = vmatpush3.bf16.msra.mxu1 %v7374_v35 }
0x101a   :  { %v2625_v25 = vadd.f32 %v2619_v38, %v2615_v5  ;;  %v2628_v53 = vpack.c.bf16 %v2624_v45, %v2623_v0  ;;  %6632 = vmatprep.subr.bf16.mxu1 %v7687_v1  ;;  %v5907_v38 = vld [vmem:[%s9427_s9] ss:$0 sm:$0xff] }
0x101c   :  { %v2629_v12 = vpack.c.bf16 %v2625_v25, %v2625_v25  ;;  %v2638_v61 = vunpack.c.h.b16 %v2628_v53 }
0x101d   :  { %6633 = vmatpush3.bf16.msra.mxu1 %v7375_v55 }
0x101e   :  { %v2639_v57 = vunpack.c.l.b16 %v2629_v12  ;;  %6634 = vmatprep.subr.bf16.mxu1 %v7687_v1 }
0x1020   :  { %v2646_v11 = vpack.c.b16 %v2639_v57, %v2638_v61 }
0x1021   :  { %6635 = vmatpush3.bf16.msra.mxu1 %v7376_v6 }
0x1022   :  { %6625 = vmatmul.mubr.msk.bf16.gmra.mrb[64].mxu0 %vm183_vm2, %v2646_v11  ;;  %6636 = vmatprep.subr.bf16.mxu1 %v7687_v1 }
0x1023   :  { %6660 = vmatprep.mubr.msk.bf16.mxu0 %vm7688_vm0, %v7687_v1 }
0x1025   :  { %6637 = vmatpush3.bf16.msra.mxu1 %v7377_v36 }
0x1026   :  { %6638 = vmatprep.subr.bf16.mxu1 %v7687_v1 }
0x1029   :  { %6639 = vmatpush3.bf16.msra.mxu1 %v7378_v4 }
0x102a   :  { %6640 = vmatprep.subr.bf16.mxu1 %v7687_v1 }
0x102d   :  { %6641 = vmatpush3.bf16.msra.mxu1 %v7379_v9 }
0x102e   :  { %6642 = vmatprep.subr.bf16.mxu1 %v7687_v1 }
0x1031   :  { %6643 = vmatpush3.bf16.msra.mxu1 %v7380_v20 }
0x1032   :  { %7040 = vmatprep.subr.bf16.mxu1 %v7689_v60 }
0x10bf   :  { %v2702_v59 = vpop.f32.mrb[56].mxu0 }
0x10c0   :  { %v2732_v24 = vadd.f32 %v5907_v38, %v2702_v59  ;;  %v6618_v50 = vpop.f32.mrb[57].mxu0 }
0x10c1   :  { %v2705_v46 = vpop.f32.mrb[58].mxu0 }
0x10c2   :  { %v2744_v32 = vmul.f32 0.044715, %v2732_v24  ;;  %v2733_v10 = vadd.f32 %v5907_v38, %v2705_v46  ;;  %v6619_v26 = vpop.f32.mrb[59].mxu0  ;;  %v2738_v17 = vmul.f32 0.5, %v2732_v24 }
0x10c4   :  { %v2750_v28 = vmul.f32 %v2744_v32, %v2732_v24  ;;  %v2745_v56 = vmul.f32 0.044715, %v2733_v10  ;;  %v2739_v33 = vmul.f32 0.5, %v2733_v10 }
0x10c6   :  { %v2756_v31 = vmul.f32 %v2750_v28, %v2732_v24  ;;  %v2751_v2 = vmul.f32 %v2745_v56, %v2733_v10 }
0x10c8   :  { %v2762_v37 = vadd.f32 %v2756_v31, %v2732_v24  ;;  %v2757_v8 = vmul.f32 %v2751_v2, %v2733_v10 }
0x10ca   :  { %v2768_v62 = vmul.f32 0.7978846, %v2762_v37  ;;  %v2763_v48 = vadd.f32 %v2757_v8, %v2733_v10 }
0x10cc   :  { %7517 = vtanh.f32 %v2768_v62  ;;  %v2769_v44 = vmul.f32 0.7978846, %v2763_v48 }
0x10ce   :  { %7519 = vtanh.f32 %v2769_v44 }
0x10d6   :  { %v7518_v51 = vpop.eup %7517 }
0x10d7   :  { %v2780_v19 = vadd.f32 1.0, %v7518_v51 }
0x10d8   :  { %v7520_v15 = vpop.eup %7519 }
0x10d9   :  { %v2781_v47 = vadd.f32 1.0, %v7520_v15  ;;  %v2786_v63 = vmul.f32 %v2780_v19, %v2738_v17 }
0x10db   :  { %v2787_v43 = vmul.f32 %v2781_v47, %v2739_v33 }
0x10dd   :  { %v2792_v7 = vpack.c.bf16 %v2787_v43, %v2786_v63 }
0x10df   :  { %6645 = vmatmul.mubr.bf16.vlgmr.msra.gmra.mrb[80].mxu1 %v2792_v7 }
0x10e0   :  { %6648 = vmatprep.mubr.msk.bf16.mxu1 %vm7688_vm0, %v7687_v1 }
0x10e7   :  { %v2710_v0 = vpop.f32.mrb[60].mxu0 }
0x10e8   :  { %v2734_v23 = vadd.f32 %v5907_v38, %v2710_v0  ;;  %v6622_v40 = vpop.f32.mrb[61].mxu0 }
0x10e9   :  { %v2713_v21 = vpop.f32.mrb[62].mxu0 }
0x10ea   :  { %v2746_v41 = vmul.f32 0.044715, %v2734_v23  ;;  %v2735_v3 = vadd.f32 %v5907_v38, %v2713_v21  ;;  %v6623_v34 = vpop.f32.mrb[63].mxu0  ;;  %v2740_v37 = vmul.f32 0.5, %v2734_v23 }
0x10eb   :  { %v5917_v34 = vld [vmem:[%s9429_s11] ss:$0 sm:$0xff] }
0x10ec   :  { %v2752_v5 = vmul.f32 %v2746_v41, %v2734_v23  ;;  %v2747_v45 = vmul.f32 0.044715, %v2735_v3  ;;  %v2741_v8 = vmul.f32 0.5, %v2735_v3 }
0x10ee   :  { %v2758_v25 = vmul.f32 %v2752_v5, %v2734_v23  ;;  %v2753_v53 = vmul.f32 %v2747_v45, %v2735_v3 }
0x10f0   :  { %v2759_v12 = vmul.f32 %v2753_v53, %v2735_v3  ;;  %v2764_v61 = vadd.f32 %v2758_v25, %v2734_v23 }
0x10f2   :  { %v2765_v57 = vadd.f32 %v2759_v12, %v2735_v3  ;;  %v2770_v11 = vmul.f32 0.7978846, %v2764_v61 }
0x10f4   :  { %v2771_v42 = vmul.f32 0.7978846, %v2765_v57  ;;  %7521 = vtanh.f32 %v2770_v11 }
0x10f5   :  { %v2718_v35 = vpop.f32.mrb[64].mxu0 }
0x10f6   :  { %v2736_v55 = vadd.f32 %v5907_v38, %v2718_v35  ;;  %v6626_v6 = vpop.f32.mrb[65].mxu0  ;;  %7523 = vtanh.f32 %v2771_v42 }
0x10f7   :  { %v2721_v36 = vpop.f32.mrb[66].mxu0 }
0x10f8   :  { %v2748_v4 = vmul.f32 0.044715, %v2736_v55  ;;  %v2737_v9 = vadd.f32 %v5907_v38, %v2721_v36  ;;  %v6627_v20 = vpop.f32.mrb[67].mxu0  ;;  %v2742_v15 = vmul.f32 0.5, %v2736_v55 }
0x10fa   :  { %v2754_v59 = vmul.f32 %v2748_v4, %v2736_v55  ;;  %v2749_v24 = vmul.f32 0.044715, %v2737_v9  ;;  %v2743_v47 = vmul.f32 0.5, %v2737_v9 }
0x10fc   :  { %v2760_v50 = vmul.f32 %v2754_v59, %v2736_v55  ;;  %v2755_v46 = vmul.f32 %v2749_v24, %v2737_v9 }
0x10fe   :  { %v7522_v32 = vpop.eup %7521  ;;  %v2766_v10 = vadd.f32 %v2760_v50, %v2736_v55  ;;  %v2761_v26 = vmul.f32 %v2755_v46, %v2737_v9 }
0x10ff   :  { %v2782_v28 = vadd.f32 1.0, %v7522_v32 }
0x1100   :  { %v7524_v56 = vpop.eup %7523  ;;  %v2772_v31 = vmul.f32 0.7978846, %v2766_v10  ;;  %v2767_v2 = vadd.f32 %v2761_v26, %v2737_v9 }
0x1101   :  { %v2783_v62 = vadd.f32 1.0, %v7524_v56  ;;  %v2788_v44 = vmul.f32 %v2782_v28, %v2740_v37 }
0x1102   :  { %v2773_v48 = vmul.f32 0.7978846, %v2767_v2  ;;  %7525 = vtanh.f32 %v2772_v31 }
0x1103   :  { %v2789_v51 = vmul.f32 %v2783_v62, %v2741_v8 }
0x1104   :  { %7527 = vtanh.f32 %v2773_v48 }
0x1105   :  { %v6061_v38 = vpack.c.bf16 %v2789_v51, %v2788_v44 }
0x1107   :  { %6649 = vmatmul.mubr.bf16.gmra.mrb[84].mxu1 %v6061_v38 }
0x1108   :  { %6652 = vmatprep.mubr.msk.bf16.mxu1 %vm7688_vm0, %v7687_v1 }
0x110c   :  { %v7526_v19 = vpop.eup %7525 }
0x110d   :  { %v2784_v17 = vadd.f32 1.0, %v7526_v19  ;;  %v7381_v19 = vld [vmem:[%s9422_s4 + $0x10] sm:$0xff]  }
0x110e   :  { %v7528_v33 = vpop.eup %7527  ;;  %6657 = vmatpush3.bf16.msra.mxu0 %v7381_v19 }
0x110f   :  { %v2785_v63 = vadd.f32 1.0, %v7528_v33  ;;  %v2790_v43 = vmul.f32 %v2784_v17, %v2742_v15  ;;  %6658 = vmatprep.subr.bf16.mxu0 %v7687_v1 }
0x1111   :  { %v2791_v7 = vmul.f32 %v2785_v63, %v2743_v47  ;;  %v2794_v0 = vpack.c.bf16 %v2790_v43, %v2789_v51  ;;  %v7382_v63 = vld [vmem:[%s9422_s4 + $0x18] sm:$0xff]  }
0x1112   :  { %6659 = vmatpush3.bf16.msra.mxu0 %v7382_v63 }
0x1113   :  { %v2795_v23 = vpack.c.bf16 %v2791_v7, %v2791_v7  ;;  %v2804_v40 = vunpack.c.h.b16 %v2794_v0  ;;  %7036 = vmatprep.subr.bf16.mxu0 %v7689_v60 }
0x1115   :  { %v2805_v21 = vunpack.c.l.b16 %v2795_v23 }
0x1117   :  { %v2824_v41 = vpack.c.b16 %v2805_v21, %v2804_v40 }
0x1119   :  { %6653 = vmatmul.mubr.bf16.gmra.mrb[88].mxu1 %v2824_v41 }
0x111a   :  { %6693 = vmatprep.mubr.msk.f32.mxu1 %vm7688_vm0, %v7687_v1 }
0x11b2   :  { %v2910_v3 = vpop.f32.mrb[80].mxu1 }
0x11b3   :  { %v2933_v5 = vadd.f32 %v2910_v3, %v8527_v16  ;;  %v6646_v45 = vpop.f32.mrb[81].mxu1 }
0x11b4   :  { %v2913_v25 = vpop.f32.mrb[82].mxu1 }
0x11b5   :  { %v8649_v53 = vadd.f32 %v5917_v34, %v2933_v5  ;;  %v2934_v12 = vadd.f32 %v2913_v25, %v8530_v52  ;;  %v6647_v61 = vpop.f32.mrb[83].mxu1 }
0x11b7   :  { %v8652_v57 = vadd.f32 %v5917_v34, %v2934_v12  ;;  %v2954_v11 = vsel %vm183_vm2, %v8649_v53, 0.0 }
0x11b8   :  { %2955 = vadd.xlane.f32.xlu1 %v2954_v11 }
0x11b9   :  { %v2957_v42 = vsel %vm183_vm2, %v8652_v57, 0.0 }
0x11ba   :  { %2958 = vadd.xlane.f32.xlu0 %v2957_v42 }
0x11da   :  { %v2918_v35 = vpop.f32.mrb[84].mxu1 }
0x11db   :  { %v2935_v16 = vadd.f32 %v2918_v35, %v8537_v27  ;;  %v6650_v55 = vpop.f32.mrb[85].mxu1 }
0x11dc   :  { %v2921_v6 = vpop.f32.mrb[86].mxu1 }
0x11dd   :  { %v8659_v36 = vadd.f32 %v5917_v34, %v2935_v16  ;;  %v2936_v52 = vadd.f32 %v2921_v6, %v8540_v30  ;;  %v6651_v4 = vpop.f32.mrb[87].mxu1 }
0x11de   :  { %v5918_v4 = vld [vmem:[%s9421_s3 + $0x4] sm:$0xf] }
0x11df   :  { %v8662_v9 = vadd.f32 %v5917_v34, %v2936_v52  ;;  %v2960_v20 = vsel %vm183_vm2, %v8659_v36, 0.0 }
0x11e0   :  { %2961 = vadd.xlane.f32.xlu1 %v2960_v20  ;;  %v3035_v20 = vrot.slane %v5918_v4, %v265_v18 }
0x11e1   :  { %v2963_v59 = vsel %vm183_vm2, %v8662_v9, 0.0 }
0x11e2   :  { %2964 = vadd.xlane.f32.xlu0 %v2963_v59 }
0x11ec   :  { %v2926_v24 = vpop.f32.mrb[88].mxu1 }
0x11ed   :  { %v2937_v27 = vadd.f32 %v2926_v24, %v8547_v54  ;;  %v6654_v50 = vpop.f32.mrb[89].mxu1  ;;  %v3045_v24 = vrot.slane %v5918_v4, %v275_v29 }
0x11ee   :  { %v2929_v46 = vpop.f32.mrb[90].mxu1 }
0x11ef   :  { %v8669_v32 = vadd.f32 %v5917_v34, %v2937_v27  ;;  %v2938_v30 = vadd.f32 %v2929_v46, %v8550_v58  ;;  %v6655_v10 = vpop.f32.mrb[91].mxu1 }
0x11f1   :  { %v8672_v26 = vadd.f32 %v5917_v34, %v2938_v30  ;;  %v2966_v28 = vsel %vm183_vm2, %v8669_v32, 0.0 }
0x11f2   :  { %2967 = vadd.xlane.f32.xlu1 %v2966_v28 }
0x11f3   :  { %v2969_v56 = vsel %vm183_vm2, %v8672_v26, 0.0 }
0x11f4   :  { %2970 = vadd.xlane.f32.xlu0 %v2969_v56 }
0x1245   :  { %v2956_v31 = vpop.xlane.xlu1 %2955 }
0x1246   :  { %v2972_v2 = vmul.f32 0.03125, %v2956_v31 }
0x1247   :  { %v2959_v54 = vpop.xlane.xlu0 %2958 }
0x1248   :  { %v2978_v37 = vsub.f32 %v8649_v53, %v2972_v2  ;;  %v2973_v8 = vmul.f32 0.03125, %v2959_v54 }
0x124a   :  { %v2979_v62 = vsub.f32 %v8652_v57, %v2973_v8  ;;  %v2984_v58 = vmul.f32 %v2978_v37, %v2978_v37 }
0x124c   :  { %v2990_v48 = vsel %vm183_vm2, %v2984_v58, 0.0  ;;  %v2985_v44 = vmul.f32 %v2979_v62, %v2979_v62 }
0x124d   :  { %2991 = vadd.xlane.f32.xlu1 %v2990_v48 }
0x124e   :  { %v2993_v51 = vsel %vm183_vm2, %v2985_v44, 0.0 }
0x124f   :  { %2994 = vadd.xlane.f32.xlu0 %v2993_v51 }
0x126d   :  { %v2962_v38 = vpop.xlane.xlu1 %2961 }
0x126e   :  { %v2974_v15 = vmul.f32 0.03125, %v2962_v38 }
0x126f   :  { %v2965_v17 = vpop.xlane.xlu0 %2964 }
0x1270   :  { %v2980_v33 = vsub.f32 %v8659_v36, %v2974_v15  ;;  %v2975_v47 = vmul.f32 0.03125, %v2965_v17 }
0x1272   :  { %v2981_v43 = vsub.f32 %v8662_v9, %v2975_v47  ;;  %v2986_v7 = vmul.f32 %v2980_v33, %v2980_v33 }
0x1274   :  { %v2996_v0 = vsel %vm183_vm2, %v2986_v7, 0.0  ;;  %v2987_v23 = vmul.f32 %v2981_v43, %v2981_v43 }
0x1275   :  { %2997 = vadd.xlane.f32.xlu1 %v2996_v0 }
0x1276   :  { %v2999_v40 = vsel %vm183_vm2, %v2987_v23, 0.0 }
0x1277   :  { %3000 = vadd.xlane.f32.xlu0 %v2999_v40 }
0x127f   :  { %v2968_v21 = vpop.xlane.xlu1 %2967 }
0x1280   :  { %v2976_v41 = vmul.f32 0.03125, %v2968_v21 }
0x1281   :  { %v2971_v3 = vpop.xlane.xlu0 %2970 }
0x1282   :  { %v2982_v34 = vsub.f32 %v8669_v32, %v2976_v41  ;;  %v2977_v5 = vmul.f32 0.03125, %v2971_v3 }
0x1284   :  { %v2983_v45 = vsub.f32 %v8672_v26, %v2977_v5  ;;  %v2988_v25 = vmul.f32 %v2982_v34, %v2982_v34 }
0x1286   :  { %v3002_v12 = vsel %vm183_vm2, %v2988_v25, 0.0  ;;  %v2989_v61 = vmul.f32 %v2983_v45, %v2983_v45 }
0x1287   :  { %3003 = vadd.xlane.f32.xlu1 %v3002_v12 }
0x1288   :  { %v3005_v11 = vsel %vm183_vm2, %v2989_v61, 0.0 }
0x1289   :  { %3006 = vadd.xlane.f32.xlu0 %v3005_v11 }
0x12da   :  { %v2992_v42 = vpop.xlane.xlu1 %2991 }
0x12db   :  { %v3008_v35 = vmul.f32 0.03125, %v2992_v42 }
0x12dc   :  { %v2995_v16 = vpop.xlane.xlu0 %2994 }
0x12dd   :  { %v3014_v55 = vadd.f32 1e-05, %v3008_v35  ;;  %v3009_v6 = vmul.f32 0.03125, %v2995_v16 }
0x12df   :  { %7529 = vrsqrt.f32 %v3014_v55  ;;  %v3015_v52 = vadd.f32 1e-05, %v3009_v6 }
0x12e1   :  { %7531 = vrsqrt.f32 %v3015_v52 }
0x12e9   :  { %v7530_v59 = vpop.eup %7529 }
0x12ea   :  { %v3026_v27 = vmul.f32 %v7530_v59, %v2978_v37 }
0x12eb   :  { %v7532_v50 = vpop.eup %7531 }
0x12ec   :  { %v3036_v46 = vmul.f32 %v3035_v20, %v3026_v27  ;;  %v3027_v30 = vmul.f32 %v7532_v50, %v2979_v62 }
0x12ee   :  { %v3046_v10 = vadd.f32 %v3045_v24, %v3036_v46  ;;  %v3037_v28 = vmul.f32 %v3035_v20, %v3027_v30 }
0x12f0   :  { %v3047_v56 = vadd.f32 %v3045_v24, %v3037_v28 }
0x12f2   :  { %v3052_v31 = vpack.c.bf16 %v3047_v56, %v3046_v10 }
0x12f4   :  { %6661 = vmatmul.mubr.msk.bf16.vlgmr.msra.gmra.mrb[68].mxu0 %vm183_vm2, %v3052_v31 }
0x12f5   :  { %6664 = vmatprep.mubr.msk.bf16.mxu0 %vm7688_vm0, %v7687_v1 }
0x1302   :  { %v2998_v2 = vpop.xlane.xlu1 %2997 }
0x1303   :  { %v3010_v54 = vmul.f32 0.03125, %v2998_v2 }
0x1304   :  { %v3001_v18 = vpop.xlane.xlu0 %3000 }
0x1305   :  { %v3016_v8 = vadd.f32 1e-05, %v3010_v54  ;;  %v3011_v58 = vmul.f32 0.03125, %v3001_v18 }
0x1307   :  { %7533 = vrsqrt.f32 %v3016_v8  ;;  %v3017_v29 = vadd.f32 1e-05, %v3011_v58 }
0x1309   :  { %7535 = vrsqrt.f32 %v3017_v29 }
0x1311   :  { %v7534_v37 = vpop.eup %7533 }
0x1312   :  { %v3028_v48 = vmul.f32 %v7534_v37, %v2980_v33 }
0x1313   :  { %v7536_v62 = vpop.eup %7535 }
0x1314   :  { %v3004_v44 = vpop.xlane.xlu1 %3003  ;;  %v3029_v51 = vmul.f32 %v7536_v62, %v2981_v43  ;;  %v3038_v38 = vmul.f32 %v3035_v20, %v3028_v48 }
0x1315   :  { %v3012_v19 = vmul.f32 0.03125, %v3004_v44 }
0x1316   :  { %v3007_v15 = vpop.xlane.xlu0 %3006  ;;  %v3039_v17 = vmul.f32 %v3035_v20, %v3029_v51  ;;  %v3048_v47 = vadd.f32 %v3045_v24, %v3038_v38 }
0x1317   :  { %v3018_v63 = vadd.f32 1e-05, %v3012_v19  ;;  %v3013_v7 = vmul.f32 0.03125, %v3007_v15 }
0x1318   :  { %v3049_v0 = vadd.f32 %v3045_v24, %v3039_v17 }
0x1319   :  { %7537 = vrsqrt.f32 %v3018_v63  ;;  %v3019_v23 = vadd.f32 1e-05, %v3013_v7 }
0x131a   :  { %v6062_v40 = vpack.c.bf16 %v3049_v0, %v3048_v47 }
0x131b   :  { %7539 = vrsqrt.f32 %v3019_v23 }
0x131c   :  { %6665 = vmatmul.mubr.msk.bf16.gmra.mrb[72].mxu0 %vm183_vm2, %v6062_v40 }
0x131d   :  { %6668 = vmatprep.mubr.msk.bf16.mxu0 %vm7688_vm0, %v7687_v1 }
0x1323   :  { %v7538_v33 = vpop.eup %7537 }
0x1324   :  { %v3030_v21 = vmul.f32 %v7538_v33, %v2982_v34  ;;  %v5930_v34 = vld [vmem:[%s9423_s5 + $0x1] ss:$0 sm:$0xff]  ;;  %s9441_s5 = smov 8  }
0x1325   :  { %v7540_v43 = vpop.eup %7539 }
0x1326   :  { %v3031_v41 = vmul.f32 %v7540_v43, %v2983_v45  ;;  %v3040_v3 = vmul.f32 %v3035_v20, %v3030_v21 }
0x1328   :  { %v3041_v5 = vmul.f32 %v3035_v20, %v3031_v41  ;;  %v3050_v25 = vadd.f32 %v3045_v24, %v3040_v3 }
0x132a   :  { %v3051_v12 = vadd.f32 %v3045_v24, %v3041_v5  ;;  %v3054_v61 = vpack.c.bf16 %v3050_v25, %v3049_v0 }
0x132c   :  { %v3055_v11 = vpack.c.bf16 %v3051_v12, %v3051_v12  ;;  %v3064_v42 = vunpack.c.h.b16 %v3054_v61 }
0x132e   :  { %v3065_v35 = vunpack.c.l.b16 %v3055_v11 }
0x1330   :  { %v3073_v16 = vpack.c.b16 %v3065_v35, %v3064_v42 }
0x1332   :  { %6669 = vmatmul.mubr.msk.bf16.gmra.mrb[76].mxu0 %vm183_vm2, %v3073_v16 }
0x1333   :  { %6678 = vmatprep.mubr.msk.f32.mxu0 %vm7688_vm0, %v7687_v1 }
0x13c7   :  { %v3129_v55 = vpop.f32.mrb[68].mxu0 }
0x13c8   :  { %v6662_v45 = vpop.f32.mrb[69].mxu0  ;;  %v8717_v52 = vadd.f32 %v5930_v34, %v3129_v55 }
0x13c9   :  { %v3132_v6 = vpop.f32.mrb[70].mxu0 }
0x13ca   :  { %v8719_v4 = vadd.f32 %v5930_v34, %v3132_v6  ;;  %v6663_v20 = vpop.f32.mrb[71].mxu0 }
0x13cc   :  { %v8723_v59 = vpack.i.bf16 %v8719_v4, %v8717_v52 }
0x13ce   :  { %7236 = vrot.lane.b32.xlu1 %v8723_v59, %s7690_s22 }
0x13ef   :  { %v3137_v24 = vpop.f32.mrb[72].mxu0 }
0x13f0   :  { %v8727_v27 = vadd.f32 %v5930_v34, %v3137_v24  ;;  %v6666_v50 = vpop.f32.mrb[73].mxu0 }
0x13f1   :  { %v3140_v46 = vpop.f32.mrb[74].mxu0 }
0x13f2   :  { %3173 = vrot.lane.b32.xlu0 %v8727_v27, %s7690_s22  ;;  %v6667_v30 = vpop.f32.mrb[75].mxu0  ;;  %v8733_v28 = vadd.f32 %v5930_v34, %v3140_v46 }
0x13f6   :  { %3450 = vrot.lane.b32.xlu0 %v8727_v27, %s7691_s23 }
0x1405   :  { %v3145_v10 = vpop.f32.mrb[76].mxu0 }
0x1406   :  { %v8735_v56 = vadd.f32 %v5930_v34, %v3145_v10  ;;  %v6670_v31 = vpop.f32.mrb[77].mxu0 }
0x1407   :  { %v3148_v2 = vpop.f32.mrb[78].mxu0 }
0x1408   :  { %v8737_v54 = vadd.f32 %v5930_v34, %v3148_v2  ;;  %v6671_v18 = vpop.f32.mrb[79].mxu0  ;;  %v8741_v8 = vpack.i.bf16 %v8735_v56, %v8733_v28 }
0x140a   :  { %7241 = vrot.lane.b32.xlu1 %v8741_v8, %s7690_s22 }
0x140e   :  { %3274 = vrot.lane.b32.xlu1 %v8737_v54, %s7690_s22  ;;  %s9442_s22 = smov 16  }
0x1412   :  { %7246 = vrot.lane.b32.xlu1 %v8723_v59, %s7691_s23 }
0x1416   :  { %7251 = vrot.lane.b32.xlu1 %v8723_v59, %s7692_s24 }
0x141a   :  { %7256 = vrot.lane.b32.xlu1 %v8741_v8, %s7691_s23 }
0x141e   :  { %3548 = vrot.lane.b32.xlu1 %v8737_v54, %s7691_s23 }
0x1440   :  { %v7237_v58 = vpop.permute.xlu1 %7236 }
0x1441   :  { %v7239_v29 = vunpack.i.h.bf16 %v7237_v58  ;;  %v7238_v37 = vunpack.i.l.bf16 %v7237_v58 }
0x1443   :  { %v7037_v48 = vpack.c.bf16 %v7239_v29, %v7238_v37 }
0x1445   :  { %7039 = vmatpush3.bf16.xpose.msk.msra.mxu0 %vm7949_vm4, %v7037_v48 }
0x1446   :  { %6676 = vmatprep.subr.mxu0 %v7687_v1 }
0x1464   :  { %v3174_v62 = vpop.permute.xlu0 %3173 }
0x1465   :  { %6677 = vmatpush3.xpose.msk.msra.mxu0 %vm404_vm3, %v3174_v62 }
0x1466   :  { %7044 = vmatprep.subr.bf16.mxu0 %v7689_v60 }
0x1468   :  { %6679 = vmatmul.mubr.msk.f32.vlgmr.msra.gmra.mrb[54].mxu0 %vm404_vm3, %v8717_v52  ;;  %v3451_v23 = vpop.permute.xlu0 %3450 }
0x1469   :  { %6681 = vmatprep.mubr.msk.f32.mxu0 %vm7688_vm0, %v7687_v1 }
0x146c   :  { %6682 = vmatmul.mubr.msk.f32.gmra.mrb[80].mxu0 %vm404_vm3, %v8719_v4 }
0x146d   :  { %6684 = vmatprep.mubr.msk.f32.mxu0 %vm7688_vm0, %v7687_v1 }
0x1470   :  { %6685 = vmatmul.mubr.msk.f32.gmra.mrb[82].mxu0 %vm404_vm3, %v8727_v27 }
0x1471   :  { %6708 = vmatprep.mubr.msk.f32.mxu0 %vm7688_vm0, %v7687_v1 }
0x147c   :  { %v7242_v44 = vpop.permute.xlu1 %7241 }
0x147d   :  { %v7244_v51 = vunpack.i.h.bf16 %v7242_v44  ;;  %v7243_v38 = vunpack.i.l.bf16 %v7242_v44 }
0x147f   :  { %v7041_v19 = vpack.c.bf16 %v7244_v51, %v7243_v38 }
0x1480   :  { %v3275_v15 = vpop.permute.xlu1 %3274 }
0x1481   :  { %7043 = vmatpush3.bf16.xpose.msk.msra.mxu1 %vm7949_vm4, %v7041_v19 }
0x1482   :  { %6691 = vmatprep.subr.mxu1 %v7687_v1 }
0x1484   :  { %v7247_v17 = vpop.permute.xlu1 %7246 }
0x1485   :  { %v7249_v47 = vunpack.i.h.bf16 %v7247_v17  ;;  %v7248_v63 = vunpack.i.l.bf16 %v7247_v17 }
0x1487   :  { %v7045_v7 = vpack.c.bf16 %v7249_v47, %v7248_v63 }
0x1488   :  { %v8775_v0 = vpop.permute.xlu1 %7251 }
0x1489   :  { %6692 = vmatpush3.xpose.msk.msra.mxu1 %vm404_vm3, %v3275_v15  ;;  %7046 = vmatpush3.bf16.msra.mxu0 %v7045_v7 }
0x148a   :  { %6706 = vmatprep.subr.mxu0 %v7687_v1  ;;  %7047 = vmatprep.subr.bf16.mxu1 %v7689_v60 }
0x148c   :  { %6694 = vmatmul.mubr.msk.f32.vlgmr.msra.gmra.mrb[66].mxu1 %vm404_vm3, %v8733_v28  ;;  %v7257_v40 = vpop.permute.xlu1 %7256 }
0x148d   :  { %v7259_v33 = vunpack.i.h.bf16 %v7257_v40  ;;  %v7258_v21 = vunpack.i.l.bf16 %v7257_v40  ;;  %6707 = vmatpush3.msra.mxu0 %v3451_v23  ;;  %6696 = vmatprep.mubr.msk.f32.mxu1 %vm7688_vm0, %v7687_v1 }
0x148e   :  { %7050 = vmatprep.subr.bf16.mxu0 %v7689_v60 }
0x148f   :  { %v7048_v43 = vpack.c.bf16 %v7259_v33, %v7258_v21 }
0x1490   :  { %6697 = vmatmul.mubr.msk.f32.gmra.mrb[92].mxu1 %vm404_vm3, %v8735_v56  ;;  %v3549_v41 = vpop.permute.xlu1 %3548 }
0x1491   :  { %7049 = vmatpush3.bf16.msra.mxu1 %v7048_v43  ;;  %6699 = vmatprep.mubr.msk.f32.mxu1 %vm7688_vm0, %v7687_v1 }
0x1492   :  { %6721 = vmatprep.subr.mxu1 %v7687_v1 }
0x1494   :  { %6700 = vmatmul.mubr.msk.f32.gmra.mrb[94].mxu1 %vm404_vm3, %v8737_v54 }
0x1495   :  { %6722 = vmatpush3.msra.mxu1 %v3549_v41  ;;  %6723 = vmatprep.mubr.msk.f32.mxu1 %vm7688_vm0, %v7687_v1 }
0x1496   :  { %7054 = vmatprep.subr.bf16.mxu1 %v7689_v60 }
0x153b   :  { %v3253_v3 = vpop.f32.mrb[54].mxu0 }
0x153c   :  { %v3368_v5 = vmul.f32 0.35355338, %v3253_v3  ;;  %v6680_v25 = vpop.f32.mrb[55].mxu0 }
0x153e   :  { %v3374_v12 = vadd.f32 %v3368_v5, %v7989_v49 }
0x153f   :  { %v3258_v61 = vpop.f32.mrb[80].mxu0 }
0x1540   :  { %v3369_v11 = vmul.f32 0.35355338, %v3258_v61  ;;  %v6683_v42 = vpop.f32.mrb[81].mxu0  ;;  %v3380_v35 = vsel %vm610_vm6, %v3374_v12, -inf }
0x1541   :  { %3381 = vmax.xlane.f32.xlu1 %v3380_v35 }
0x1542   :  { %v3375_v16 = vadd.f32 %v3369_v11, %v7989_v49 }
0x1543   :  { %v3263_v55 = vpop.f32.mrb[82].mxu0 }
0x1544   :  { %v3370_v34 = vmul.f32 0.35355338, %v3263_v55  ;;  %v6686_v45 = vpop.f32.mrb[83].mxu0  ;;  %v3383_v6 = vsel %vm610_vm6, %v3375_v16, -inf }
0x1545   :  { %3384 = vmax.xlane.f32.xlu0 %v3383_v6 }
0x1546   :  { %v3376_v20 = vadd.f32 %v3370_v34, %v7989_v49 }
0x1548   :  { %v3386_v24 = vsel %vm610_vm6, %v3376_v20, -inf }
0x1549   :  { %3387 = vmax.xlane.f32.xlu0 %v3386_v24 }
0x155f   :  { %v3354_v50 = vpop.f32.mrb[66].mxu1 }
0x1560   :  { %v3371_v46 = vmul.f32 0.35355338, %v3354_v50  ;;  %v6695_v30 = vpop.f32.mrb[67].mxu1 }
0x1562   :  { %v3377_v10 = vadd.f32 %v3371_v46, %v7989_v49 }
0x1563   :  { %v3359_v31 = vpop.f32.mrb[92].mxu1 }
0x1564   :  { %v3372_v2 = vmul.f32 0.35355338, %v3359_v31  ;;  %v6698_v18 = vpop.f32.mrb[93].mxu1  ;;  %v3389_v58 = vsel %vm610_vm6, %v3377_v10, -inf }
0x1565   :  { %3390 = vmax.xlane.f32.xlu0 %v3389_v58  ;;  %v7254_v58 = vunpack.i.h.bf16 %v8775_v0 }
0x1566   :  { %v3378_v29 = vadd.f32 %v3372_v2, %v7989_v49 }
0x1567   :  { %v3364_v37 = vpop.f32.mrb[94].mxu1 }
0x1568   :  { %v3373_v48 = vmul.f32 0.35355338, %v3364_v37  ;;  %v6701_v62 = vpop.f32.mrb[95].mxu1  ;;  %v3392_v44 = vsel %vm610_vm6, %v3378_v29, -inf }
0x1569   :  { %3393 = vmax.xlane.f32.xlu1 %v3392_v44 }
0x156a   :  { %v3379_v51 = vadd.f32 %v3373_v48, %v7989_v49 }
0x156c   :  { %v3395_v38 = vsel %vm610_vm6, %v3379_v51, -inf }
0x156d   :  { %3396 = vmax.xlane.f32.xlu0 %v3395_v38 }
0x157a   :  { %3652 = vrot.lane.b32.xlu1 %v8727_v27, %s7692_s24 }
0x1583   :  { %3642 = vrot.lane.b32.xlu0 %v8717_v52, %s7693_s1 }
0x15ce   :  { %v3382_v19 = vpop.xlane.xlu1 %3381 }
0x15cf   :  { %v3398_v15 = vsub.f32 %v3374_v12, %v3382_v19 }
0x15d1   :  { %v3404_v17 = vmul.f32 1.442695, %v3398_v15 }
0x15d2   :  { %v3385_v47 = vpop.xlane.xlu0 %3384 }
0x15d3   :  { %7541 = vpow2.f32 %v3404_v17  ;;  %v3399_v63 = vsub.f32 %v3375_v16, %v3385_v47 }
0x15d5   :  { %v3406_v7 = vmul.f32 1.442695, %v3399_v63 }
0x15d6   :  { %v3388_v43 = vpop.xlane.xlu0 %3387 }
0x15d7   :  { %7543 = vpow2.f32 %v3406_v7  ;;  %v3400_v41 = vsub.f32 %v3376_v20, %v3388_v43 }
0x15d9   :  { %v3408_v5 = vmul.f32 1.442695, %v3400_v41 }
0x15db   :  { %7545 = vpow2.f32 %v3408_v5 }
0x15dd   :  { %v7542_v23 = vpop.eup %7541 }
0x15de   :  { %v3416_v40 = vsel %vm610_vm6, %v7542_v23, 0.0 }
0x15df   :  { %3417 = vadd.xlane.f32.xlu1 %v3416_v40 }
0x15e1   :  { %v7544_v33 = vpop.eup %7543 }
0x15e2   :  { %v3419_v21 = vsel %vm610_vm6, %v7544_v33, 0.0 }
0x15e3   :  { %3420 = vadd.xlane.f32.xlu0 %v3419_v21 }
0x15e5   :  { %v7546_v34 = vpop.eup %7545 }
0x15e6   :  { %v3422_v45 = vsel %vm610_vm6, %v7546_v34, 0.0 }
0x15f0   :  { %7261 = vrot.lane.b32.xlu1 %v8741_v8, %s7692_s24 }
0x15f2   :  { %v3391_v3 = vpop.xlane.xlu0 %3390 }
0x15f3   :  { %v3401_v25 = vsub.f32 %v3377_v10, %v3391_v3 }
0x15f5   :  { %v3410_v61 = vmul.f32 1.442695, %v3401_v25 }
0x15f6   :  { %v3394_v12 = vpop.xlane.xlu1 %3393 }
0x15f7   :  { %v3402_v11 = vsub.f32 %v3378_v29, %v3394_v12  ;;  %7547 = vpow2.f32 %v3410_v61  ;;  %v7253_v29 = vunpack.i.l.bf16 %v8775_v0 }
0x15f9   :  { %3646 = vrot.lane.b32.xlu0 %v8727_v27, %s7693_s1  ;;  %v3412_v35 = vmul.f32 1.442695, %v3402_v11  ;;  %v7051_v62 = vpack.c.bf16 %v7254_v58, %v7253_v29 }
0x15fa   :  { %v3397_v42 = vpop.xlane.xlu0 %3396  ;;  %v3653_v10 = vpop.permute.xlu1 %3652 }
0x15fb   :  { %v3403_v16 = vsub.f32 %v3379_v51, %v3397_v42  ;;  %7549 = vpow2.f32 %v3412_v35 }
0x15fd   :  { %v3414_v55 = vmul.f32 1.442695, %v3403_v16 }
0x15fe   :  { %v3643_v31 = vpop.permute.xlu0 %3642 }
0x15ff   :  { %7551 = vpow2.f32 %v3414_v55 }
0x1601   :  { %v7548_v6 = vpop.eup %7547 }
0x1602   :  { %v3425_v20 = vsel %vm610_vm6, %v7548_v6, 0.0 }
0x1605   :  { %v8819_v24 = vpop.eup %7549 }
0x1606   :  { %v3428_v50 = vsel %vm610_vm6, %v8819_v24, 0.0 }
0x1609   :  { %v8823_v46 = vpop.eup %7551 }
0x160a   :  { %v3431_v30 = vsel %vm610_vm6, %v8823_v46, 0.0 }
0x1614   :  { %3423 = vadd.xlane.f32.xlu1 %v3422_v45 }
0x1618   :  { %3426 = vadd.xlane.f32.xlu0 %v3425_v20 }
0x161c   :  { %3429 = vadd.xlane.f32.xlu0 %v3428_v50 }
0x1620   :  { %3432 = vadd.xlane.f32.xlu0 %v3431_v30 }
0x1625   :  { %3644 = vrot.lane.b32.xlu1 %v8719_v4, %s7693_s1 }
0x1629   :  { %3756 = vrot.lane.b32.xlu1 %v8737_v54, %s7692_s24 }
0x162d   :  { %3748 = vrot.lane.b32.xlu1 %v8735_v56, %s7693_s1 }
0x1631   :  { %7266 = vrot.lane.b32.xlu1 %v8723_v59, %s7694_s25 }
0x1635   :  { %7271 = vrot.lane.b32.xlu1 %v8723_v59, %s7695_s26 }
0x1636   :  { %3746 = vrot.lane.b32.xlu0 %v8733_v28, %s7693_s1 }
0x1639   :  { %7276 = vrot.lane.b32.xlu1 %v8741_v8, %s7694_s25 }
0x163a   :  { %3750 = vrot.lane.b32.xlu0 %v8737_v54, %s7693_s1 }
0x163d   :  { %4030 = vrot.lane.b32.xlu1 %v8737_v54, %s7694_s25 }
0x163e   :  { %3932 = vrot.lane.b32.xlu0 %v8727_v27, %s7694_s25 }
0x166c   :  { %v3418_v2 = vpop.xlane.xlu1 %3417 }
0x166d   :  { %7553 = vrcp.f32 %v3418_v2 }
0x1670   :  { %v3421_v18 = vpop.xlane.xlu0 %3420  ;;  %v7262_v0 = vpop.permute.xlu1 %7261 }
0x1671   :  { %7555 = vrcp.f32 %v3421_v18  ;;  %v7264_v21 = vunpack.i.h.bf16 %v7262_v0  ;;  %v7263_v43 = vunpack.i.l.bf16 %v7262_v0 }
0x1673   :  { %v7055_v12 = vpack.c.bf16 %v7264_v21, %v7263_v43 }
0x1674   :  { %v3647_v38 = vpop.permute.xlu0 %3646 }
0x1677   :  { %v7554_v37 = vpop.eup %7553 }
0x1678   :  { %v3440_v48 = vmul.f32 %v7554_v37, %v7542_v23 }
0x167a   :  { %6709 = vmatmul.mubr.msk.f32.vlgmr.msra.gmra.mrb[84].mxu0 %vm610_vm6, %v3440_v48 }
0x167b   :  { %v7556_v44 = vpop.eup %7555  ;;  %7053 = vmatpush3.bf16.xpose.msk.msra.mxu0 %vm7949_vm4, %v7051_v62  ;;  %6711 = vmatprep.mubr.msk.f32.mxu0 %vm7688_vm0, %v7687_v1 }
0x167c   :  { %v3441_v51 = vmul.f32 %v7556_v44, %v7544_v33  ;;  %6736 = vmatprep.subr.mxu0 %v7687_v1 }
0x167e   :  { %6712 = vmatmul.mubr.msk.f32.gmra.mrb[86].mxu0 %vm610_vm6, %v3441_v51 }
0x167f   :  { %6714 = vmatprep.mubr.msk.f32.mxu0 %vm7688_vm0, %v7687_v1 }
0x1683   :  { %6737 = vmatpush3.xpose.msk.msra.mxu0 %vm404_vm3, %v3653_v10 }
0x1684   :  { %7058 = vmatprep.subr.bf16.mxu0 %v7689_v60 }
0x16a1   :  { %v3424_v19 = vpop.xlane.xlu1 %3423 }
0x16a2   :  { %7557 = vrcp.f32 %v3424_v19 }
0x16a5   :  { %v3645_v15 = vpop.permute.xlu1 %3644  ;;  %v3427_v17 = vpop.xlane.xlu0 %3426 }
0x16a6   :  { %7559 = vrcp.f32 %v3427_v17 }
0x16a9   :  { %v3757_v47 = vpop.permute.xlu1 %3756  ;;  %v3430_v63 = vpop.xlane.xlu0 %3429 }
0x16aa   :  { %7561 = vrcp.f32 %v3430_v63 }
0x16ac   :  { %v7558_v7 = vpop.eup %7557 }
0x16ad   :  { %v3749_v23 = vpop.permute.xlu1 %3748  ;;  %v3433_v40 = vpop.xlane.xlu0 %3432  ;;  %v3442_v33 = vmul.f32 %v7558_v7, %v7546_v34 }
0x16ae   :  { %7563 = vrcp.f32 %v3433_v40 }
0x16af   :  { %6715 = vmatmul.mubr.msk.f32.gmra.mrb[88].mxu0 %vm610_vm6, %v3442_v33 }
0x16b0   :  { %v7560_v41 = vpop.eup %7559  ;;  %6738 = vmatprep.mubr.msk.f32.mxu0 %vm7688_vm0, %v7687_v1 }
0x16b1   :  { %v3443_v3 = vmul.f32 %v7560_v41, %v7548_v6  ;;  %v7267_v5 = vpop.permute.xlu1 %7266  ;;  %v3747_v25 = vpop.permute.xlu0 %3746 }
0x16b2   :  { %v7269_v61 = vunpack.i.h.bf16 %v7267_v5  ;;  %v7268_v11 = vunpack.i.l.bf16 %v7267_v5 }
0x16b3   :  { %6724 = vmatmul.mubr.msk.f32.vlgmr.msra.gmra.mrb[96].mxu1 %vm610_vm6, %v3443_v3  ;;  %6739 = vmatmul.mubr.msk.f32.vlgmr.msra.gmra.mrb[90].mxu0 %vm404_vm3, %v3643_v31 }
0x16b4   :  { %v7562_v42 = vpop.eup %7561  ;;  %v7059_v35 = vpack.c.bf16 %v7269_v61, %v7268_v11  ;;  %7057 = vmatpush3.bf16.xpose.msk.msra.mxu1 %vm7949_vm4, %v7055_v12  ;;  %6726 = vmatprep.mubr.msk.f32.mxu1 %vm7688_vm0, %v7687_v1 }
0x16b5   :  { %v8869_v16 = vpop.permute.xlu1 %7271  ;;  %v3751_v55 = vpop.permute.xlu0 %3750  ;;  %6741 = vmatprep.mubr.msk.f32.mxu0 %vm7688_vm0, %v7687_v1  ;;  %v3444_v34 = vmul.f32 %v7562_v42, %v8819_v24  ;;  %6751 = vmatprep.subr.mxu1 %v7687_v1 }
0x16b6   :  { %7060 = vmatpush3.bf16.msra.mxu0 %v7059_v35 }
0x16b7   :  { %6727 = vmatmul.mubr.msk.f32.gmra.mrb[98].mxu1 %vm610_vm6, %v3444_v34  ;;  %6742 = vmatmul.mubr.msk.f32.gmra.mrb[92].mxu0 %vm404_vm3, %v3645_v15 }
0x16b8   :  { %v7564_v45 = vpop.eup %7563  ;;  %6766 = vmatprep.subr.mxu0 %v7687_v1  ;;  %6729 = vmatprep.mubr.msk.f32.mxu1 %vm7688_vm0, %v7687_v1 }
0x16b9   :  { %v7277_v6 = vpop.permute.xlu1 %7276  ;;  %v3933_v20 = vpop.permute.xlu0 %3932  ;;  %6744 = vmatprep.mubr.msk.f32.mxu0 %vm7688_vm0, %v7687_v1  ;;  %v3445_v24 = vmul.f32 %v7564_v45, %v8823_v46 }
0x16ba   :  { %v7279_v50 = vunpack.i.h.bf16 %v7277_v6  ;;  %v7278_v30 = vunpack.i.l.bf16 %v7277_v6  ;;  %6767 = vmatpush3.msra.mxu0 %v3933_v20 }
0x16bb   :  { %6730 = vmatmul.mubr.msk.f32.gmra.mrb[100].mxu1 %vm610_vm6, %v3445_v24  ;;  %6745 = vmatmul.mubr.msk.f32.gmra.mrb[94].mxu0 %vm404_vm3, %v3647_v38 }
0x16bc   :  { %v7062_v10 = vpack.c.bf16 %v7279_v50, %v7278_v30  ;;  %6752 = vmatpush3.xpose.msk.msra.mxu1 %vm404_vm3, %v3757_v47  ;;  %6753 = vmatprep.mubr.msk.f32.mxu1 %vm7688_vm0, %v7687_v1 }
0x16bd   :  { %7061 = vmatprep.subr.bf16.mxu1 %v7689_v60  ;;  %6768 = vmatprep.mubr.msk.f32.mxu0 %vm7688_vm0, %v7687_v1  ;;  %v4031_v46 = vpop.permute.xlu1 %4030 }
0x16be   :  { %7064 = vmatprep.subr.bf16.mxu0 %v7689_v60 }
0x16bf   :  { %6754 = vmatmul.mubr.msk.f32.vlgmr.msra.gmra.mrb[102].mxu1 %vm404_vm3, %v3747_v25 }
0x16c0   :  { %7063 = vmatpush3.bf16.msra.mxu1 %v7062_v10  ;;  %6756 = vmatprep.mubr.msk.f32.mxu1 %vm7688_vm0, %v7687_v1 }
0x16c1   :  { %6781 = vmatprep.subr.mxu1 %v7687_v1 }
0x16c3   :  { %6757 = vmatmul.mubr.msk.f32.gmra.mrb[104].mxu1 %vm404_vm3, %v3749_v23 }
0x16c4   :  { %6782 = vmatpush3.msra.mxu1 %v4031_v46  ;;  %6759 = vmatprep.mubr.msk.f32.mxu1 %vm7688_vm0, %v7687_v1 }
0x16c5   :  { %7068 = vmatprep.subr.bf16.mxu1 %v7689_v60 }
0x16c7   :  { %6760 = vmatmul.mubr.msk.f32.gmra.mrb[106].mxu1 %vm404_vm3, %v3751_v55 }
0x16c8   :  { %6783 = vmatprep.mubr.msk.f32.mxu1 %vm7688_vm0, %v7687_v1 }
0x174d   :  { %v8903_v31 = vpop.f32.mrb[84].mxu0 }
0x174e   :  { %v6710_v2 = vpop.f32.mrb[85].mxu0 }
0x1751   :  { %v8905_v18 = vpop.f32.mrb[86].mxu0 }
0x1752   :  { %v6713_v58 = vpop.f32.mrb[87].mxu0 }
0x1782   :  { %v8907_v29 = vpop.f32.mrb[88].mxu0 }
0x1783   :  { %v6716_v37 = vpop.f32.mrb[89].mxu0 }
0x1786   :  { %v8909_v48 = vpop.f32.mrb[96].mxu1  ;;  %v3732_v62 = vpop.f32.mrb[90].mxu0 }
0x1787   :  { %v3850_v44 = vmul.f32 0.35355338, %v3732_v62  ;;  %v6725_v51 = vpop.f32.mrb[97].mxu1  ;;  %v6740_v0 = vpop.f32.mrb[91].mxu0 }
0x1789   :  { %v3856_v38 = vadd.f32 %v3850_v44, %v7989_v49 }
0x178a   :  { %v8912_v19 = vpop.f32.mrb[98].mxu1  ;;  %v3737_v15 = vpop.f32.mrb[92].mxu0 }
0x178b   :  { %v3851_v17 = vmul.f32 0.35355338, %v3737_v15  ;;  %v6728_v47 = vpop.f32.mrb[99].mxu1  ;;  %v6743_v63 = vpop.f32.mrb[93].mxu0  ;;  %v3862_v7 = vsel %vm610_vm6, %v3856_v38, -inf }
0x178c   :  { %3863 = vmax.xlane.f32.xlu1 %v3862_v7 }
0x178d   :  { %v3857_v23 = vadd.f32 %v3851_v17, %v7989_v49 }
0x178e   :  { %v8916_v40 = vpop.f32.mrb[100].mxu1  ;;  %v3742_v33 = vpop.f32.mrb[94].mxu0 }
0x178f   :  { %v3852_v21 = vmul.f32 0.35355338, %v3742_v33  ;;  %v6731_v43 = vpop.f32.mrb[101].mxu1  ;;  %v6746_v41 = vpop.f32.mrb[95].mxu0  ;;  %v3865_v3 = vsel %vm610_vm6, %v3857_v23, -inf }
0x1790   :  { %3866 = vmax.xlane.f32.xlu0 %v3865_v3 }
0x1791   :  { %v3858_v5 = vadd.f32 %v3852_v21, %v7989_v49 }
0x1792   :  { %v3836_v25 = vpop.f32.mrb[102].mxu1 }
0x1793   :  { %v3853_v12 = vmul.f32 0.35355338, %v3836_v25  ;;  %v6755_v61 = vpop.f32.mrb[103].mxu1  ;;  %v3868_v11 = vsel %vm610_vm6, %v3858_v5, -inf }
0x1794   :  { %3869 = vmax.xlane.f32.xlu0 %v3868_v11 }
0x1795   :  { %v3859_v42 = vadd.f32 %v3853_v12, %v7989_v49 }
0x1796   :  { %v3841_v35 = vpop.f32.mrb[104].mxu1 }
0x1797   :  { %v3854_v55 = vmul.f32 0.35355338, %v3841_v35  ;;  %v6758_v34 = vpop.f32.mrb[105].mxu1  ;;  %v3871_v45 = vsel %vm610_vm6, %v3859_v42, -inf }
0x1798   :  { %3872 = vmax.xlane.f32.xlu0 %v3871_v45 }
0x1799   :  { %v3860_v6 = vadd.f32 %v3854_v55, %v7989_v49 }
0x179a   :  { %v3846_v20 = vpop.f32.mrb[106].mxu1 }
0x179b   :  { %v3855_v24 = vmul.f32 0.35355338, %v3846_v20  ;;  %v6761_v50 = vpop.f32.mrb[107].mxu1  ;;  %v3874_v30 = vsel %vm610_vm6, %v3860_v6, -inf }
0x179c   :  { %3875 = vmax.xlane.f32.xlu1 %v3874_v30 }
0x179d   :  { %v3861_v10 = vadd.f32 %v3855_v24, %v7989_v49 }
0x179f   :  { %v3877_v46 = vsel %vm610_vm6, %v3861_v10, -inf }
0x17a0   :  { %3878 = vmax.xlane.f32.xlu0 %v3877_v46  ;;  %v7273_v46 = vunpack.i.l.bf16 %v8869_v16 }
0x17ad   :  { %4134 = vrot.lane.b32.xlu1 %v8727_v27, %s7695_s26 }
0x17b6   :  { %4124 = vrot.lane.b32.xlu0 %v8717_v52, %s7696_s27 }
0x1819   :  { %v3864_v2 = vpop.xlane.xlu1 %3863 }
0x181a   :  { %v3880_v58 = vsub.f32 %v3856_v38, %v3864_v2 }
0x181c   :  { %v3886_v37 = vmul.f32 1.442695, %v3880_v58 }
0x181d   :  { %v3867_v62 = vpop.xlane.xlu0 %3866 }
0x181e   :  { %7565 = vpow2.f32 %v3886_v37  ;;  %v3881_v44 = vsub.f32 %v3857_v23, %v3867_v62 }
0x1820   :  { %v3888_v51 = vmul.f32 1.442695, %v3881_v44 }
0x1821   :  { %v3870_v63 = vpop.xlane.xlu0 %3869 }
0x1822   :  { %7567 = vpow2.f32 %v3888_v51  ;;  %v3882_v38 = vsub.f32 %v3858_v5, %v3870_v63 }
0x1824   :  { %v3890_v23 = vmul.f32 1.442695, %v3882_v38 }
0x1825   :  { %v3873_v7 = vpop.xlane.xlu0 %3872 }
0x1826   :  { %v3883_v33 = vsub.f32 %v3859_v42, %v3873_v7  ;;  %7569 = vpow2.f32 %v3890_v23 }
0x1828   :  { %v7566_v0 = vpop.eup %7565  ;;  %v3892_v43 = vmul.f32 1.442695, %v3883_v33 }
0x1829   :  { %v3898_v15 = vsel %vm610_vm6, %v7566_v0, 0.0  ;;  %v3876_v21 = vpop.xlane.xlu1 %3875 }
0x182a   :  { %3899 = vadd.xlane.f32.xlu1 %v3898_v15  ;;  %v3884_v41 = vsub.f32 %v3860_v6, %v3876_v21  ;;  %7571 = vpow2.f32 %v3892_v43 }
0x182c   :  { %v7568_v17 = vpop.eup %7567  ;;  %v3894_v25 = vmul.f32 1.442695, %v3884_v41 }
0x182d   :  { %v3901_v47 = vsel %vm610_vm6, %v7568_v17, 0.0  ;;  %v3879_v3 = vpop.xlane.xlu0 %3878  ;;  %v4135_v20 = vpop.permute.xlu1 %4134 }
0x182e   :  { %3902 = vadd.xlane.f32.xlu0 %v3901_v47  ;;  %v3885_v12 = vsub.f32 %v3861_v10, %v3879_v3  ;;  %7573 = vpow2.f32 %v3894_v25  ;;  %v7274_v10 = vunpack.i.h.bf16 %v8869_v16 }
0x1830   :  { %v3896_v61 = vmul.f32 1.442695, %v3885_v12  ;;  %v7570_v11 = vpop.eup %7569  ;;  %v7065_v37 = vpack.c.bf16 %v7274_v10, %v7273_v46 }
0x1831   :  { %v3904_v35 = vsel %vm610_vm6, %v7570_v11, 0.0  ;;  %v4125_v24 = vpop.permute.xlu0 %4124 }
0x1832   :  { %7575 = vpow2.f32 %v3896_v61 }
0x1834   :  { %v7572_v55 = vpop.eup %7571 }
0x1835   :  { %v3907_v5 = vsel %vm610_vm6, %v7572_v55, 0.0 }
0x1838   :  { %v8939_v34 = vpop.eup %7573 }
0x1839   :  { %v3910_v42 = vsel %vm610_vm6, %v8939_v34, 0.0 }
0x183b   :  { %7281 = vrot.lane.b32.xlu1 %v8741_v8, %s7695_s26 }
0x183c   :  { %v8943_v45 = vpop.eup %7575 }
0x183d   :  { %v3913_v6 = vsel %vm610_vm6, %v8943_v45, 0.0 }
0x1844   :  { %4128 = vrot.lane.b32.xlu0 %v8727_v27, %s7696_s27 }
0x185f   :  { %3905 = vadd.xlane.f32.xlu1 %v3904_v35 }
0x1863   :  { %3908 = vadd.xlane.f32.xlu0 %v3907_v5 }
0x1867   :  { %3911 = vadd.xlane.f32.xlu0 %v3910_v42 }
0x186b   :  { %3914 = vadd.xlane.f32.xlu0 %v3913_v6 }
0x1870   :  { %4126 = vrot.lane.b32.xlu1 %v8719_v4, %s7696_s27 }
0x1874   :  { %4238 = vrot.lane.b32.xlu1 %v8737_v54, %s7695_s26  ;;  %s9443_s26 = smov 24  }
0x1878   :  { %4230 = vrot.lane.b32.xlu1 %v8735_v56, %s7696_s27 }
0x187c   :  { %7286 = vrot.lane.b32.xlu1 %v8723_v59, %s7697_s28 }
0x1880   :  { %7291 = vrot.lane.b32.xlu1 %v8723_v59, %s7698_s29 }
0x1881   :  { %4228 = vrot.lane.b32.xlu0 %v8733_v28, %s7696_s27 }
0x1884   :  { %7296 = vrot.lane.b32.xlu1 %v8741_v8, %s7697_s28 }
0x1885   :  { %4232 = vrot.lane.b32.xlu0 %v8737_v54, %s7696_s27 }
0x1888   :  { %4512 = vrot.lane.b32.xlu1 %v8737_v54, %s7697_s28 }
0x1889   :  { %4414 = vrot.lane.b32.xlu0 %v8727_v27, %s7697_s28 }
0x18b7   :  { %v3900_v50 = vpop.xlane.xlu1 %3899 }
0x18b8   :  { %7577 = vrcp.f32 %v3900_v50 }
0x18bb   :  { %v3903_v30 = vpop.xlane.xlu0 %3902  ;;  %v7282_v16 = vpop.permute.xlu1 %7281 }
0x18bc   :  { %7579 = vrcp.f32 %v3903_v30  ;;  %v7284_v21 = vunpack.i.h.bf16 %v7282_v16  ;;  %v7283_v43 = vunpack.i.l.bf16 %v7282_v16 }
0x18be   :  { %v7069_v61 = vpack.c.bf16 %v7284_v21, %v7283_v43 }
0x18bf   :  { %v4129_v51 = vpop.permute.xlu0 %4128 }
0x18c2   :  { %v7578_v2 = vpop.eup %7577 }
0x18c3   :  { %v3922_v58 = vmul.f32 %v7578_v2, %v7566_v0 }
0x18c5   :  { %6769 = vmatmul.mubr.msk.f32.vlgmr.msra.gmra.mrb[96].mxu0 %vm610_vm6, %v3922_v58 }
0x18c6   :  { %v7580_v62 = vpop.eup %7579  ;;  %7067 = vmatpush3.bf16.xpose.msk.msra.mxu0 %vm7949_vm4, %v7065_v37  ;;  %6771 = vmatprep.mubr.msk.f32.mxu0 %vm7688_vm0, %v7687_v1 }
0x18c7   :  { %v3923_v44 = vmul.f32 %v7580_v62, %v7568_v17  ;;  %6796 = vmatprep.subr.mxu0 %v7687_v1 }
0x18c9   :  { %6772 = vmatmul.mubr.msk.f32.gmra.mrb[98].mxu0 %vm610_vm6, %v3923_v44 }
0x18ca   :  { %6774 = vmatprep.mubr.msk.f32.mxu0 %vm7688_vm0, %v7687_v1 }
0x18ce   :  { %6797 = vmatpush3.xpose.msk.msra.mxu0 %vm404_vm3, %v4135_v20 }
0x18cf   :  { %7072 = vmatprep.subr.bf16.mxu0 %v7689_v60 }
0x18ec   :  { %v3906_v0 = vpop.xlane.xlu1 %3905 }
0x18ed   :  { %7581 = vrcp.f32 %v3906_v0 }
0x18f0   :  { %v4127_v15 = vpop.permute.xlu1 %4126  ;;  %v3909_v47 = vpop.xlane.xlu0 %3908 }
0x18f1   :  { %7583 = vrcp.f32 %v3909_v47 }
0x18f4   :  { %v4239_v63 = vpop.permute.xlu1 %4238  ;;  %v3912_v17 = vpop.xlane.xlu0 %3911 }
0x18f5   :  { %7585 = vrcp.f32 %v3912_v17 }
0x18f7   :  { %v7582_v38 = vpop.eup %7581 }
0x18f8   :  { %v4231_v7 = vpop.permute.xlu1 %4230  ;;  %v3915_v23 = vpop.xlane.xlu0 %3914  ;;  %v3924_v33 = vmul.f32 %v7582_v38, %v7570_v11 }
0x18f9   :  { %7587 = vrcp.f32 %v3915_v23 }
0x18fa   :  { %6775 = vmatmul.mubr.msk.f32.gmra.mrb[100].mxu0 %vm610_vm6, %v3924_v33 }
0x18fb   :  { %v7584_v41 = vpop.eup %7583  ;;  %6798 = vmatprep.mubr.msk.f32.mxu0 %vm7688_vm0, %v7687_v1 }
0x18fc   :  { %v3925_v3 = vmul.f32 %v7584_v41, %v7572_v55  ;;  %v7287_v25 = vpop.permute.xlu1 %7286  ;;  %v4229_v12 = vpop.permute.xlu0 %4228 }
0x18fd   :  { %v7289_v35 = vunpack.i.h.bf16 %v7287_v25  ;;  %v7288_v5 = vunpack.i.l.bf16 %v7287_v25 }
0x18fe   :  { %6784 = vmatmul.mubr.msk.f32.vlgmr.msra.gmra.mrb[108].mxu1 %vm610_vm6, %v3925_v3  ;;  %6799 = vmatmul.mubr.msk.f32.vlgmr.msra.gmra.mrb[102].mxu0 %vm404_vm3, %v4125_v24 }
0x18ff   :  { %v7586_v11 = vpop.eup %7585  ;;  %v7073_v42 = vpack.c.bf16 %v7289_v35, %v7288_v5  ;;  %7071 = vmatpush3.bf16.xpose.msk.msra.mxu1 %vm7949_vm4, %v7069_v61  ;;  %6786 = vmatprep.mubr.msk.f32.mxu1 %vm7688_vm0, %v7687_v1 }
0x1900   :  { %v8989_v6 = vpop.permute.xlu1 %7291  ;;  %v4233_v55 = vpop.permute.xlu0 %4232  ;;  %6801 = vmatprep.mubr.msk.f32.mxu0 %vm7688_vm0, %v7687_v1  ;;  %v3926_v20 = vmul.f32 %v7586_v11, %v8939_v34  ;;  %6811 = vmatprep.subr.mxu1 %v7687_v1 }
0x1901   :  { %7074 = vmatpush3.bf16.msra.mxu0 %v7073_v42 }
0x1902   :  { %6787 = vmatmul.mubr.msk.f32.gmra.mrb[110].mxu1 %vm610_vm6, %v3926_v20  ;;  %6802 = vmatmul.mubr.msk.f32.gmra.mrb[104].mxu0 %vm404_vm3, %v4127_v15 }
0x1903   :  { %v7588_v24 = vpop.eup %7587  ;;  %6826 = vmatprep.subr.mxu0 %v7687_v1  ;;  %6789 = vmatprep.mubr.msk.f32.mxu1 %vm7688_vm0, %v7687_v1 }
0x1904   :  { %v7297_v50 = vpop.permute.xlu1 %7296  ;;  %v4415_v30 = vpop.permute.xlu0 %4414  ;;  %6804 = vmatprep.mubr.msk.f32.mxu0 %vm7688_vm0, %v7687_v1  ;;  %v3927_v34 = vmul.f32 %v7588_v24, %v8943_v45 }
0x1905   :  { %v7299_v10 = vunpack.i.h.bf16 %v7297_v50  ;;  %v7298_v46 = vunpack.i.l.bf16 %v7297_v50  ;;  %6827 = vmatpush3.msra.mxu0 %v4415_v30 }
0x1906   :  { %6790 = vmatmul.mubr.msk.f32.gmra.mrb[112].mxu1 %vm610_vm6, %v3927_v34  ;;  %6805 = vmatmul.mubr.msk.f32.gmra.mrb[106].mxu0 %vm404_vm3, %v4129_v51 }
0x1907   :  { %v7076_v2 = vpack.c.bf16 %v7299_v10, %v7298_v46  ;;  %6812 = vmatpush3.xpose.msk.msra.mxu1 %vm404_vm3, %v4239_v63  ;;  %6813 = vmatprep.mubr.msk.f32.mxu1 %vm7688_vm0, %v7687_v1 }
0x1908   :  { %7075 = vmatprep.subr.bf16.mxu1 %v7689_v60  ;;  %6828 = vmatprep.mubr.msk.f32.mxu0 %vm7688_vm0, %v7687_v1  ;;  %v4513_v45 = vpop.permute.xlu1 %4512 }
0x1909   :  { %7078 = vmatprep.subr.bf16.mxu0 %v7689_v60 }
0x190a   :  { %6814 = vmatmul.mubr.msk.f32.vlgmr.msra.gmra.mrb[114].mxu1 %vm404_vm3, %v4229_v12 }
0x190b   :  { %7077 = vmatpush3.bf16.msra.mxu1 %v7076_v2  ;;  %6816 = vmatprep.mubr.msk.f32.mxu1 %vm7688_vm0, %v7687_v1 }
0x190c   :  { %6841 = vmatprep.subr.mxu1 %v7687_v1 }
0x190e   :  { %6817 = vmatmul.mubr.msk.f32.gmra.mrb[116].mxu1 %vm404_vm3, %v4231_v7 }
0x190f   :  { %6842 = vmatpush3.msra.mxu1 %v4513_v45  ;;  %6819 = vmatprep.mubr.msk.f32.mxu1 %vm7688_vm0, %v7687_v1 }
0x1910   :  { %7082 = vmatprep.subr.bf16.mxu1 %v7689_v60 }
0x1912   :  { %6820 = vmatmul.mubr.msk.f32.gmra.mrb[118].mxu1 %vm404_vm3, %v4233_v55 }
0x1913   :  { %6843 = vmatprep.mubr.msk.f32.mxu1 %vm7688_vm0, %v7687_v1 }
0x1998   :  { %v9023_v58 = vpop.f32.mrb[96].mxu0 }
0x1999   :  { %v6770_v37 = vpop.f32.mrb[97].mxu0 }
0x199c   :  { %v9025_v62 = vpop.f32.mrb[98].mxu0 }
0x199d   :  { %v7315_v44 = vpack.i.bf16 %v9025_v62, %v9023_v58  ;;  %v6773_v16 = vpop.f32.mrb[99].mxu0 }
0x19cd   :  { %v9029_v51 = vpop.f32.mrb[100].mxu0 }
0x19ce   :  { %v6776_v0 = vpop.f32.mrb[101].mxu0 }
0x19d1   :  { %v9031_v15 = vpop.f32.mrb[108].mxu1  ;;  %v4214_v47 = vpop.f32.mrb[102].mxu0 }
0x19d2   :  { %v7330_v63 = vpack.i.bf16 %v9031_v15, %v9029_v51  ;;  %v4332_v17 = vmul.f32 0.35355338, %v4214_v47  ;;  %v6785_v38 = vpop.f32.mrb[109].mxu1  ;;  %v6800_v7 = vpop.f32.mrb[103].mxu0 }
0x19d4   :  { %v4338_v23 = vadd.f32 %v4332_v17, %v7989_v49 }
0x19d5   :  { %v9036_v33 = vpop.f32.mrb[110].mxu1  ;;  %v4219_v21 = vpop.f32.mrb[104].mxu0 }
0x19d6   :  { %v4333_v43 = vmul.f32 0.35355338, %v4219_v21  ;;  %v6788_v41 = vpop.f32.mrb[111].mxu1  ;;  %v6803_v3 = vpop.f32.mrb[105].mxu0  ;;  %v4344_v25 = vsel %vm610_vm6, %v4338_v23, -inf }
0x19d7   :  { %4345 = vmax.xlane.f32.xlu1 %v4344_v25 }
0x19d8   :  { %v4339_v12 = vadd.f32 %v4333_v43, %v7989_v49 }
0x19d9   :  { %v9040_v61 = vpop.f32.mrb[112].mxu1  ;;  %v4224_v35 = vpop.f32.mrb[106].mxu0 }
0x19da   :  { %v7345_v5 = vpack.i.bf16 %v9040_v61, %v9036_v33  ;;  %v4334_v11 = vmul.f32 0.35355338, %v4224_v35  ;;  %v6791_v42 = vpop.f32.mrb[113].mxu1  ;;  %v6806_v55 = vpop.f32.mrb[107].mxu0  ;;  %v4347_v20 = vsel %vm610_vm6, %v4339_v12, -inf }
0x19db   :  { %4348 = vmax.xlane.f32.xlu0 %v4347_v20 }
0x19dc   :  { %v4340_v24 = vadd.f32 %v4334_v11, %v7989_v49 }
0x19dd   :  { %v4318_v50 = vpop.f32.mrb[114].mxu1 }
0x19de   :  { %v4335_v30 = vmul.f32 0.35355338, %v4318_v50  ;;  %v6815_v34 = vpop.f32.mrb[115].mxu1  ;;  %v4350_v10 = vsel %vm610_vm6, %v4340_v24, -inf }
0x19df   :  { %4351 = vmax.xlane.f32.xlu0 %v4350_v10 }
0x19e0   :  { %v4341_v46 = vadd.f32 %v4335_v30, %v7989_v49 }
0x19e1   :  { %v4323_v2 = vpop.f32.mrb[116].mxu1 }
0x19e2   :  { %v4336_v45 = vmul.f32 0.35355338, %v4323_v2  ;;  %v6818_v37 = vpop.f32.mrb[117].mxu1  ;;  %v4353_v16 = vsel %vm610_vm6, %v4341_v46, -inf }
0x19e3   :  { %4354 = vmax.xlane.f32.xlu0 %v4353_v16 }
0x19e4   :  { %v4342_v0 = vadd.f32 %v4336_v45, %v7989_v49 }
0x19e5   :  { %v4328_v47 = vpop.f32.mrb[118].mxu1 }
0x19e6   :  { %v4337_v17 = vmul.f32 0.35355338, %v4328_v47  ;;  %v6821_v38 = vpop.f32.mrb[119].mxu1  ;;  %v4356_v7 = vsel %vm610_vm6, %v4342_v0, -inf }
0x19e7   :  { %4357 = vmax.xlane.f32.xlu1 %v4356_v7 }
0x19e8   :  { %v4343_v21 = vadd.f32 %v4337_v17, %v7989_v49 }
0x19ea   :  { %v4359_v43 = vsel %vm610_vm6, %v4343_v21, -inf }
0x19eb   :  { %4360 = vmax.xlane.f32.xlu0 %v4359_v43 }
0x19f8   :  { %4616 = vrot.lane.b32.xlu1 %v8727_v27, %s7698_s29 }
0x1a01   :  { %4606 = vrot.lane.b32.xlu0 %v8717_v52, %s7699_s0 }
0x1a64   :  { %v4346_v41 = vpop.xlane.xlu1 %4345 }
0x1a65   :  { %v4362_v3 = vsub.f32 %v4338_v23, %v4346_v41 }
0x1a67   :  { %v4368_v25 = vmul.f32 1.442695, %v4362_v3 }
0x1a68   :  { %v4349_v35 = vpop.xlane.xlu0 %4348 }
0x1a69   :  { %7589 = vpow2.f32 %v4368_v25  ;;  %v4363_v11 = vsub.f32 %v4339_v12, %v4349_v35 }
0x1a6b   :  { %v4370_v42 = vmul.f32 1.442695, %v4363_v11 }
0x1a6c   :  { %v4352_v52 = vpop.xlane.xlu0 %4351 }
0x1a6d   :  { %7591 = vpow2.f32 %v4370_v42  ;;  %v4364_v23 = vsub.f32 %v4340_v24, %v4352_v52 }
0x1a6f   :  { %v4372_v12 = vmul.f32 1.442695, %v4364_v23 }
0x1a70   :  { %v4355_v34 = vpop.xlane.xlu0 %4354 }
0x1a71   :  { %v4365_v10 = vsub.f32 %v4341_v46, %v4355_v34  ;;  %7593 = vpow2.f32 %v4372_v12 }
0x1a73   :  { %v7590_v55 = vpop.eup %7589  ;;  %v4374_v45 = vmul.f32 1.442695, %v4365_v10 }
0x1a74   :  { %v4380_v20 = vsel %vm610_vm6, %v7590_v55, 0.0  ;;  %v4358_v2 = vpop.xlane.xlu1 %4357 }
0x1a75   :  { %4381 = vadd.xlane.f32.xlu1 %v4380_v20  ;;  %v4366_v37 = vsub.f32 %v4342_v0, %v4358_v2  ;;  %7595 = vpow2.f32 %v4374_v45  ;;  %v7293_v20 = vunpack.i.l.bf16 %v8989_v6 }
0x1a77   :  { %v7592_v50 = vpop.eup %7591  ;;  %v4376_v47 = vmul.f32 1.442695, %v4366_v37 }
0x1a78   :  { %v4383_v30 = vsel %vm610_vm6, %v7592_v50, 0.0  ;;  %v4361_v16 = vpop.xlane.xlu0 %4360 }
0x1a79   :  { %4384 = vadd.xlane.f32.xlu0 %v4383_v30  ;;  %v4367_v17 = vsub.f32 %v4343_v21, %v4361_v16  ;;  %7597 = vpow2.f32 %v4376_v47  ;;  %v4617_v21 = vpop.permute.xlu1 %4616 }
0x1a7b   :  { %v4378_v38 = vmul.f32 1.442695, %v4367_v17  ;;  %v7594_v7 = vpop.eup %7593 }
0x1a7c   :  { %v4386_v43 = vsel %vm610_vm6, %v7594_v7, 0.0  ;;  %v4607_v35 = vpop.permute.xlu0 %4606 }
0x1a7d   :  { %7599 = vpow2.f32 %v4378_v38 }
0x1a7f   :  { %v7596_v41 = vpop.eup %7595 }
0x1a80   :  { %v4389_v24 = vsel %vm610_vm6, %v7596_v41, 0.0 }
0x1a83   :  { %v7598_v3 = vpop.eup %7597 }
0x1a84   :  { %v4392_v46 = vsel %vm610_vm6, %v7598_v3, 0.0 }
0x1a86   :  { %7301 = vrot.lane.b32.xlu1 %v8741_v8, %s7698_s29 }
0x1a87   :  { %v9066_v25 = vpop.eup %7599 }
0x1a88   :  { %v4395_v0 = vsel %vm610_vm6, %v9066_v25, 0.0 }
0x1a8f   :  { %4720 = vrot.lane.b32.xlu0 %v8737_v54, %s7698_s29 }
0x1aaa   :  { %4387 = vadd.xlane.f32.xlu1 %v4386_v43 }
0x1aae   :  { %4390 = vadd.xlane.f32.xlu0 %v4389_v24 }
0x1ab2   :  { %4393 = vadd.xlane.f32.xlu0 %v4392_v46 }
0x1ab6   :  { %4396 = vadd.xlane.f32.xlu0 %v4395_v0 }
0x1abb   :  { %4608 = vrot.lane.b32.xlu1 %v8719_v4, %s7699_s0  ;;  %v7294_v4 = vunpack.i.h.bf16 %v8989_v6 }
0x1abd   :  { %v7079_v23 = vpack.c.bf16 %v7294_v4, %v7293_v20 }
0x1abf   :  { %4610 = vrot.lane.b32.xlu1 %v8727_v27, %s7699_s0 }
0x1ac3   :  { %4712 = vrot.lane.b32.xlu1 %v8735_v56, %s7699_s0 }
0x1acc   :  { %4710 = vrot.lane.b32.xlu0 %v8733_v28, %s7699_s0 }
0x1ad0   :  { %4714 = vrot.lane.b32.xlu0 %v8737_v54, %s7699_s0  ;;  %s7704_s0 = smov [#allocation2]  }
0x1b02   :  { %v4382_v11 = vpop.xlane.xlu1 %4381 }
0x1b03   :  { %7601 = vrcp.f32 %v4382_v11 }
0x1b06   :  { %v4385_v42 = vpop.xlane.xlu0 %4384  ;;  %v7302_v6 = vpop.permute.xlu1 %7301 }
0x1b07   :  { %7603 = vrcp.f32 %v4385_v42  ;;  %v7304_v37 = vunpack.i.h.bf16 %v7302_v6  ;;  %v7303_v16 = vunpack.i.l.bf16 %v7302_v6 }
0x1b09   :  { %v7083_v38 = vpack.c.bf16 %v7304_v37, %v7303_v16 }
0x1b0d   :  { %v7602_v30 = vpop.eup %7601 }
0x1b0e   :  { %v4404_v52 = vmul.f32 %v7602_v30, %v7590_v55  ;;  %v4721_v55 = vpop.permute.xlu0 %4720 }
0x1b10   :  { %6829 = vmatmul.mubr.msk.f32.vlgmr.msra.gmra.mrb[108].mxu0 %vm610_vm6, %v4404_v52 }
0x1b11   :  { %v7604_v56 = vpop.eup %7603  ;;  %7081 = vmatpush3.bf16.xpose.msk.msra.mxu0 %vm7949_vm4, %v7079_v23  ;;  %6831 = vmatprep.mubr.msk.f32.mxu0 %vm7688_vm0, %v7687_v1 }
0x1b12   :  { %v4405_v28 = vmul.f32 %v7604_v56, %v7592_v50  ;;  %6856 = vmatprep.subr.mxu0 %v7687_v1 }
0x1b14   :  { %6832 = vmatmul.mubr.msk.f32.gmra.mrb[110].mxu0 %vm610_vm6, %v4405_v28 }
0x1b15   :  { %6834 = vmatprep.mubr.msk.f32.mxu0 %vm7688_vm0, %v7687_v1 }
0x1b19   :  { %6857 = vmatpush3.xpose.msk.msra.mxu0 %vm404_vm3, %v4617_v21 }
0x1b1a   :  { %7086 = vmatprep.subr.bf16.mxu0 %v7689_v60 }
0x1b37   :  { %v4388_v34 = vpop.xlane.xlu1 %4387 }
0x1b38   :  { %7605 = vrcp.f32 %v4388_v34 }
0x1b3b   :  { %v4391_v12 = vpop.xlane.xlu0 %4390  ;;  %v4609_v24 = vpop.permute.xlu1 %4608 }
0x1b3c   :  { %7607 = vrcp.f32 %v4391_v12 }
0x1b3f   :  { %v4394_v10 = vpop.xlane.xlu0 %4393  ;;  %v4611_v46 = vpop.permute.xlu1 %4610 }
0x1b40   :  { %7609 = vrcp.f32 %v4394_v10 }
0x1b42   :  { %v7606_v50 = vpop.eup %7605 }
0x1b43   :  { %v4397_v2 = vpop.xlane.xlu0 %4396  ;;  %v4406_v45 = vmul.f32 %v7606_v50, %v7594_v7 }
0x1b44   :  { %7611 = vrcp.f32 %v4397_v2 }
0x1b45   :  { %6835 = vmatmul.mubr.msk.f32.gmra.mrb[112].mxu0 %vm610_vm6, %v4406_v45 }
0x1b46   :  { %v7608_v47 = vpop.eup %7607  ;;  %6858 = vmatprep.mubr.msk.f32.mxu0 %vm7688_vm0, %v7687_v1 }
0x1b47   :  { %v4407_v17 = vmul.f32 %v7608_v47, %v7596_v41 }
0x1b49   :  { %6844 = vmatmul.mubr.msk.f32.vlgmr.msra.gmra.mrb[120].mxu1 %vm610_vm6, %v4407_v17  ;;  %6859 = vmatmul.mubr.msk.f32.vlgmr.msra.gmra.mrb[114].mxu0 %vm404_vm3, %v4607_v35 }
0x1b4a   :  { %v7610_v43 = vpop.eup %7609  ;;  %7085 = vmatpush3.bf16.xpose.msk.msra.mxu1 %vm7949_vm4, %v7083_v38  ;;  %6846 = vmatprep.mubr.msk.f32.mxu1 %vm7688_vm0, %v7687_v1 }
0x1b4b   :  { %6861 = vmatprep.mubr.msk.f32.mxu0 %vm7688_vm0, %v7687_v1  ;;  %v4408_v7 = vmul.f32 %v7610_v43, %v7598_v3  ;;  %6871 = vmatprep.subr.mxu1 %v7687_v1  ;;  %v4711_v3 = vpop.permute.xlu0 %4710 }
0x1b4d   :  { %6847 = vmatmul.mubr.msk.f32.gmra.mrb[122].mxu1 %vm610_vm6, %v4408_v7  ;;  %6862 = vmatmul.mubr.msk.f32.gmra.mrb[116].mxu0 %vm404_vm3, %v4609_v24 }
0x1b4e   :  { %v7612_v41 = vpop.eup %7611  ;;  %6849 = vmatprep.mubr.msk.f32.mxu1 %vm7688_vm0, %v7687_v1  ;;  %6864 = vmatprep.mubr.msk.f32.mxu0 %vm7688_vm0, %v7687_v1 }
0x1b4f   :  { %v4409_v39 = vmul.f32 %v7612_v41, %v9066_v25  ;;  %v4713_v25 = vpop.permute.xlu1 %4712  ;;  %v4715_v0 = vpop.permute.xlu0 %4714 }
0x1b51   :  { %6850 = vmatmul.mubr.msk.f32.gmra.mrb[124].mxu1 %vm610_vm6, %v4409_v39  ;;  %6865 = vmatmul.mubr.msk.f32.gmra.mrb[118].mxu0 %vm404_vm3, %v4611_v46 }
0x1b52   :  { %6872 = vmatpush3.xpose.msk.msra.mxu1 %vm404_vm3, %v4721_v55  ;;  %6873 = vmatprep.mubr.msk.f32.mxu1 %vm7688_vm0, %v7687_v1 }
0x1b53   :  { %7089 = vmatprep.subr.bf16.mxu1 %v7689_v60  ;;  %6888 = vmatprep.mubr.msk.f32.mxu0 %vm7688_vm0, %v7687_v1 }
0x1b55   :  { %6874 = vmatmul.mubr.msk.f32.vlgmr.msra.gmra.mrb[126].mxu1 %vm404_vm3, %v4711_v3 }
0x1b56   :  { %6876 = vmatprep.mubr.msk.f32.mxu1 %vm7688_vm0, %v7687_v1 }
0x1b59   :  { %6877 = vmatmul.mubr.msk.f32.gmra.mrb[128].mxu1 %vm404_vm3, %v4713_v25 }
0x1b5a   :  { %6879 = vmatprep.mubr.msk.f32.mxu1 %vm7688_vm0, %v7687_v1 }
0x1b5d   :  { %6880 = vmatmul.mubr.msk.f32.gmra.mrb[130].mxu1 %vm404_vm3, %v4715_v0 }
0x1b5e   :  { %6903 = vmatprep.mubr.msk.f32.mxu1 %vm7688_vm0, %v7687_v1 }
0x1be3   :  { %v9129_v60 = vpop.f32.mrb[108].mxu0 }
0x1be4   :  { %v6830_v21 = vpop.f32.mrb[109].mxu0 }
0x1be7   :  { %v9131_v35 = vpop.f32.mrb[110].mxu0 }
0x1be8   :  { %v7320_v11 = vpack.i.bf16 %v9131_v35, %v9129_v60  ;;  %v6833_v42 = vpop.f32.mrb[111].mxu0 }
0x1c18   :  { %v9135_v4 = vpop.f32.mrb[112].mxu0 }
0x1c19   :  { %v6836_v20 = vpop.f32.mrb[113].mxu0 }
0x1c1c   :  { %v9137_v30 = vpop.f32.mrb[120].mxu1  ;;  %v4696_v52 = vpop.f32.mrb[114].mxu0 }
0x1c1d   :  { %v7335_v23 = vpack.i.bf16 %v9137_v30, %v9135_v4  ;;  %v4814_v56 = vmul.f32 0.35355338, %v4696_v52  ;;  %v6845_v28 = vpop.f32.mrb[121].mxu1  ;;  %v6860_v6 = vpop.f32.mrb[115].mxu0 }
0x1c1f   :  { %v4820_v55 = vadd.f32 %v4814_v56, %v7989_v49 }
0x1c20   :  { %v9142_v34 = vpop.f32.mrb[122].mxu1  ;;  %v4701_v12 = vpop.f32.mrb[116].mxu0 }
0x1c21   :  { %v4815_v10 = vmul.f32 0.35355338, %v4701_v12  ;;  %v6848_v50 = vpop.f32.mrb[123].mxu1  ;;  %v6863_v2 = vpop.f32.mrb[117].mxu0  ;;  %v4826_v45 = vsel %vm610_vm6, %v4820_v55, -inf }
0x1c22   :  { %4827 = vmax.xlane.f32.xlu1 %v4826_v45 }
0x1c23   :  { %v4821_v37 = vadd.f32 %v4815_v10, %v7989_v49 }
0x1c24   :  { %v9146_v16 = vpop.f32.mrb[124].mxu1  ;;  %v4706_v47 = vpop.f32.mrb[118].mxu0 }
0x1c25   :  { %v7350_v17 = vpack.i.bf16 %v9146_v16, %v9142_v34  ;;  %v4816_v38 = vmul.f32 0.35355338, %v4706_v47  ;;  %v6851_v43 = vpop.f32.mrb[125].mxu1  ;;  %v6866_v24 = vpop.f32.mrb[119].mxu0  ;;  %v4829_v7 = vsel %vm610_vm6, %v4821_v37, -inf }
0x1c26   :  { %4830 = vmax.xlane.f32.xlu0 %v4829_v7 }
0x1c27   :  { %v4822_v41 = vadd.f32 %v4816_v38, %v7989_v49 }
0x1c28   :  { %v4800_v39 = vpop.f32.mrb[126].mxu1 }
0x1c29   :  { %v4817_v46 = vmul.f32 0.35355338, %v4800_v39  ;;  %v6875_v3 = vpop.f32.mrb[127].mxu1  ;;  %v4832_v25 = vsel %vm610_vm6, %v4822_v41, -inf }
0x1c2a   :  { %4833 = vmax.xlane.f32.xlu0 %v4832_v25 }
0x1c2b   :  { %v4823_v0 = vadd.f32 %v4817_v46, %v7989_v49 }
0x1c2c   :  { %v4805_v21 = vpop.f32.mrb[128].mxu1 }
0x1c2d   :  { %v6878_v42 = vpop.f32.mrb[129].mxu1  ;;  %v4835_v20 = vsel %vm610_vm6, %v4823_v0, -inf }
0x1c2e   :  { %4836 = vmax.xlane.f32.xlu0 %v4835_v20 }
0x1c30   :  { %v4810_v52 = vpop.f32.mrb[130].mxu1 }
0x1c31   :  { %v6881_v56 = vpop.f32.mrb[131].mxu1 }
0x1c33   :  { %7306 = vrot.lane.b32.xlu1 %v8723_v59, %s7700_s30 }
0x1caf   :  { %v4828_v28 = vpop.xlane.xlu1 %4827 }
0x1cb0   :  { %v4844_v6 = vsub.f32 %v4820_v55, %v4828_v28 }
0x1cb2   :  { %v4850_v12 = vmul.f32 1.442695, %v4844_v6  ;;  %v4819_v6 = vmul.f32 0.35355338, %v4810_v52 }
0x1cb3   :  { %v7307_v10 = vpop.permute.xlu1 %7306  ;;  %v4831_v50 = vpop.xlane.xlu0 %4830 }
0x1cb4   :  { %7613 = vpow2.f32 %v4850_v12  ;;  %v7309_v2 = vunpack.i.h.bf16 %v7307_v10  ;;  %v7308_v45 = vunpack.i.l.bf16 %v7307_v10  ;;  %v4845_v47 = vsub.f32 %v4821_v37, %v4831_v50 }
0x1cb5   :  { %v4825_v10 = vadd.f32 %v4819_v6, %v7989_v49  ;;  %v7383_v6 = vld [vmem:[%s9424_s6 + $0x10] sm:$0xff]  }
0x1cb6   :  { %v7087_v38 = vpack.c.bf16 %v7309_v2, %v7308_v45  ;;  %v4852_v43 = vmul.f32 1.442695, %v4845_v47 }
0x1cb7   :  { %v4834_v24 = vpop.xlane.xlu0 %4833  ;;  %v4841_v2 = vsel %vm610_vm6, %v4825_v10, -inf }
0x1cb8   :  { %7615 = vpow2.f32 %v4852_v43  ;;  %v4846_v7 = vsub.f32 %v4822_v41, %v4834_v24  ;;  %7088 = vmatpush3.bf16.msra.mxu0 %v7087_v38 }
0x1cb9   :  { %6886 = vmatprep.subr.mxu0 %v7687_v1 }
0x1cba   :  { %v4854_v39 = vmul.f32 1.442695, %v4846_v7 }
0x1cbb   :  { %v4837_v46 = vpop.xlane.xlu0 %4836 }
0x1cbc   :  { %7617 = vpow2.f32 %v4854_v39  ;;  %v4847_v59 = vsub.f32 %v4823_v0, %v4837_v46  ;;  %v4818_v0 = vmul.f32 0.35355338, %v4805_v21 }
0x1cbe   :  { %v7614_v55 = vpop.eup %7613  ;;  %v4856_v3 = vmul.f32 1.442695, %v4847_v59  ;;  %v4824_v12 = vadd.f32 %v4818_v0, %v7989_v49 }
0x1cbf   :  { %v4862_v25 = vsel %vm610_vm6, %v7614_v55, 0.0 }
0x1cc0   :  { %7619 = vpow2.f32 %v4856_v3  ;;  %4863 = vadd.xlane.f32.xlu1 %v4862_v25  ;;  %v4838_v50 = vsel %vm610_vm6, %v4824_v12, -inf }
0x1cc2   :  { %v7616_v42 = vpop.eup %7615 }
0x1cc3   :  { %v4865_v37 = vsel %vm610_vm6, %v7616_v42, 0.0 }
0x1cc4   :  { %4866 = vadd.xlane.f32.xlu0 %v4865_v37 }
0x1cc6   :  { %v7618_v20 = vpop.eup %7617 }
0x1cc7   :  { %v4868_v41 = vsel %vm610_vm6, %v7618_v20, 0.0 }
0x1cc8   :  { %4869 = vadd.xlane.f32.xlu1 %v4868_v41 }
0x1cca   :  { %v7620_v56 = vpop.eup %7619 }
0x1ccb   :  { %v4871_v28 = vsel %vm610_vm6, %v7620_v56, 0.0 }
0x1ccc   :  { %4872 = vadd.xlane.f32.xlu0 %v4871_v28 }
0x1cd9   :  { %7311 = vrot.lane.b32.xlu1 %v8741_v8, %s7700_s30 }
0x1cdd   :  { %4994 = vrot.lane.b32.xlu1 %v8737_v54, %s7700_s30 }
0x1ce2   :  { %4896 = vrot.lane.b32.xlu0 %v8727_v27, %s7700_s30 }
0x1d01   :  { %4839 = vmax.xlane.f32.xlu1 %v4838_v50  ;;  %4842 = vmax.xlane.f32.xlu0 %v4841_v2 }
0x1d12   :  { %7316 = vrot.lane.b32.xlu1 %v7315_v44, %s9441_s5 }
0x1d4d   :  { %v4864_v54 = vpop.xlane.xlu1 %4863 }
0x1d4e   :  { %7621 = vrcp.f32 %v4864_v54 }
0x1d51   :  { %v4867_v27 = vpop.xlane.xlu0 %4866 }
0x1d52   :  { %7623 = vrcp.f32 %v4867_v27 }
0x1d55   :  { %v4870_v8 = vpop.xlane.xlu1 %4869 }
0x1d56   :  { %7625 = vrcp.f32 %v4870_v8 }
0x1d58   :  { %v7622_v49 = vpop.eup %7621 }
0x1d59   :  { %v7312_v21 = vpop.permute.xlu1 %7311  ;;  %v4873_v52 = vpop.xlane.xlu0 %4872  ;;  %v4886_v43 = vmul.f32 %v7622_v49, %v7614_v55 }
0x1d5a   :  { %v7314_v45 = vunpack.i.h.bf16 %v7312_v21  ;;  %v7313_v47 = vunpack.i.l.bf16 %v7312_v21  ;;  %7627 = vrcp.f32 %v4873_v52 }
0x1d5c   :  { %v7090_v38 = vpack.c.bf16 %v7314_v45, %v7313_v47  ;;  %v7624_v7 = vpop.eup %7623 }
0x1d5d   :  { %v4897_v24 = vpop.permute.xlu0 %4896  ;;  %v4995_v58 = vpop.permute.xlu1 %4994  ;;  %v4887_v62 = vmul.f32 %v7624_v7, %v7616_v42 }
0x1d5e   :  { %6887 = vmatpush3.msra.mxu0 %v4897_v24  ;;  %7091 = vmatpush3.bf16.msra.mxu1 %v7090_v38 }
0x1d5f   :  { %6889 = vmatmul.mubr.msk.f32.vlgmr.msra.gmra.mrb[120].mxu0 %vm610_vm6, %v4886_v43  ;;  %6901 = vmatprep.subr.mxu1 %v7687_v1 }
0x1d60   :  { %6891 = vmatprep.mubr.msk.f32.mxu0 %vm7688_vm0, %v7687_v1  ;;  %6912 = vmatprep.subr.bf16.mxu0 %v7687_v1  ;;  %v7626_v44 = vpop.eup %7625 }
0x1d61   :  { %v4888_v59 = vmul.f32 %v7626_v44, %v7618_v20  ;;  %6913 = vmatpush3.bf16.msra.mxu0 %v7383_v6 }
0x1d62   :  { %6902 = vmatpush3.msra.mxu1 %v4995_v58  ;;  %6914 = vmatprep.subr.bf16.mxu0 %v7687_v1 }
0x1d63   :  { %6892 = vmatmul.mubr.msk.f32.gmra.mrb[122].mxu0 %vm610_vm6, %v4887_v62  ;;  %6928 = vmatprep.subr.bf16.mxu1 %v7687_v1 }
0x1d64   :  { %v7628_v39 = vpop.eup %7627  ;;  %6894 = vmatprep.mubr.msk.f32.mxu0 %vm7688_vm0, %v7687_v1 }
0x1d65   :  { %v4889_v46 = vmul.f32 %v7628_v39, %v7620_v56 }
0x1d67   :  { %6895 = vmatmul.mubr.msk.f32.gmra.mrb[124].mxu0 %vm610_vm6, %v4888_v59  ;;  %6904 = vmatmul.mubr.msk.f32.vlgmr.msra.gmra.mrb[132].mxu1 %vm610_vm6, %v4889_v46 }
0x1d68   :  { %6906 = vmatprep.mubr.msk.f32.mxu1 %vm7688_vm0, %v7687_v1  ;;  %6916 = vmatprep.mubr.msk.bf16.mxu0 %vm7688_vm0, %v7687_v1 }
0x1d8e   :  { %v4840_v55 = vpop.xlane.xlu1 %4839  ;;  %v4843_v3 = vpop.xlane.xlu0 %4842 }
0x1d8f   :  { %v4848_v25 = vsub.f32 %v4824_v12, %v4840_v55  ;;  %v4849_v42 = vsub.f32 %v4825_v10, %v4843_v3  ;;  %v7384_v10 = vld [vmem:[%s9424_s6 + $0x18] sm:$0xff]  }
0x1d90   :  { %6915 = vmatpush3.bf16.msra.mxu0 %v7384_v10 }
0x1d91   :  { %v4858_v37 = vmul.f32 1.442695, %v4848_v25  ;;  %v4860_v41 = vmul.f32 1.442695, %v4849_v42  ;;  %6944 = vmatprep.subr.bf16.mxu0 %v7687_v1 }
0x1d92   :  { %v7317_v51 = vpop.permute.xlu1 %7316 }
0x1d93   :  { %7629 = vpow2.f32 %v4858_v37  ;;  %v7318_v24 = vunpack.i.l.bf16 %v7317_v51 }
0x1d94   :  { %7631 = vpow2.f32 %v4860_v41 }
0x1d95   :  { %v5160_v30 = vsel %vm404_vm3, %v8903_v31, %v7318_v24 }
0x1d9d   :  { %v7630_v56 = vpop.eup %7629 }
0x1d9e   :  { %v4874_v20 = vsel %vm610_vm6, %v7630_v56, 0.0  ;;  %v7632_v28 = vpop.eup %7631 }
0x1d9f   :  { %4875 = vadd.xlane.f32.xlu0 %v4874_v20  ;;  %v4877_v0 = vsel %vm610_vm6, %v7632_v28, 0.0 }
0x1da3   :  { %4878 = vadd.xlane.f32.xlu0 %v4877_v0 }
0x1db9   :  { %7321 = vrot.lane.b32.xlu0 %v7320_v11, %s9442_s22 }
0x1e2c   :  { %v4876_v12 = vpop.xlane.xlu0 %4875 }
0x1e2d   :  { %7633 = vrcp.f32 %v4876_v12 }
0x1e30   :  { %v4879_v50 = vpop.xlane.xlu0 %4878 }
0x1e31   :  { %7635 = vrcp.f32 %v4879_v50 }
0x1e32   :  { %v4976_v60 = vpop.f32.mrb[120].mxu0 }
0x1e33   :  { %v6890_v35 = vpop.f32.mrb[121].mxu0 }
0x1e34   :  { %v7322_v15 = vpop.permute.xlu0 %7321 }
0x1e35   :  { %v7324_v7 = vunpack.i.h.bf16 %v7322_v15  ;;  %v7323_v58 = vunpack.i.l.bf16 %v7322_v15 }
0x1e36   :  { %v4981_v11 = vpop.f32.mrb[122].mxu0 }
0x1e37   :  { %v7634_v2 = vpop.eup %7633  ;;  %v7325_v54 = vpack.i.bf16 %v4981_v11, %v4976_v60  ;;  %v6893_v27 = vpop.f32.mrb[123].mxu0  ;;  %v5166_v33 = vsel %vm2397_vm7, %v5160_v30, %v7323_v58 }
0x1e38   :  { %v4890_v8 = vmul.f32 %v7634_v2, %v7630_v56 }
0x1e39   :  { %7326 = vrot.lane.b32.xlu1 %v7325_v54, %s9443_s26  ;;  %v9255_v54 = vld [vmem:[%s9425_s7 + $0x1] ss:$0 sm:$0xff] }
0x1e3a   :  { %v4986_v21 = vpop.f32.mrb[124].mxu0  ;;  %v5074_v52 = vpop.f32.mrb[132].mxu1  ;;  %6907 = vmatmul.mubr.msk.f32.gmra.mrb[134].mxu1 %vm610_vm6, %v4890_v8 }
0x1e3b   :  { %v7636_v49 = vpop.eup %7635  ;;  %v7340_v45 = vpack.i.bf16 %v5074_v52, %v4986_v21  ;;  %v6896_v47 = vpop.f32.mrb[125].mxu0  ;;  %6909 = vmatprep.mubr.msk.f32.mxu1 %vm7688_vm0, %v7687_v1 }
0x1e3c   :  { %v6905_v38 = vpop.f32.mrb[133].mxu1  ;;  %v4891_v43 = vmul.f32 %v7636_v49, %v7632_v28 }
0x1e3d   :  { %7331 = vrot.lane.b32.xlu1 %v7330_v63, %s9441_s5  ;;  %7341 = vrot.lane.b32.xlu0 %v7340_v45, %s9443_s26  ;;  %v7319_v63 = vunpack.i.h.bf16 %v7317_v51 }
0x1e3e   :  { %6910 = vmatmul.mubr.msk.f32.gmra.mrb[136].mxu1 %vm610_vm6, %v4891_v43 }
0x1e3f   :  { %6932 = vmatprep.mubr.msk.bf16.mxu1 %vm7688_vm0, %v7687_v1  ;;  %v5161_v4 = vsel %vm404_vm3, %v8905_v18, %v7319_v63 }
0x1e40   :  { %v5167_v16 = vsel %vm2397_vm7, %v5161_v4, %v7324_v7 }
0x1e41   :  { %7336 = vrot.lane.b32.xlu1 %v7335_v23, %s9442_s22  ;;  %7351 = vrot.lane.b32.xlu0 %v7350_v17, %s9442_s22 }
0x1e45   :  { %7346 = vrot.lane.b32.xlu1 %v7345_v5, %s9441_s5 }
0x1eab   :  { %v7327_v62 = vpop.permute.xlu1 %7326 }
0x1eac   :  { %v7329_v23 = vunpack.i.h.bf16 %v7327_v62  ;;  %v7328_v34 = vunpack.i.l.bf16 %v7327_v62 }
0x1eae   :  { %v5173_v61 = vsel %vm610_vm6, %v5167_v16, %v7329_v23  ;;  %v5172_v5 = vsel %vm610_vm6, %v5166_v33, %v7328_v34 }
0x1eaf   :  { %v5178_v17 = vpack.c.bf16 %v5173_v61, %v5172_v5  ;;  %v7332_v44 = vpop.permute.xlu1 %7331  ;;  %v7342_v18 = vpop.permute.xlu0 %7341 }
0x1eb0   :  { %v7334_v39 = vunpack.i.h.bf16 %v7332_v44  ;;  %v7333_v46 = vunpack.i.l.bf16 %v7332_v44  ;;  %v7344_v42 = vunpack.i.h.bf16 %v7342_v18  ;;  %v7343_v37 = vunpack.i.l.bf16 %v7342_v18 }
0x1eb1   :  { %6917 = vmatmul.mubr.msk.bf16.vlgmr.msra.gmra.mrb[128].mxu0 %vm183_vm2, %v5178_v17 }
0x1eb2   :  { %6920 = vmatprep.mubr.msk.bf16.mxu0 %vm7688_vm0, %v7687_v1  ;;  %v5163_v3 = vsel %vm404_vm3, %v8909_v48, %v7334_v39  ;;  %v5162_v25 = vsel %vm404_vm3, %v8907_v29, %v7333_v46 }
0x1eb3   :  { %v7337_v31 = vpop.permute.xlu1 %7336  ;;  %v7352_v11 = vpop.permute.xlu0 %7351 }
0x1eb4   :  { %v7339_v59 = vunpack.i.h.bf16 %v7337_v31  ;;  %v7338_v55 = vunpack.i.l.bf16 %v7337_v31  ;;  %v7354_v49 = vunpack.i.h.bf16 %v7352_v11  ;;  %v7353_v45 = vunpack.i.l.bf16 %v7352_v11  ;;  %v7385_v11 = vld [vmem:[%s9426_s8 + $0x10] sm:$0xff]  }
0x1eb5   :  { %6929 = vmatpush3.bf16.msra.mxu1 %v7385_v11  ;;  %v7393_v11 = vld [vmem:[%s9428_s10 + $0x70] sm:$0xff]  }
0x1eb6   :  { %v5168_v41 = vsel %vm2397_vm7, %v5162_v25, %v7338_v55  ;;  %v5169_v56 = vsel %vm2397_vm7, %v5163_v3, %v7339_v59  ;;  %6930 = vmatprep.subr.bf16.mxu1 %v7687_v1 }
0x1eb7   :  { %v5174_v20 = vsel %vm610_vm6, %v5168_v41, %v7343_v37  ;;  %v5175_v28 = vsel %vm610_vm6, %v5169_v56, %v7344_v42  ;;  %v7347_v50 = vpop.permute.xlu1 %7346 }
0x1eb8   :  { %v6063_v0 = vpack.c.bf16 %v5175_v28, %v5174_v20  ;;  %v7349_v60 = vunpack.i.h.bf16 %v7347_v50  ;;  %v7348_v35 = vunpack.i.l.bf16 %v7347_v50 }
0x1eba   :  { %6921 = vmatmul.mubr.msk.bf16.gmra.mrb[132].mxu0 %vm183_vm2, %v6063_v0  ;;  %v5165_v27 = vsel %vm404_vm3, %v8916_v40, %v7349_v60  ;;  %v5164_v8 = vsel %vm404_vm3, %v8912_v19, %v7348_v35 }
0x1ebb   :  { %6924 = vmatprep.mubr.msk.bf16.mxu0 %vm7688_vm0, %v7687_v1  ;;  %v5170_v40 = vsel %vm2397_vm7, %v5164_v8, %v7353_v45  ;;  %v5171_v7 = vsel %vm2397_vm7, %v5165_v27, %v7354_v49 }
0x1f0d   :  { %v5079_v48 = vpop.f32.mrb[134].mxu1 }
0x1f0e   :  { %v6908_v6 = vpop.f32.mrb[135].mxu1 }
0x1f11   :  { %v5084_v12 = vpop.f32.mrb[136].mxu1 }
0x1f12   :  { %v7355_v29 = vpack.i.bf16 %v5084_v12, %v5079_v48  ;;  %v6911_v10 = vpop.f32.mrb[137].mxu1 }
0x1f14   :  { %7356 = vrot.lane.b32.xlu1 %v7355_v29, %s9443_s26 }
0x1f84   :  { %v5255_v2 = vpop.f32.mrb[128].mxu0 }
0x1f85   :  { %v5278_v21 = vadd.f32 %v5255_v2, %v8649_v53  ;;  %v6918_v52 = vpop.f32.mrb[129].mxu0  ;;  %v7386_v2 = vld [vmem:[%s9426_s8 + $0x18] sm:$0xff]   ;;  %s5797_s8 = sshll.u32 %s7704_s0, 4  ;;  %s5798_s8 = int_to_ptr.vmem [resolvable:$true] %s5797_s8 }
0x1f86   :  { %v7357_v47 = vpop.permute.xlu1 %7356  ;;  %v5258_v38 = vpop.f32.mrb[130].mxu0  ;;  %6931 = vmatpush3.bf16.msra.mxu1 %v7386_v2  ;;  %v7394_v2 = vld [vmem:[%s9428_s10 + $0x78] sm:$0xff]   ;;  %s7663_s30 = scalar_lea.vmem %s5798_s8, 32  ;;  %p7668_p1 = scmp.lt.s32.totalorder %s5798_s8, %s5798_s8 }
0x1f87   :  { %v9263_v43 = vadd.f32 %v9255_v54, %v5278_v21  ;;  %v7359_v51 = vunpack.i.h.bf16 %v7357_v47  ;;  %v7358_v15 = vunpack.i.l.bf16 %v7357_v47  ;;  %v5279_v63 = vadd.f32 %v5258_v38, %v8652_v57  ;;  %v6919_v24 = vpop.f32.mrb[131].mxu0  ;;  %6972 = vmatprep.subr.bf16.mxu1 %v7687_v1  ;;  %p7664_p0 = scmp.ne.s32.totalorder %s5798_s8, %s7663_s30  ;;  %p7669_p2 = scmp.lt.s32.totalorder %s7663_s30, %s7663_s30 }
0x1f89   :  { %v5176_v19 = vsel %vm610_vm6, %v5170_v40, %v7358_v15  ;;  %v5177_v53 = vsel %vm610_vm6, %v5171_v7, %v7359_v51  ;;  %v5293_v58 = vadd.f32 %v9255_v54, %v5279_v63  ;;  %v5298_v62 = vsel %vm183_vm2, %v9263_v43, 0.0  ;;  %p7670_p3 = por %p7669_p2, %p7668_p1 }
0x1f8a   :  { %v5180_v4 = vpack.c.bf16 %v5176_v19, %v5175_v28  ;;  %v5181_v30 = vpack.c.bf16 %v5177_v53, %v5177_v53  ;;  %5299 = vadd.xlane.f32.xlu0 %v5298_v62 }
0x1f8b   :  { %v5301_v23 = vsel %vm183_vm2, %v5293_v58, 0.0  ;;  %p7671_p4 = pnand %p7670_p3, %p7664_p0 }
0x1f8c   :  { %v5190_v57 = vunpack.c.h.b16 %v5180_v4  ;;  %v5191_v34 = vunpack.c.l.b16 %v5181_v30  ;;  %5302 = vadd.xlane.f32.xlu1 %v5301_v23 }
0x1f8d   :  { %v5263_v16 = vpop.f32.mrb[132].mxu0 }
0x1f8e   :  { %v5280_v33 = vadd.f32 %v5263_v16, %v8659_v36  ;;  %v6922_v61 = vpop.f32.mrb[133].mxu0  ;;  %v5199_v5 = vpack.c.b16 %v5191_v34, %v5190_v57 }
0x1f8f   :  { %v5266_v17 = vpop.f32.mrb[134].mxu0 }
0x1f90   :  { %v5294_v44 = vadd.f32 %v9255_v54, %v5280_v33  ;;  %v5281_v39 = vadd.f32 %v5266_v17, %v8662_v9  ;;  %v6923_v46 = vpop.f32.mrb[135].mxu0  ;;  %6925 = vmatmul.mubr.msk.bf16.gmra.mrb[136].mxu0 %vm183_vm2, %v5199_v5 }
0x1f91   :  { %6960 = vmatprep.mubr.msk.bf16.mxu0 %vm7688_vm0, %v7687_v1 }
0x1f92   :  { %v9281_v18 = vadd.f32 %v9255_v54, %v5281_v39  ;;  %v5304_v31 = vsel %vm183_vm2, %v5294_v44, 0.0 }
0x1f93   :  { %5305 = vadd.xlane.f32.xlu0 %v5304_v31 }
0x1f94   :  { %v5307_v36 = vsel %vm183_vm2, %v9281_v18, 0.0 }
0x1f97   :  { %5308 = vadd.xlane.f32.xlu0 %v5307_v36 }
0x2017   :  { %v5300_v59 = vpop.xlane.xlu0 %5299 }
0x2018   :  { %v5316_v55 = vmul.f32 0.03125, %v5300_v59 }
0x2019   :  { %v5303_v3 = vpop.xlane.xlu1 %5302 }
0x201a   :  { %v5322_v9 = vsub.f32 %v9263_v43, %v5316_v55  ;;  %v5317_v25 = vmul.f32 0.03125, %v5303_v3 }
0x201c   :  { %v5323_v42 = vsub.f32 %v5293_v58, %v5317_v25  ;;  %v5328_v37 = vmul.f32 %v5322_v9, %v5322_v9 }
0x201e   :  { %v5334_v41 = vsel %vm183_vm2, %v5328_v37, 0.0  ;;  %v5329_v56 = vmul.f32 %v5323_v42, %v5323_v42 }
0x201f   :  { %5335 = vadd.xlane.f32.xlu0 %v5334_v41 }
0x2020   :  { %v5306_v20 = vpop.xlane.xlu0 %5305  ;;  %v5337_v28 = vsel %vm183_vm2, %v5329_v56, 0.0 }
0x2021   :  { %v5318_v0 = vmul.f32 0.03125, %v5306_v20  ;;  %5338 = vadd.xlane.f32.xlu1 %v5337_v28 }
0x2023   :  { %v5324_v48 = vsub.f32 %v5294_v44, %v5318_v0 }
0x2024   :  { %v5309_v6 = vpop.xlane.xlu0 %5308 }
0x2025   :  { %v5319_v12 = vmul.f32 0.03125, %v5309_v6  ;;  %v5330_v29 = vmul.f32 %v5324_v48, %v5324_v48 }
0x2027   :  { %v5325_v10 = vsub.f32 %v9281_v18, %v5319_v12  ;;  %v5340_v50 = vsel %vm183_vm2, %v5330_v29, 0.0  ;;  %v7387_v12 = vld [vmem:[%s9428_s10 + $0x40] sm:$0xff]   ;;  %v7388_v29 = vld [vmem:[%s9428_s10 + $0x48] sm:$0xff]  }
0x2028   :  { %5341 = vadd.xlane.f32.xlu0 %v5340_v50  ;;  %6945 = vmatpush3.bf16.msra.mxu0 %v7387_v12  ;;  %v7390_v50 = vld [vmem:[%s9428_s10 + $0x58] sm:$0xff]  }
0x2029   :  { %v5331_v60 = vmul.f32 %v5325_v10, %v5325_v10  ;;  %6946 = vmatprep.subr.bf16.mxu0 %v7687_v1 }
0x202b   :  { %v5343_v35 = vsel %vm183_vm2, %v5331_v60, 0.0  ;;  %v7391_v60 = vld [vmem:[%s9428_s10 + $0x60] sm:$0xff]  }
0x202c   :  { %5344 = vadd.xlane.f32.xlu1 %v5343_v35  ;;  %6947 = vmatpush3.bf16.msra.mxu0 %v7388_v29  ;;  %v7392_v35 = vld [vmem:[%s9428_s10 + $0x68] sm:$0xff]  }
0x202d   :  { %6948 = vmatprep.subr.bf16.mxu0 %v7687_v1 }
0x2063   :  { %v5271_v27 = vpop.f32.mrb[136].mxu0 }
0x2064   :  { %v5282_v8 = vadd.f32 %v5271_v27, %v8669_v32  ;;  %v6926_v21 = vpop.f32.mrb[137].mxu0 }
0x2065   :  { %v5274_v52 = vpop.f32.mrb[138].mxu0 }
0x2066   :  { %v5296_v49 = vadd.f32 %v9255_v54, %v5282_v8  ;;  %v5283_v45 = vadd.f32 %v5274_v52, %v8672_v26  ;;  %v6927_v47 = vpop.f32.mrb[139].mxu0 }
0x2067   :  { %v9370_v47 = vld [vmem:[%s9427_s9 + $0x1] ss:$0 sm:$0xff] }
0x2068   :  { %v5297_v38 = vadd.f32 %v9255_v54, %v5283_v45  ;;  %v5310_v51 = vsel %vm183_vm2, %v5296_v49, 0.0  ;;  %v7662_v54 = vld [vmem:[%s9421_s3 + $0x4] sm:$0xf] }
0x2069   :  { %5311 = vadd.xlane.f32.xlu0 %v5310_v51  ;;  %v9311_v4 = vrot.slane %v7662_v54, %v2608_v22  ;;  %v9315_v33 = vrot.slane %v7662_v54, %v2618_v14 }
0x206a   :  { %v5313_v15 = vsel %vm183_vm2, %v5297_v38, 0.0 }
0x206b   :  { %5314 = vadd.xlane.f32.xlu1 %v5313_v15 }
0x20ac   :  { %v5336_v63 = vpop.xlane.xlu0 %5335 }
0x20ad   :  { %v5352_v24 = vmul.f32 0.03125, %v5336_v63 }
0x20ae   :  { %v5339_v40 = vpop.xlane.xlu1 %5338 }
0x20af   :  { %v5358_v7 = vadd.f32 1e-05, %v5352_v24  ;;  %v5353_v32 = vmul.f32 0.03125, %v5339_v40 }
0x20b1   :  { %7637 = vrsqrt.f32 %v5358_v7  ;;  %v5359_v19 = vadd.f32 1e-05, %v5353_v32 }
0x20b3   :  { %7639 = vrsqrt.f32 %v5359_v19 }
0x20b5   :  { %v5342_v53 = vpop.xlane.xlu0 %5341 }
0x20b6   :  { %v5354_v58 = vmul.f32 0.03125, %v5342_v53 }
0x20b8   :  { %v5360_v26 = vadd.f32 1e-05, %v5354_v58 }
0x20b9   :  { %v5345_v62 = vpop.xlane.xlu1 %5344 }
0x20ba   :  { %7641 = vrsqrt.f32 %v5360_v26  ;;  %v5355_v30 = vmul.f32 0.03125, %v5345_v62 }
0x20bb   :  { %v7638_v23 = vpop.eup %7637 }
0x20bc   :  { %v5370_v57 = vmul.f32 %v7638_v23, %v5322_v9  ;;  %v5361_v34 = vadd.f32 1e-05, %v5355_v30 }
0x20bd   :  { %v7640_v16 = vpop.eup %7639 }
0x20be   :  { %v5380_v61 = vmul.f32 %v9311_v4, %v5370_v57  ;;  %v5371_v5 = vmul.f32 %v7640_v16, %v5323_v42  ;;  %7643 = vrsqrt.f32 %v5361_v34 }
0x20c0   :  { %v5381_v17 = vmul.f32 %v9311_v4, %v5371_v5  ;;  %v5390_v44 = vadd.f32 %v9315_v33, %v5380_v61 }
0x20c2   :  { %v5391_v22 = vadd.f32 %v9315_v33, %v5381_v17 }
0x20c4   :  { %v7642_v39 = vpop.eup %7641  ;;  %v5396_v46 = vpack.c.bf16 %v5391_v22, %v5390_v44 }
0x20c5   :  { %v5372_v31 = vmul.f32 %v7642_v39, %v5324_v48 }
0x20c6   :  { %6933 = vmatmul.mubr.msk.bf16.vlgmr.msra.gmra.mrb[140].mxu1 %vm183_vm2, %v5396_v46 }
0x20c7   :  { %6936 = vmatprep.mubr.msk.bf16.mxu1 %vm7688_vm0, %v7687_v1  ;;  %v5382_v36 = vmul.f32 %v9311_v4, %v5372_v31 }
0x20c8   :  { %v7644_v13 = vpop.eup %7643 }
0x20c9   :  { %v5373_v14 = vmul.f32 %v7644_v13, %v5325_v10  ;;  %v5392_v55 = vadd.f32 %v9315_v33, %v5382_v36  ;;  %v7389_v10 = vld [vmem:[%s9428_s10 + $0x50] sm:$0xff]  }
0x20ca   :  { %6949 = vmatpush3.bf16.msra.mxu0 %v7389_v10 }
0x20cb   :  { %v5383_v59 = vmul.f32 %v9311_v4, %v5373_v14  ;;  %6950 = vmatprep.subr.bf16.mxu0 %v7687_v1 }
0x20cd   :  { %v9328_v3 = vadd.f32 %v9315_v33, %v5383_v59 }
0x20ce   :  { %6951 = vmatpush3.bf16.msra.mxu0 %v7390_v50 }
0x20cf   :  { %v6064_v9 = vpack.c.bf16 %v9328_v3, %v5392_v55  ;;  %6952 = vmatprep.subr.bf16.mxu0 %v7687_v1 }
0x20d1   :  { %6937 = vmatmul.mubr.msk.bf16.gmra.mrb[144].mxu1 %vm183_vm2, %v6064_v9 }
0x20d2   :  { %6940 = vmatprep.mubr.msk.bf16.mxu1 %vm7688_vm0, %v7687_v1  ;;  %6953 = vmatpush3.bf16.msra.mxu0 %v7391_v60 }
0x20d3   :  { %6954 = vmatprep.subr.bf16.mxu0 %v7687_v1 }
0x20d6   :  { %6955 = vmatpush3.bf16.msra.mxu0 %v7392_v35 }
0x20d7   :  { %6956 = vmatprep.subr.bf16.mxu0 %v7687_v1 }
0x20da   :  { %6957 = vmatpush3.bf16.msra.mxu0 %v7393_v11 }
0x20db   :  { %6958 = vmatprep.subr.bf16.mxu0 %v7687_v1 }
0x20de   :  { %6959 = vmatpush3.bf16.msra.mxu0 %v7394_v2 }
0x20f6   :  { %v5312_v25 = vpop.xlane.xlu0 %5311 }
0x20f7   :  { %v5320_v42 = vmul.f32 0.03125, %v5312_v25 }
0x20f8   :  { %v5315_v37 = vpop.xlane.xlu1 %5314 }
0x20f9   :  { %v5326_v41 = vsub.f32 %v5296_v49, %v5320_v42  ;;  %v5321_v56 = vmul.f32 0.03125, %v5315_v37 }
0x20fb   :  { %v5327_v20 = vsub.f32 %v5297_v38, %v5321_v56  ;;  %v5332_v28 = vmul.f32 %v5326_v41, %v5326_v41 }
0x20fd   :  { %v5346_v0 = vsel %vm183_vm2, %v5332_v28, 0.0  ;;  %v5333_v48 = vmul.f32 %v5327_v20, %v5327_v20 }
0x20fe   :  { %5347 = vadd.xlane.f32.xlu0 %v5346_v0 }
0x20ff   :  { %v5349_v6 = vsel %vm183_vm2, %v5333_v48, 0.0 }
0x2100   :  { %5350 = vadd.xlane.f32.xlu1 %v5349_v6 }
0x218b   :  { %v5348_v27 = vpop.xlane.xlu0 %5347 }
0x218c   :  { %v5356_v8 = vmul.f32 0.03125, %v5348_v27 }
0x218d   :  { %v5351_v21 = vpop.xlane.xlu1 %5350 }
0x218e   :  { %v5362_v52 = vadd.f32 1e-05, %v5356_v8  ;;  %v5357_v49 = vmul.f32 0.03125, %v5351_v21 }
0x2190   :  { %7645 = vrsqrt.f32 %v5362_v52  ;;  %v5363_v45 = vadd.f32 1e-05, %v5357_v49 }
0x2192   :  { %7647 = vrsqrt.f32 %v5363_v45 }
0x2199   :  { %v5473_v38 = vpop.f32.mrb[140].mxu1 }
0x219a   :  { %v7646_v51 = vpop.eup %7645  ;;  %v5504_v15 = vadd.f32 %v9370_v47, %v5473_v38  ;;  %v6934_v63 = vpop.f32.mrb[141].mxu1 }
0x219b   :  { %v5374_v24 = vmul.f32 %v7646_v51, %v5326_v41  ;;  %v5476_v40 = vpop.f32.mrb[142].mxu1 }
0x219c   :  { %v7648_v7 = vpop.eup %7647  ;;  %v5516_v32 = vmul.f32 0.044715, %v5504_v15  ;;  %v5505_v19 = vadd.f32 %v9370_v47, %v5476_v40  ;;  %v6935_v53 = vpop.f32.mrb[143].mxu1  ;;  %v5510_v10 = vmul.f32 0.5, %v5504_v15 }
0x219d   :  { %v5384_v58 = vmul.f32 %v9311_v4, %v5374_v24  ;;  %v5375_v26 = vmul.f32 %v7648_v7, %v5327_v20  ;;  %v7396_v24 = vld [vmem:[%s9430_s12 + $0x8] sm:$0xff]  }
0x219e   :  { %v5522_v62 = vmul.f32 %v5516_v32, %v5504_v15  ;;  %v5517_v54 = vmul.f32 0.044715, %v5505_v19  ;;  %v5511_v50 = vmul.f32 0.5, %v5505_v19 }
0x219f   :  { %v5385_v30 = vmul.f32 %v9311_v4, %v5375_v26  ;;  %v5394_v23 = vadd.f32 %v9315_v33, %v5384_v58 }
0x21a0   :  { %v5528_v57 = vmul.f32 %v5522_v62, %v5504_v15  ;;  %v5523_v34 = vmul.f32 %v5517_v54, %v5505_v19 }
0x21a1   :  { %v5395_v16 = vadd.f32 %v9315_v33, %v5385_v30  ;;  %v5398_v61 = vpack.c.bf16 %v5394_v23, %v9328_v3 }
0x21a2   :  { %v5534_v5 = vadd.f32 %v5528_v57, %v5504_v15  ;;  %v5529_v17 = vmul.f32 %v5523_v34, %v5505_v19  ;;  %v7395_v15 = vld [vmem:[%s9430_s12] sm:$0xff]  }
0x21a3   :  { %v5399_v44 = vpack.c.bf16 %v5395_v16, %v5395_v16  ;;  %v5408_v14 = vunpack.c.h.b16 %v5398_v61  ;;  %6973 = vmatpush3.bf16.msra.mxu1 %v7395_v15 }
0x21a4   :  { %v5540_v22 = vmul.f32 0.7978846, %v5534_v5  ;;  %v5535_v39 = vadd.f32 %v5529_v17, %v5505_v19  ;;  %v5481_v46 = vpop.f32.mrb[144].mxu1  ;;  %6974 = vmatprep.subr.bf16.mxu1 %v7687_v1 }
0x21a5   :  { %v5506_v31 = vadd.f32 %v9370_v47, %v5481_v46  ;;  %v6938_v13 = vpop.f32.mrb[145].mxu1  ;;  %v5409_v36 = vunpack.c.l.b16 %v5399_v44 }
0x21a6   :  { %7649 = vtanh.f32 %v5540_v22  ;;  %v5541_v4 = vmul.f32 0.7978846, %v5535_v39  ;;  %v5484_v59 = vpop.f32.mrb[146].mxu1 }
0x21a7   :  { %v5518_v55 = vmul.f32 0.044715, %v5506_v31  ;;  %v5507_v9 = vadd.f32 %v9370_v47, %v5484_v59  ;;  %v6939_v33 = vpop.f32.mrb[147].mxu1  ;;  %v5417_v25 = vpack.c.b16 %v5409_v36, %v5408_v14  ;;  %v5512_v52 = vmul.f32 0.5, %v5506_v31  ;;  %6975 = vmatpush3.bf16.msra.mxu1 %v7396_v24  ;;  %v6053_v59 = vld [vmem:[%s9429_s11 + $0x1] ss:$0 sm:$0xff] }
0x21a8   :  { %7651 = vtanh.f32 %v5541_v4 }
0x21a9   :  { %v5524_v3 = vmul.f32 %v5518_v55, %v5506_v31  ;;  %v5519_v42 = vmul.f32 0.044715, %v5507_v9  ;;  %6941 = vmatmul.mubr.msk.bf16.gmra.mrb[148].mxu1 %vm183_vm2, %v5417_v25  ;;  %v5513_v49 = vmul.f32 0.5, %v5507_v9 }
0x21aa   :  { %6976 = vmatprep.mubr.msk.bf16.mxu1 %vm7688_vm0, %v7687_v1 }
0x21ab   :  { %v5530_v37 = vmul.f32 %v5524_v3, %v5506_v31  ;;  %v5525_v41 = vmul.f32 %v5519_v42, %v5507_v9 }
0x21ad   :  { %v5531_v56 = vmul.f32 %v5525_v41, %v5507_v9  ;;  %v5536_v20 = vadd.f32 %v5530_v37, %v5506_v31 }
0x21af   :  { %v5537_v28 = vadd.f32 %v5531_v56, %v5507_v9  ;;  %v5542_v0 = vmul.f32 0.7978846, %v5536_v20 }
0x21b0   :  { %v7650_v48 = vpop.eup %7649 }
0x21b1   :  { %v5552_v6 = vadd.f32 1.0, %v7650_v48  ;;  %v5543_v12 = vmul.f32 0.7978846, %v5537_v28  ;;  %7653 = vtanh.f32 %v5542_v0 }
0x21b2   :  { %v7652_v29 = vpop.eup %7651 }
0x21b3   :  { %v5553_v60 = vadd.f32 1.0, %v7652_v29  ;;  %7655 = vtanh.f32 %v5543_v12  ;;  %v5558_v35 = vmul.f32 %v5552_v6, %v5510_v10 }
0x21b5   :  { %v5559_v11 = vmul.f32 %v5553_v60, %v5511_v50 }
0x21b7   :  { %v5564_v2 = vpack.c.bf16 %v5559_v11, %v5558_v35 }
0x21b9   :  { %6961 = vmatmul.mubr.bf16.vlgmr.msra.gmra.mrb[140].mxu0 %v5564_v2 }
0x21ba   :  { %6964 = vmatprep.mubr.msk.bf16.mxu0 %vm7688_vm0, %v7687_v1 }
0x21bb   :  { %v7654_v27 = vpop.eup %7653 }
0x21bc   :  { %v5554_v8 = vadd.f32 1.0, %v7654_v27  ;;  %v6054_v27 = vld [vmem:[%s9431_s13] ss:$0 sm:$0xff] }
0x21bd   :  { %v7656_v21 = vpop.eup %7655 }
0x21be   :  { %v5555_v45 = vadd.f32 1.0, %v7656_v21  ;;  %v5560_v38 = vmul.f32 %v5554_v8, %v5512_v52 }
0x21c0   :  { %v5561_v51 = vmul.f32 %v5555_v45, %v5513_v49 }
0x21c2   :  { %v6065_v63 = vpack.c.bf16 %v5561_v51, %v5560_v38 }
0x21c4   :  { %6965 = vmatmul.mubr.bf16.gmra.mrb[144].mxu0 %v6065_v63 }
0x21c5   :  { %6968 = vmatprep.mubr.msk.bf16.mxu0 %vm7688_vm0, %v7687_v1 }
0x227c   :  { %v5489_v40 = vpop.f32.mrb[148].mxu1 }
0x227d   :  { %v5508_v7 = vadd.f32 %v9370_v47, %v5489_v40  ;;  %v6942_v32 = vpop.f32.mrb[149].mxu1 }
0x227e   :  { %v5492_v19 = vpop.f32.mrb[150].mxu1 }
0x227f   :  { %v5520_v53 = vmul.f32 0.044715, %v5508_v7  ;;  %v5509_v58 = vadd.f32 %v9370_v47, %v5492_v19  ;;  %v6943_v26 = vpop.f32.mrb[151].mxu1  ;;  %v5514_v46 = vmul.f32 0.5, %v5508_v7 }
0x2281   :  { %v5526_v62 = vmul.f32 %v5520_v53, %v5508_v7  ;;  %v5521_v54 = vmul.f32 0.044715, %v5509_v58  ;;  %v5515_v14 = vmul.f32 0.5, %v5509_v58 }
0x2283   :  { %v5532_v30 = vmul.f32 %v5526_v62, %v5508_v7  ;;  %v5527_v23 = vmul.f32 %v5521_v54, %v5509_v58 }
0x2285   :  { %v5538_v57 = vadd.f32 %v5532_v30, %v5508_v7  ;;  %v5533_v1 = vmul.f32 %v5527_v23, %v5509_v58 }
0x2287   :  { %v5544_v34 = vmul.f32 0.7978846, %v5538_v57  ;;  %v5539_v16 = vadd.f32 %v5533_v1, %v5509_v58 }
0x2289   :  { %v5545_v61 = vmul.f32 0.7978846, %v5539_v16  ;;  %7657 = vtanh.f32 %v5544_v34 }
0x228b   :  { %7659 = vtanh.f32 %v5545_v61 }
0x228c   :  { %v5683_v5 = vpop.f32.mrb[140].mxu0 }
0x228d   :  { %v6962_v17 = vpop.f32.mrb[141].mxu0  ;;  %v5702_v13 = vadd.f32 %v5683_v5, %v9263_v43 }
0x228e   :  { %v5686_v44 = vpop.f32.mrb[142].mxu0 }
0x228f   :  { %v6963_v22 = vpop.f32.mrb[143].mxu0  ;;  %v5712_v42 = vadd.f32 %v6053_v59, %v5702_v13 }
0x2291   :  { %v5714_v0 = vpack.c.bf16 %v5712_v42, %v5712_v42 }
0x2293   :  { %v7658_v39 = vpop.eup %7657  ;;  %v5729_v29 = vunpack.c.l.b16 %v5714_v0 }
0x2294   :  { %v5556_v31 = vadd.f32 1.0, %v7658_v39 }
0x2295   :  { %v7660_v47 = vpop.eup %7659 }
0x2296   :  { %v5557_v36 = vadd.f32 1.0, %v7660_v47  ;;  %v5562_v4 = vmul.f32 %v5556_v31, %v5514_v46 }
0x2297   :  { %v5690_v55 = vpop.f32.mrb[144].mxu0 }
0x2298   :  { %v6966_v9 = vpop.f32.mrb[145].mxu0  ;;  %v5563_v33 = vmul.f32 %v5557_v36, %v5515_v14  ;;  %v5566_v25 = vpack.c.bf16 %v5562_v4, %v5561_v51 }
0x2299   :  { %v5692_v3 = vpop.f32.mrb[146].mxu0 }
0x229a   :  { %v5703_v37 = vadd.f32 %v5692_v3, %v9281_v18  ;;  %v6967_v41 = vpop.f32.mrb[147].mxu0  ;;  %v5567_v56 = vpack.c.bf16 %v5563_v33, %v5563_v33  ;;  %v5576_v28 = vunpack.c.h.b16 %v5566_v25 }
0x229c   :  { %v5713_v20 = vadd.f32 %v6053_v59, %v5703_v37  ;;  %v5577_v43 = vunpack.c.l.b16 %v5567_v56 }
0x229e   :  { %v5715_v48 = vpack.c.bf16 %v5713_v20, %v5713_v20  ;;  %v5597_v6 = vpack.c.b16 %v5577_v43, %v5576_v28 }
0x22a0   :  { %v5730_v12 = vunpack.c.l.b16 %v5715_v48  ;;  %6969 = vmatmul.mubr.bf16.gmra.mrb[148].mxu0 %v5597_v6 }
0x22a2   :  { %v5731_v10 = vrot.slane %v5730_v12, 7 }
0x22a4   :  { %v5733_v50 = vsel %vm5732_vm8, %v5731_v10, %v5729_v29 }
0x22a5   :  { %v5734_v60 = vpack.c.b16 %v5733_v50, %v5733_v50 }
0x22a7   :  { %6977 = vmatmul.mubr.msk.bf16.vlgmr.msra.gmra.mrb[152].mxu1 %vm183_vm2, %v5734_v60 }
0x2373   :  { %v5697_v35 = vpop.f32.mrb[148].mxu0 }
0x2374   :  { %v6970_v11 = vpop.f32.mrb[149].mxu0 }
0x2375   :  { %v5699_v18 = vpop.f32.mrb[150].mxu0 }
0x2376   :  { %v6971_v2 = vpop.f32.mrb[151].mxu0 }
0x237a   :  { %v5784_v8 = vpop.f32.mrb[152].mxu1 }
0x237b   :  { %v5785_v21 = vadd.f32 %v6054_v27, %v5784_v8  ;;  %v6978_v52 = vpop.f32.mrb[153].mxu1 }
0x237c   :  { %v5787_v49 = vpop.f32.mrb[154].mxu1 }
0x237d   :  { %5790 = vst [vmem:[#allocation2] sm:$0x3] %v5785_v21  ;;  %v6979_v45 = vpop.f32.mrb[155].mxu1 }
0x237e   :  { %7674 = shalt.err (!%p7671_p4)
}
0x237f   :  { %s7675_s13 = scalar_lea.hbm %s9432_s14, 32 }
0x2380   :  { %p7676_p5 = scmp.ne.s32.totalorder %s9432_s14, %s7675_s13  ;;  %p7679_p6 = scmp.lt.u32.totalorder %s7675_s13, %s9432_s14 }
0x2382   :  { %p7681_p7 = pnand %p7679_p6, %p7676_p5 }
0x2384   :  { %7684 = shalt.err (!%p7681_p7)
}
0x2385   :  { %5800 = dma.vmem_to_hbm [thread:$0]  %s5798_s8, 32, %s9432_s14, [#allocation3]  }
0x2386   :  { %7685 = dma.done.wait [#allocation3], 32  }
0x2387   :  { %7686 = vsyncadd [#allocation3], 4294967264 }
0x2388   :  { %5804 = vsyncpa [#allocation3], 1 }

</bundles_post_ra>
